<compile_context>
chip_gen: v7x
topology: tpu7x:2x2x1
jax: 0.10.0
libtpu: 0.0.40
codegen_flags: <defaults>
</compile_context>

<pallas_src>
import math
import functools

import jax
import jax.numpy as jnp
import numpy as np
from jax.experimental import pallas as pl
from jax.experimental.pallas import tpu as pltpu


# ----------------------------- Pallas kernel ---------------------------------

def _decoder_kernel(x0_ref, enc_ref, tbias_ref, sbias_ref,
                    sa_qkv_w_ref, sa_qkv_b_ref, sa_o_w_ref, sa_o_b_ref,
                    ca_q_w_ref, ca_q_b_ref, ca_kv_w_ref, ca_kv_b_ref,
                    ca_o_w_ref, ca_o_b_ref,
                    ff_w1_ref, ff_b1_ref, ff_w2_ref, ff_b2_ref,
                    ln_g_ref, ln_b_ref,
                    o_ref,
                    qkv_scr, kv_scr, ctx_scr,
                    *, TB, S, SK, D, H, DK, F_CHUNK):
    """One (batch-tile, layer) per grid step; activation carried in the output block."""
    layer = pl.program_id(1)
    bf16 = jnp.bfloat16
    scale = 1.0 / math.sqrt(DK)
    RQ = TB * S
    RK = TB * SK
    F = ff_w1_ref.shape[-1]

    # Initialize the carried activation from the embedded input at layer 0.
    @pl.when(layer == 0)
    def _():
        o_ref[...] = x0_ref[...]

    x = o_ref[...].reshape(RQ, D)                 # carried activation, f32
    enc_bf = enc_ref[...].reshape(RK, D)          # bf16 (pre-cast in wrapper)

    # Additive mask biases (precomputed in wrapper), hoisted once per layer.
    t_bias = tbias_ref[...][None]                 # (1, S, S)
    s_bias = sbias_ref[...][None]                 # (1, S, SK)

    ln_g = ln_g_ref[...]                          # (3, D) f32
    ln_b = ln_b_ref[...]                          # (3, D) f32

    def layernorm(v, i):
        mean = jnp.mean(v, axis=-1, keepdims=True)
        var = jnp.mean((v - mean) ** 2, axis=-1, keepdims=True)
        return (v - mean) * jax.lax.rsqrt(var + 1e-5) * ln_g[i:i + 1] + ln_b[i:i + 1]

    def attend(q_ref, q_off, k_ref, k_off, v_off, skv, bias, wo_ref, bo_ref):
        # q_ref / k_ref are bf16 VMEM slabs; per-head reads are static ref windows,
        # per-head contexts are written straight into the (RQ, D) context slab
        # (no lane-dim concatenate, no slicing of large register values).
        for h in range(H):
            qh = q_ref[:, q_off + h * DK: q_off + (h + 1) * DK].reshape(TB, S, DK)
            kh = k_ref[:, k_off + h * DK: k_off + (h + 1) * DK].reshape(TB, skv, DK)
            vh = k_ref[:, v_off + h * DK: v_off + (h + 1) * DK].reshape(TB, skv, DK)
            s = jnp.einsum('bqd,bkd->bqk', qh, kh,
                           preferred_element_type=jnp.float32) * scale + bias
            s = s - jnp.max(s, axis=-1, keepdims=True)
            e = jnp.exp(s)
            p = e * pl.reciprocal(jnp.sum(e, axis=-1, keepdims=True), approx=True)
            ctx = jnp.einsum('bqk,bkd->bqd', p.astype(bf16), vh,
                             preferred_element_type=jnp.float32)
            ctx_scr[:, h * DK:(h + 1) * DK] = ctx.reshape(RQ, DK).astype(bf16)
        return (jnp.dot(ctx_scr[...], wo_ref[...],
                        preferred_element_type=jnp.float32) + bo_ref[...])

    # ---- self-attention (fused QKV) + residual + norm1 ----
    x_bf = x.astype(bf16)
    qkv_scr[...] = (jnp.dot(x_bf, sa_qkv_w_ref[...],
                            preferred_element_type=jnp.float32)
                    + sa_qkv_b_ref[...]).astype(bf16)
    sa = attend(qkv_scr, 0, qkv_scr, D, 2 * D, S, t_bias, sa_o_w_ref, sa_o_b_ref)
    x1 = layernorm(x + sa, 0)

    # ---- cross-attention (fused KV on enc) + residual + norm2 ----
    qkv_scr[:, :D] = (jnp.dot(x1.astype(bf16), ca_q_w_ref[...],
                              preferred_element_type=jnp.float32)
                      + ca_q_b_ref[...]).astype(bf16)
    kv_scr[...] = (jnp.dot(enc_bf, ca_kv_w_ref[...],
                           preferred_element_type=jnp.float32)
                   + ca_kv_b_ref[...]).astype(bf16)
    ca = attend(qkv_scr, 0, kv_scr, 0, D, SK, s_bias, ca_o_w_ref, ca_o_b_ref)
    x2 = layernorm(x1 + ca, 1)

    # ---- feed-forward (chunked along d_ff, bf16 intermediate) + residual + norm3 ----
    x2_bf = x2.astype(bf16)
    ff = ff_b2_ref[...]                                        # (1, D) f32
    for f0 in range(0, F, F_CHUNK):
        fc = min(F_CHUNK, F - f0)
        h1 = jnp.maximum(
            jnp.dot(x2_bf, ff_w1_ref[:, f0:f0 + fc],
                    preferred_element_type=jnp.float32) + ff_b1_ref[:, f0:f0 + fc],
            0.0).astype(bf16)
        ff = ff + jnp.dot(h1, ff_w2_ref[f0:f0 + fc, :],
                          preferred_element_type=jnp.float32)
    x3 = layernorm(x2 + ff, 2)

    # Write-back = carry to next layer (HBM writeback only when the batch tile changes).
    o_ref[...] = x3.reshape(TB, S, D).astype(o_ref.dtype)


# ----------------------------- wrapper ----------------------------------------

def decoder_pallas(x_emb, enc_bf16, t_bias, s_bias, packed, *,
                   num_heads, batch_tile=None, ff_chunk=2048):
    """x_emb: (B,S,D) f32, enc_bf16: (B,SK,D) bf16, biases: (S,S)/(S,SK) f32."""
    B, S, D = x_emb.shape
    SK = enc_bf16.shape[1]
    L = packed["sa_qkv_w"].shape[0]
    F = packed["ff_w1"].shape[2]
    assert D % num_heads == 0
    DK = D // num_heads

    TB = B if batch_tile is None else batch_tile   # set B//2 on v7x to use both cores
    assert B % TB == 0
    nb = B // TB
    F_CHUNK = min(F, ff_chunk)
    RQ, RK = TB * S, TB * SK

    kernel = functools.partial(_decoder_kernel,
                               TB=TB, S=S, SK=SK, D=D, H=num_heads, DK=DK,
                               F_CHUNK=F_CHUNK)

    def per_batch(shape):                       # leading dim is the batch tile
        n = len(shape)
        return pl.BlockSpec(shape, lambda b, l, n=n: (b,) + (0,) * (n - 1))

    def shared(shape):                          # same block for every grid step
        n = len(shape)
        return pl.BlockSpec(shape, lambda b, l, n=n: (0,) * n)

    def per_layer(shape):                       # shape excludes the leading layer axis
        n = len(shape)
        return pl.BlockSpec((None,) + shape, lambda b, l, n=n: (l,) + (0,) * n)

    in_specs = [
        per_batch((TB, S, D)),                  # embedded input (read at layer 0)
        per_batch((TB, SK, D)),                 # encoder output (bf16)
        shared((S, S)),                         # tgt additive bias
        shared((S, SK)),                        # src additive bias
        per_layer((D, 3 * D)), per_layer((1, 3 * D)),   # self-attn fused QKV
        per_layer((D, D)),     per_layer((1, D)),       # self-attn Wo
        per_layer((D, D)),     per_layer((1, D)),       # cross-attn Q
        per_layer((D, 2 * D)), per_layer((1, 2 * D)),   # cross-attn fused KV
        per_layer((D, D)),     per_layer((1, D)),       # cross-attn Wo
        per_layer((D, F)),     per_layer((1, F)),       # FFN linear1
        per_layer((F, D)),     per_layer((1, D)),       # FFN linear2
        per_layer((3, D)),     per_layer((3, D)),       # LayerNorm gamma / beta
    ]
    out_spec = pl.BlockSpec((TB, S, D), lambda b, l: (b, 0, 0))

    # ---- cost estimate ----
    per_tile_layer_flops = (
        2 * RQ * D * (3 * D)                    # fused QKV
        + 3 * 2 * RQ * D * D                    # self Wo, cross Q, cross Wo
        + 2 * RK * D * (2 * D)                  # cross fused KV
        + 2 * 2 * RQ * D * F                    # FFN
        + 2 * 2 * TB * num_heads * S * (S + SK) * DK)   # scores + context
    w_bytes = sum(int(v.size) * v.dtype.itemsize for v in packed.values())
    bytes_accessed = int(nb * w_bytes
                         + x_emb.size * 4 + enc_bf16.size * 2
                         + (t_bias.size + s_bias.size) * 4
                         + B * S * D * 4)
    cost = pl.CostEstimate(flops=int(nb * L * per_tile_layer_flops),
                           transcendentals=int(nb * L * TB * num_heads * S * (S + SK)),
                           bytes_accessed=bytes_accessed)

    # ---- explicit VMEM budget (double-buffered per-layer weights + resident data) ----
    per_layer_w = w_bytes // max(L, 1)
    resident = (RQ * D * 4 * 2                  # x0 tile (double-buffered)
                + RK * D * 2 * 2                # enc tile (bf16)
                + (S * S + S * SK) * 4 * 2      # mask biases
                + RQ * D * 4                    # output / activation carry
                + (RQ * 3 * D + RK * 2 * D + RQ * D) * 2)   # bf16 scratch slabs
    # Keep <= 64 MiB if targeting v7x (tile d_ff / lower buffer depth instead).
    vmem_limit = int(min(max(2 * per_layer_w + resident + (8 << 20), 32 << 20),
                         100 << 20))

    return pl.pallas_call(
        kernel,
        out_shape=jax.ShapeDtypeStruct((B, S, D), x_emb.dtype),
        grid=(nb, L),
        in_specs=in_specs,
        out_specs=out_spec,
        scratch_shapes=[pltpu.VMEM((RQ, 3 * D), jnp.bfloat16),   # fused QKV / cross-Q slab
                        pltpu.VMEM((RK, 2 * D), jnp.bfloat16),   # cross fused KV slab
                        pltpu.VMEM((RQ, D), jnp.bfloat16)],      # per-head context slab
        compiler_params=pltpu.CompilerParams(
            dimension_semantics=("parallel", "arbitrary"),       # batch ∥, layers seq.
            vmem_limit_bytes=vmem_limit),
        cost_estimate=cost,
    )(x_emb, enc_bf16, t_bias, s_bias,
      packed["sa_qkv_w"], packed["sa_qkv_b"], packed["sa_o_w"], packed["sa_o_b"],
      packed["ca_q_w"], packed["ca_q_b"], packed["ca_kv_w"], packed["ca_kv_b"],
      packed["ca_o_w"], packed["ca_o_b"],
      packed["ff_w1"], packed["ff_b1"], packed["ff_w2"], packed["ff_b2"],
      packed["ln_g"], packed["ln_b"])


# ----------------------------- param glue (plain JAX) --------------------------

def positional_encoding_table(max_seq, d_model):
    position = np.arange(max_seq, dtype=np.float32)[:, None]
    div_term = np.exp(np.arange(0, d_model, 2, dtype=np.float32)
                      * (-math.log(10000.0) / d_model))
    pe = np.zeros((max_seq, d_model), dtype=np.float32)
    pe[:, 0::2] = np.sin(position * div_term)
    pe[:, 1::2] = np.cos(position * div_term)
    return jnp.asarray(pe)


def init_params(key, vocab, d_model, num_heads, num_layers, d_ff):
    k_emb, key = jax.random.split(key)
    emb = jax.random.normal(k_emb, (vocab, d_model), jnp.float32) * 0.02
    layers = []
    for _ in range(num_layers):
        key, *ks = jax.random.split(key, 21)

        def w(i, shape, s=0.05, _ks=ks):
            return jax.random.normal(_ks[i], shape, jnp.float32) * s

        layers.append(dict(
            sa_wq=w(0, (d_model, d_model)), sa_bq=w(1, (d_model,), 0.01),
            sa_wk=w(2, (d_model, d_model)), sa_bk=w(3, (d_model,), 0.01),
            sa_wv=w(4, (d_model, d_model)), sa_bv=w(5, (d_model,), 0.01),
            sa_wo=w(6, (d_model, d_model)), sa_bo=w(7, (d_model,), 0.01),
            ca_wq=w(8, (d_model, d_model)), ca_bq=w(9, (d_model,), 0.01),
            ca_wk=w(10, (d_model, d_model)), ca_bk=w(11, (d_model,), 0.01),
            ca_wv=w(12, (d_model, d_model)), ca_bv=w(13, (d_model,), 0.01),
            ca_wo=w(14, (d_model, d_model)), ca_bo=w(15, (d_model,), 0.01),
            ff_w1=w(16, (d_model, d_ff)),   ff_b1=w(17, (d_ff,), 0.01),
            ff_w2=w(18, (d_ff, d_model)),   ff_b2=w(19, (d_model,), 0.01),
            ln_g=jnp.ones((3, d_model), jnp.float32),
            ln_b=jnp.zeros((3, d_model), jnp.float32),
        ))
    return emb, layers


def pack_params(layers):
    """Stack per-layer weights along a leading layer axis; fuse QKV / KV; cast to bf16."""
    bf = jnp.bfloat16

    def stk(fn, dtype=None):
        a = jnp.stack([fn(p) for p in layers], axis=0)
        return a.astype(dtype) if dtype is not None else a

    return dict(
        sa_qkv_w=stk(lambda p: jnp.concatenate([p["sa_wq"], p["sa_wk"], p["sa_wv"]], axis=1), bf),
        sa_qkv_b=stk(lambda p: jnp.concatenate([p["sa_bq"], p["sa_bk"], p["sa_bv"]])[None, :]),
        sa_o_w=stk(lambda p: p["sa_wo"], bf),
        sa_o_b=stk(lambda p: p["sa_bo"][None, :]),
        ca_q_w=stk(lambda p: p["ca_wq"], bf),
        ca_q_b=stk(lambda p: p["ca_bq"][None, :]),
        ca_kv_w=stk(lambda p: jnp.concatenate([p["ca_wk"], p["ca_wv"]], axis=1), bf),
        ca_kv_b=stk(lambda p: jnp.concatenate([p["ca_bk"], p["ca_bv"]])[None, :]),
        ca_o_w=stk(lambda p: p["ca_wo"], bf),
        ca_o_b=stk(lambda p: p["ca_bo"][None, :]),
        ff_w1=stk(lambda p: p["ff_w1"], bf),
        ff_b1=stk(lambda p: p["ff_b1"][None, :]),
        ff_w2=stk(lambda p: p["ff_w2"], bf),
        ff_b2=stk(lambda p: p["ff_b2"][None, :]),
        ln_g=stk(lambda p: p["ln_g"]),
        ln_b=stk(lambda p: p["ln_b"]),
    )


def decoder_forward(tokens, enc_output, src_mask, tgt_mask, emb, layers, pe,
                    *, num_heads, batch_tile=None):
    x = emb[tokens] + pe[None, :tokens.shape[1], :]   # embedding + positional encoding
    # dropout: identity in eval mode
    packed = pack_params(layers)
    enc_bf16 = enc_output.astype(jnp.bfloat16)
    t_bias = jnp.where(tgt_mask == 0.0, -1e9, 0.0).astype(jnp.float32)
    s_bias = jnp.where(src_mask == 0.0, -1e9, 0.0).astype(jnp.float32)
    return decoder_pallas(x, enc_bf16, t_bias, s_bias, packed,
                          num_heads=num_heads, batch_tile=batch_tile)


# ----------------------------- pure-JAX reference ------------------------------
# Mirrors the kernel's matmul precision (bf16 operands, f32 accumulation) so the
# comparison validates kernel structure rather than bf16 rounding.

def _bf16_dot(a, b):
    return jnp.dot(a.astype(jnp.bfloat16), b.astype(jnp.bfloat16),
                   preferred_element_type=jnp.float32)


def _ln_ref(v, g, b):
    mean = jnp.mean(v, axis=-1, keepdims=True)
    var = jnp.mean((v - mean) ** 2, axis=-1, keepdims=True)
    return (v - mean) * jax.lax.rsqrt(var + 1e-5) * g + b


def _mha_ref(q_in, kv_in, wq, bq, wk, bk, wv, bv, wo, bo, mask, H, DK):
    B, Sq, D = q_in.shape
    Sk = kv_in.shape[1]
    q = (_bf16_dot(q_in, wq) + bq).reshape(B, Sq, H, DK).transpose(0, 2, 1, 3)
    k = (_bf16_dot(kv_in, wk) + bk).reshape(B, Sk, H, DK).transpose(0, 2, 1, 3)
    v = (_bf16_dot(kv_in, wv) + bv).reshape(B, Sk, H, DK).transpose(0, 2, 1, 3)
    scores = jnp.einsum('bhqd,bhkd->bhqk', q.astype(jnp.bfloat16), k.astype(jnp.bfloat16),
                        preferred_element_type=jnp.float32) / math.sqrt(DK)
    scores = jnp.where(mask[None, None] == 0, -1e9, scores)
    attn = jax.nn.softmax(scores, axis=-1)
    ctx = jnp.einsum('bhqk,bhkd->bhqd', attn.astype(jnp.bfloat16), v.astype(jnp.bfloat16),
                     preferred_element_type=jnp.float32)
    ctx = ctx.transpose(0, 2, 1, 3).reshape(B, Sq, D)
    return _bf16_dot(ctx, wo) + bo


def decoder_forward_ref(tokens, enc_output, src_mask, tgt_mask, emb, layers, pe, *, num_heads):
    x = emb[tokens] + pe[None, :tokens.shape[1], :]
    D = x.shape[-1]
    DK = D // num_heads
    for p in layers:
        sa = _mha_ref(x, x, p["sa_wq"], p["sa_bq"], p["sa_wk"], p["sa_bk"],
                      p["sa_wv"], p["sa_bv"], p["sa_wo"], p["sa_bo"],
                      tgt_mask, num_heads, DK)
        x = _ln_ref(x + sa, p["ln_g"][0], p["ln_b"][0])
        ca = _mha_ref(x, enc_output, p["ca_wq"], p["ca_bq"], p["ca_wk"], p["ca_bk"],
                      p["ca_wv"], p["ca_bv"], p["ca_wo"], p["ca_bo"],
                      src_mask, num_heads, DK)
        x = _ln_ref(x + ca, p["ln_g"][1], p["ln_b"][1])
        h1 = jnp.maximum(_bf16_dot(x, p["ff_w1"]) + p["ff_b1"], 0.0)
        ff = _bf16_dot(h1, p["ff_w2"]) + p["ff_b2"]
        x = _ln_ref(x + ff, p["ln_g"][2], p["ln_b"][2])
    return x


# ----------------------------------- main --------------------------------------

if __name__ == "__main__":
    B, S, S_ENC = 2, 8, 8
    VOCAB, D_MODEL, N_HEADS, N_LAYERS, D_FF, MAX_SEQ = 50, 32, 4, 2, 64, 16

    key = jax.random.PRNGKey(0)
    k_tok, k_enc, k_param = jax.random.split(key, 3)

    tokens = jax.random.randint(k_tok, (B, S), 0, VOCAB)
    enc_output = jax.random.normal(k_enc, (B, S_ENC, D_MODEL), jnp.float32)
    tgt_mask = jnp.tril(jnp.ones((S, S), jnp.float32))       # causal
    src_mask = jnp.ones((S, S_ENC), jnp.float32)             # all-visible

    emb, layers = init_params(k_param, VOCAB, D_MODEL, N_HEADS, N_LAYERS, D_FF)
    pe = positional_encoding_table(MAX_SEQ, D_MODEL)

    out = decoder_forward(tokens, enc_output, src_mask, tgt_mask,
                          emb, layers, pe, num_heads=N_HEADS)
    out = jax.block_until_ready(out)

    ref = decoder_forward_ref(tokens, enc_output, src_mask, tgt_mask,
                              emb, layers, pe, num_heads=N_HEADS)
    assert out.shape == (B, S, D_MODEL)
    np.testing.assert_allclose(np.asarray(out), np.asarray(ref),
                               rtol=1e-2, atol=1e-2)
    print("KERNEL_OK")
</pallas_src>

<mosaic_0001>
module attributes {stable_mosaic.version = 11 : i64} {
  func.func @_decoder_kernel(%arg0: i32, %arg1: i32, %arg2: memref<2x8x32xf32, #tpu.memory_space<vmem>>, %arg3: memref<2x8x32xbf16, #tpu.memory_space<vmem>>, %arg4: memref<8x8xf32, #tpu.memory_space<vmem>>, %arg5: memref<8x8xf32, #tpu.memory_space<vmem>>, %arg6: memref<1x32x96xbf16, #tpu.memory_space<vmem>>, %arg7: memref<1x1x96xf32, #tpu.memory_space<vmem>>, %arg8: memref<1x32x32xbf16, #tpu.memory_space<vmem>>, %arg9: memref<1x1x32xf32, #tpu.memory_space<vmem>>, %arg10: memref<1x32x32xbf16, #tpu.memory_space<vmem>>, %arg11: memref<1x1x32xf32, #tpu.memory_space<vmem>>, %arg12: memref<1x32x64xbf16, #tpu.memory_space<vmem>>, %arg13: memref<1x1x64xf32, #tpu.memory_space<vmem>>, %arg14: memref<1x32x32xbf16, #tpu.memory_space<vmem>>, %arg15: memref<1x1x32xf32, #tpu.memory_space<vmem>>, %arg16: memref<1x32x64xbf16, #tpu.memory_space<vmem>>, %arg17: memref<1x1x64xf32, #tpu.memory_space<vmem>>, %arg18: memref<1x64x32xbf16, #tpu.memory_space<vmem>>, %arg19: memref<1x1x32xf32, #tpu.memory_space<vmem>>, %arg20: memref<1x3x32xf32, #tpu.memory_space<vmem>>, %arg21: memref<1x3x32xf32, #tpu.memory_space<vmem>>, %arg22: memref<2x8x32xf32, #tpu.memory_space<vmem>>, %arg23: memref<16x96xbf16, #tpu.memory_space<vmem>>, %arg24: memref<16x64xbf16, #tpu.memory_space<vmem>>, %arg25: memref<16x32xbf16, #tpu.memory_space<vmem>>) attributes {dimension_semantics = [#tpu.dimension_semantics<parallel>, #tpu.dimension_semantics<arbitrary>], iteration_bounds = array<i64: 1, 2>, scalar_prefetch = 0 : i64, scratch_operands = 3 : i64, tpu.core_type = #tpu.core_type<tc>, window_params = [{transform_indices = @transform_0, window_bounds = array<i64: 2, 8, 32>}, {transform_indices = @transform_1, window_bounds = array<i64: 2, 8, 32>}, {pipeline_mode = #tpu.pipeline_mode<synchronous>, transform_indices = @transform_2, window_bounds = array<i64: 8, 8>}, {pipeline_mode = #tpu.pipeline_mode<synchronous>, transform_indices = @transform_3, window_bounds = array<i64: 8, 8>}, {transform_indices = @transform_4, window_bounds = array<i64: 1, 32, 96>}, {transform_indices = @transform_5, window_bounds = array<i64: 1, 1, 96>}, {transform_indices = @transform_6, window_bounds = array<i64: 1, 32, 32>}, {transform_indices = @transform_7, window_bounds = array<i64: 1, 1, 32>}, {transform_indices = @transform_8, window_bounds = array<i64: 1, 32, 32>}, {transform_indices = @transform_9, window_bounds = array<i64: 1, 1, 32>}, {transform_indices = @transform_10, window_bounds = array<i64: 1, 32, 64>}, {transform_indices = @transform_11, window_bounds = array<i64: 1, 1, 64>}, {transform_indices = @transform_12, window_bounds = array<i64: 1, 32, 32>}, {transform_indices = @transform_13, window_bounds = array<i64: 1, 1, 32>}, {transform_indices = @transform_14, window_bounds = array<i64: 1, 32, 64>}, {transform_indices = @transform_15, window_bounds = array<i64: 1, 1, 64>}, {transform_indices = @transform_16, window_bounds = array<i64: 1, 64, 32>}, {transform_indices = @transform_17, window_bounds = array<i64: 1, 1, 32>}, {transform_indices = @transform_18, window_bounds = array<i64: 1, 3, 32>}, {transform_indices = @transform_19, window_bounds = array<i64: 1, 3, 32>}, {transform_indices = @transform_20, window_bounds = array<i64: 2, 8, 32>}]} {
    %c0_i32 = arith.constant 0 : i32
    %0 = arith.cmpi eq, %arg1, %c0_i32 : i32
    %1 = arith.extui %0 : i1 to i32
    %c0_i32_0 = arith.constant 0 : i32
    %2 = arith.cmpi ne, %1, %c0_i32_0 : i32
    scf.if %2 {
      %c0_186 = arith.constant 0 : index
      %c0_187 = arith.constant 0 : index
      %c0_188 = arith.constant 0 : index
      %363 = vector.load %arg2[%c0_186, %c0_187, %c0_188] : memref<2x8x32xf32, #tpu.memory_space<vmem>>, vector<2x8x32xf32>
      %c0_189 = arith.constant 0 : index
      %c0_190 = arith.constant 0 : index
      %c0_191 = arith.constant 0 : index
      %364 = vector.load %arg22[%c0_189, %c0_190, %c0_191] : memref<2x8x32xf32, #tpu.memory_space<vmem>>, vector<2x8x32xf32>
      tpu.vector_store %arg22[%c0_189, %c0_190, %c0_191], %363 {strides = array<i32>} : memref<2x8x32xf32, #tpu.memory_space<vmem>>, vector<2x8x32xf32>,
    } else {
    }
    %c0 = arith.constant 0 : index
    %c0_1 = arith.constant 0 : index
    %c0_2 = arith.constant 0 : index
    %3 = vector.load %arg22[%c0, %c0_1, %c0_2] : memref<2x8x32xf32, #tpu.memory_space<vmem>>, vector<2x8x32xf32>
    %4 = vector.shape_cast %3 : vector<2x8x32xf32> to vector<16x32xf32>
    %c0_3 = arith.constant 0 : index
    %c0_4 = arith.constant 0 : index
    %c0_5 = arith.constant 0 : index
    %5 = vector.load %arg3[%c0_3, %c0_4, %c0_5] : memref<2x8x32xbf16, #tpu.memory_space<vmem>>, vector<2x8x32xbf16>
    %6 = vector.shape_cast %5 : vector<2x8x32xbf16> to vector<16x32xbf16>
    %c0_6 = arith.constant 0 : index
    %c0_7 = arith.constant 0 : index
    %7 = vector.load %arg4[%c0_6, %c0_7] : memref<8x8xf32, #tpu.memory_space<vmem>>, vector<8x8xf32>
    %8 = vector.shape_cast %7 : vector<8x8xf32> to vector<1x8x8xf32>
    %c0_8 = arith.constant 0 : index
    %c0_9 = arith.constant 0 : index
    %9 = vector.load %arg5[%c0_8, %c0_9] : memref<8x8xf32, #tpu.memory_space<vmem>>, vector<8x8xf32>
    %10 = vector.shape_cast %9 : vector<8x8xf32> to vector<1x8x8xf32>
    %c0_10 = arith.constant 0 : index
    %c0_11 = arith.constant 0 : index
    %c0_12 = arith.constant 0 : index
    %11 = vector.load %arg20[%c0_10, %c0_11, %c0_12] : memref<1x3x32xf32, #tpu.memory_space<vmem>>, vector<1x3x32xf32>
    %12 = vector.shape_cast %11 : vector<1x3x32xf32> to vector<3x32xf32>
    %c0_13 = arith.constant 0 : index
    %c0_14 = arith.constant 0 : index
    %c0_15 = arith.constant 0 : index
    %13 = vector.load %arg21[%c0_13, %c0_14, %c0_15] : memref<1x3x32xf32, #tpu.memory_space<vmem>>, vector<1x3x32xf32>
    %14 = vector.shape_cast %13 : vector<1x3x32xf32> to vector<3x32xf32>
    %15 = arith.truncf %4 : vector<16x32xf32> to vector<16x32xbf16>
    %c0_16 = arith.constant 0 : index
    %c0_17 = arith.constant 0 : index
    %c0_18 = arith.constant 0 : index
    %16 = vector.load %arg6[%c0_16, %c0_17, %c0_18] : memref<1x32x96xbf16, #tpu.memory_space<vmem>>, vector<1x32x96xbf16>
    %17 = vector.shape_cast %16 : vector<1x32x96xbf16> to vector<32x96xbf16>
    %cst = arith.constant dense<0.000000e+00> : vector<16x96xf32>
    %18 = tpu.matmul %15, %17, %cst {dimension_numbers = #tpu.dot_dimension_numbers<[1], [0], [0], [1], [0, 0, 1, 1], [], []>} : vector<16x32xbf16>, vector<32x96xbf16>, vector<16x96xf32> -> vector<16x96xf32>
    %c0_19 = arith.constant 0 : index
    %c0_20 = arith.constant 0 : index
    %c0_21 = arith.constant 0 : index
    %19 = vector.load %arg7[%c0_19, %c0_20, %c0_21] : memref<1x1x96xf32, #tpu.memory_space<vmem>>, vector<1x1x96xf32>
    %20 = vector.shape_cast %19 : vector<1x1x96xf32> to vector<1x96xf32>
    %21 = vector.broadcast %20 : vector<1x96xf32> to vector<16x96xf32>
    %22 = arith.addf %18, %21 : vector<16x96xf32>
    %23 = arith.truncf %22 : vector<16x96xf32> to vector<16x96xbf16>
    %c0_22 = arith.constant 0 : index
    %c0_23 = arith.constant 0 : index
    %24 = vector.load %arg23[%c0_22, %c0_23] : memref<16x96xbf16, #tpu.memory_space<vmem>>, vector<16x96xbf16>
    tpu.vector_store %arg23[%c0_22, %c0_23], %23 {strides = array<i32>} : memref<16x96xbf16, #tpu.memory_space<vmem>>, vector<16x96xbf16>,
    %c0_24 = arith.constant 0 : index
    %c0_25 = arith.constant 0 : index
    %25 = vector.load %arg23[%c0_24, %c0_25] : memref<16x96xbf16, #tpu.memory_space<vmem>>, vector<16x8xbf16>
    %26 = vector.shape_cast %25 : vector<16x8xbf16> to vector<2x8x8xbf16>
    %c0_26 = arith.constant 0 : index
    %c32 = arith.constant 32 : index
    %27 = vector.load %arg23[%c0_26, %c32] : memref<16x96xbf16, #tpu.memory_space<vmem>>, vector<16x8xbf16>
    %28 = vector.shape_cast %27 : vector<16x8xbf16> to vector<2x8x8xbf16>
    %c0_27 = arith.constant 0 : index
    %c64 = arith.constant 64 : index
    %29 = vector.load %arg23[%c0_27, %c64] : memref<16x96xbf16, #tpu.memory_space<vmem>>, vector<16x8xbf16>
    %30 = vector.shape_cast %29 : vector<16x8xbf16> to vector<2x8x8xbf16>
    "tpu.trace_start"() <{level = 10 : i32, message = "bqd,bkd->bqk"}> : () -> ()
    %cst_28 = arith.constant dense<0.000000e+00> : vector<2x8x8xf32>
    %31 = tpu.matmul %26, %28, %cst_28 {dimension_numbers = #tpu.dot_dimension_numbers<[2], [2], [1], [1], [0, 0, 0, 1, 1, 1], [0], [0]>} : vector<2x8x8xbf16>, vector<2x8x8xbf16>, vector<2x8x8xf32> -> vector<2x8x8xf32>
    "tpu.trace_stop"() : () -> ()
    %cst_29 = arith.constant 0.353553385 : f32
    %32 = vector.broadcast %cst_29 : f32 to vector<2x8x8xf32>
    %33 = arith.mulf %31, %32 : vector<2x8x8xf32>
    %34 = vector.broadcast %8 : vector<1x8x8xf32> to vector<2x8x8xf32>
    %35 = arith.addf %33, %34 : vector<2x8x8xf32>
    %cst_30 = arith.constant dense<0xFF800000> : vector<2x8xf32>
    %36 = vector.multi_reduction <maximumf>, %35, %cst_30 [2] : vector<2x8x8xf32> to vector<2x8xf32>
    %37 = vector.shape_cast %36 : vector<2x8xf32> to vector<2x8x1xf32>
    %38 = vector.broadcast %37 : vector<2x8x1xf32> to vector<2x8x8xf32>
    %39 = arith.subf %35, %38 : vector<2x8x8xf32>
    %40 = math.exp %39 : vector<2x8x8xf32>
    %cst_31 = arith.constant dense<0.000000e+00> : vector<2x8xf32>
    %41 = vector.multi_reduction <add>, %40, %cst_31 [2] : vector<2x8x8xf32> to vector<2x8xf32>
    %42 = vector.shape_cast %41 : vector<2x8xf32> to vector<2x8x1xf32>
    %43 = tpu.reciprocal %42 {approx = true} : vector<2x8x1xf32> -> vector<2x8x1xf32>
    %44 = vector.broadcast %43 : vector<2x8x1xf32> to vector<2x8x8xf32>
    %45 = arith.mulf %40, %44 : vector<2x8x8xf32>
    %46 = arith.truncf %45 : vector<2x8x8xf32> to vector<2x8x8xbf16>
    "tpu.trace_start"() <{level = 10 : i32, message = "bqk,bkd->bqd"}> : () -> ()
    %cst_32 = arith.constant dense<0.000000e+00> : vector<2x8x8xf32>
    %47 = tpu.matmul %46, %30, %cst_32 {dimension_numbers = #tpu.dot_dimension_numbers<[2], [1], [1], [2], [0, 0, 0, 1, 1, 2], [0], [0]>} : vector<2x8x8xbf16>, vector<2x8x8xbf16>, vector<2x8x8xf32> -> vector<2x8x8xf32>
    "tpu.trace_stop"() : () -> ()
    %48 = vector.shape_cast %47 : vector<2x8x8xf32> to vector<16x8xf32>
    %49 = arith.truncf %48 : vector<16x8xf32> to vector<16x8xbf16>
    %c0_33 = arith.constant 0 : index
    %c0_34 = arith.constant 0 : index
    %50 = vector.load %arg25[%c0_33, %c0_34] : memref<16x32xbf16, #tpu.memory_space<vmem>>, vector<16x8xbf16>
    tpu.vector_store %arg25[%c0_33, %c0_34], %49 {strides = array<i32>} : memref<16x32xbf16, #tpu.memory_space<vmem>>, vector<16x8xbf16>,
    %c0_35 = arith.constant 0 : index
    %c8 = arith.constant 8 : index
    %51 = vector.load %arg23[%c0_35, %c8] : memref<16x96xbf16, #tpu.memory_space<vmem>>, vector<16x8xbf16>
    %52 = vector.shape_cast %51 : vector<16x8xbf16> to vector<2x8x8xbf16>
    %c0_36 = arith.constant 0 : index
    %c40 = arith.constant 40 : index
    %53 = vector.load %arg23[%c0_36, %c40] : memref<16x96xbf16, #tpu.memory_space<vmem>>, vector<16x8xbf16>
    %54 = vector.shape_cast %53 : vector<16x8xbf16> to vector<2x8x8xbf16>
    %c0_37 = arith.constant 0 : index
    %c72 = arith.constant 72 : index
    %55 = vector.load %arg23[%c0_37, %c72] : memref<16x96xbf16, #tpu.memory_space<vmem>>, vector<16x8xbf16>
    %56 = vector.shape_cast %55 : vector<16x8xbf16> to vector<2x8x8xbf16>
    "tpu.trace_start"() <{level = 10 : i32, message = "bqd,bkd->bqk"}> : () -> ()
    %cst_38 = arith.constant dense<0.000000e+00> : vector<2x8x8xf32>
    %57 = tpu.matmul %52, %54, %cst_38 {dimension_numbers = #tpu.dot_dimension_numbers<[2], [2], [1], [1], [0, 0, 0, 1, 1, 1], [0], [0]>} : vector<2x8x8xbf16>, vector<2x8x8xbf16>, vector<2x8x8xf32> -> vector<2x8x8xf32>
    "tpu.trace_stop"() : () -> ()
    %cst_39 = arith.constant 0.353553385 : f32
    %58 = vector.broadcast %cst_39 : f32 to vector<2x8x8xf32>
    %59 = arith.mulf %57, %58 : vector<2x8x8xf32>
    %60 = vector.broadcast %8 : vector<1x8x8xf32> to vector<2x8x8xf32>
    %61 = arith.addf %59, %60 : vector<2x8x8xf32>
    %cst_40 = arith.constant dense<0xFF800000> : vector<2x8xf32>
    %62 = vector.multi_reduction <maximumf>, %61, %cst_40 [2] : vector<2x8x8xf32> to vector<2x8xf32>
    %63 = vector.shape_cast %62 : vector<2x8xf32> to vector<2x8x1xf32>
    %64 = vector.broadcast %63 : vector<2x8x1xf32> to vector<2x8x8xf32>
    %65 = arith.subf %61, %64 : vector<2x8x8xf32>
    %66 = math.exp %65 : vector<2x8x8xf32>
    %cst_41 = arith.constant dense<0.000000e+00> : vector<2x8xf32>
    %67 = vector.multi_reduction <add>, %66, %cst_41 [2] : vector<2x8x8xf32> to vector<2x8xf32>
    %68 = vector.shape_cast %67 : vector<2x8xf32> to vector<2x8x1xf32>
    %69 = tpu.reciprocal %68 {approx = true} : vector<2x8x1xf32> -> vector<2x8x1xf32>
    %70 = vector.broadcast %69 : vector<2x8x1xf32> to vector<2x8x8xf32>
    %71 = arith.mulf %66, %70 : vector<2x8x8xf32>
    %72 = arith.truncf %71 : vector<2x8x8xf32> to vector<2x8x8xbf16>
    "tpu.trace_start"() <{level = 10 : i32, message = "bqk,bkd->bqd"}> : () -> ()
    %cst_42 = arith.constant dense<0.000000e+00> : vector<2x8x8xf32>
    %73 = tpu.matmul %72, %56, %cst_42 {dimension_numbers = #tpu.dot_dimension_numbers<[2], [1], [1], [2], [0, 0, 0, 1, 1, 2], [0], [0]>} : vector<2x8x8xbf16>, vector<2x8x8xbf16>, vector<2x8x8xf32> -> vector<2x8x8xf32>
    "tpu.trace_stop"() : () -> ()
    %74 = vector.shape_cast %73 : vector<2x8x8xf32> to vector<16x8xf32>
    %75 = arith.truncf %74 : vector<16x8xf32> to vector<16x8xbf16>
    %c0_43 = arith.constant 0 : index
    %c8_44 = arith.constant 8 : index
    %76 = vector.load %arg25[%c0_43, %c8_44] : memref<16x32xbf16, #tpu.memory_space<vmem>>, vector<16x8xbf16>
    tpu.vector_store %arg25[%c0_43, %c8_44], %75 {strides = array<i32>} : memref<16x32xbf16, #tpu.memory_space<vmem>>, vector<16x8xbf16>,
    %c0_45 = arith.constant 0 : index
    %c16 = arith.constant 16 : index
    %77 = vector.load %arg23[%c0_45, %c16] : memref<16x96xbf16, #tpu.memory_space<vmem>>, vector<16x8xbf16>
    %78 = vector.shape_cast %77 : vector<16x8xbf16> to vector<2x8x8xbf16>
    %c0_46 = arith.constant 0 : index
    %c48 = arith.constant 48 : index
    %79 = vector.load %arg23[%c0_46, %c48] : memref<16x96xbf16, #tpu.memory_space<vmem>>, vector<16x8xbf16>
    %80 = vector.shape_cast %79 : vector<16x8xbf16> to vector<2x8x8xbf16>
    %c0_47 = arith.constant 0 : index
    %c80 = arith.constant 80 : index
    %81 = vector.load %arg23[%c0_47, %c80] : memref<16x96xbf16, #tpu.memory_space<vmem>>, vector<16x8xbf16>
    %82 = vector.shape_cast %81 : vector<16x8xbf16> to vector<2x8x8xbf16>
    "tpu.trace_start"() <{level = 10 : i32, message = "bqd,bkd->bqk"}> : () -> ()
    %cst_48 = arith.constant dense<0.000000e+00> : vector<2x8x8xf32>
    %83 = tpu.matmul %78, %80, %cst_48 {dimension_numbers = #tpu.dot_dimension_numbers<[2], [2], [1], [1], [0, 0, 0, 1, 1, 1], [0], [0]>} : vector<2x8x8xbf16>, vector<2x8x8xbf16>, vector<2x8x8xf32> -> vector<2x8x8xf32>
    "tpu.trace_stop"() : () -> ()
    %cst_49 = arith.constant 0.353553385 : f32
    %84 = vector.broadcast %cst_49 : f32 to vector<2x8x8xf32>
    %85 = arith.mulf %83, %84 : vector<2x8x8xf32>
    %86 = vector.broadcast %8 : vector<1x8x8xf32> to vector<2x8x8xf32>
    %87 = arith.addf %85, %86 : vector<2x8x8xf32>
    %cst_50 = arith.constant dense<0xFF800000> : vector<2x8xf32>
    %88 = vector.multi_reduction <maximumf>, %87, %cst_50 [2] : vector<2x8x8xf32> to vector<2x8xf32>
    %89 = vector.shape_cast %88 : vector<2x8xf32> to vector<2x8x1xf32>
    %90 = vector.broadcast %89 : vector<2x8x1xf32> to vector<2x8x8xf32>
    %91 = arith.subf %87, %90 : vector<2x8x8xf32>
    %92 = math.exp %91 : vector<2x8x8xf32>
    %cst_51 = arith.constant dense<0.000000e+00> : vector<2x8xf32>
    %93 = vector.multi_reduction <add>, %92, %cst_51 [2] : vector<2x8x8xf32> to vector<2x8xf32>
    %94 = vector.shape_cast %93 : vector<2x8xf32> to vector<2x8x1xf32>
    %95 = tpu.reciprocal %94 {approx = true} : vector<2x8x1xf32> -> vector<2x8x1xf32>
    %96 = vector.broadcast %95 : vector<2x8x1xf32> to vector<2x8x8xf32>
    %97 = arith.mulf %92, %96 : vector<2x8x8xf32>
    %98 = arith.truncf %97 : vector<2x8x8xf32> to vector<2x8x8xbf16>
    "tpu.trace_start"() <{level = 10 : i32, message = "bqk,bkd->bqd"}> : () -> ()
    %cst_52 = arith.constant dense<0.000000e+00> : vector<2x8x8xf32>
    %99 = tpu.matmul %98, %82, %cst_52 {dimension_numbers = #tpu.dot_dimension_numbers<[2], [1], [1], [2], [0, 0, 0, 1, 1, 2], [0], [0]>} : vector<2x8x8xbf16>, vector<2x8x8xbf16>, vector<2x8x8xf32> -> vector<2x8x8xf32>
    "tpu.trace_stop"() : () -> ()
    %100 = vector.shape_cast %99 : vector<2x8x8xf32> to vector<16x8xf32>
    %101 = arith.truncf %100 : vector<16x8xf32> to vector<16x8xbf16>
    %c0_53 = arith.constant 0 : index
    %c16_54 = arith.constant 16 : index
    %102 = vector.load %arg25[%c0_53, %c16_54] : memref<16x32xbf16, #tpu.memory_space<vmem>>, vector<16x8xbf16>
    tpu.vector_store %arg25[%c0_53, %c16_54], %101 {strides = array<i32>} : memref<16x32xbf16, #tpu.memory_space<vmem>>, vector<16x8xbf16>,
    %c0_55 = arith.constant 0 : index
    %c24 = arith.constant 24 : index
    %103 = vector.load %arg23[%c0_55, %c24] : memref<16x96xbf16, #tpu.memory_space<vmem>>, vector<16x8xbf16>
    %104 = vector.shape_cast %103 : vector<16x8xbf16> to vector<2x8x8xbf16>
    %c0_56 = arith.constant 0 : index
    %c56 = arith.constant 56 : index
    %105 = vector.load %arg23[%c0_56, %c56] : memref<16x96xbf16, #tpu.memory_space<vmem>>, vector<16x8xbf16>
    %106 = vector.shape_cast %105 : vector<16x8xbf16> to vector<2x8x8xbf16>
    %c0_57 = arith.constant 0 : index
    %c88 = arith.constant 88 : index
    %107 = vector.load %arg23[%c0_57, %c88] : memref<16x96xbf16, #tpu.memory_space<vmem>>, vector<16x8xbf16>
    %108 = vector.shape_cast %107 : vector<16x8xbf16> to vector<2x8x8xbf16>
    "tpu.trace_start"() <{level = 10 : i32, message = "bqd,bkd->bqk"}> : () -> ()
    %cst_58 = arith.constant dense<0.000000e+00> : vector<2x8x8xf32>
    %109 = tpu.matmul %104, %106, %cst_58 {dimension_numbers = #tpu.dot_dimension_numbers<[2], [2], [1], [1], [0, 0, 0, 1, 1, 1], [0], [0]>} : vector<2x8x8xbf16>, vector<2x8x8xbf16>, vector<2x8x8xf32> -> vector<2x8x8xf32>
    "tpu.trace_stop"() : () -> ()
    %cst_59 = arith.constant 0.353553385 : f32
    %110 = vector.broadcast %cst_59 : f32 to vector<2x8x8xf32>
    %111 = arith.mulf %109, %110 : vector<2x8x8xf32>
    %112 = vector.broadcast %8 : vector<1x8x8xf32> to vector<2x8x8xf32>
    %113 = arith.addf %111, %112 : vector<2x8x8xf32>
    %cst_60 = arith.constant dense<0xFF800000> : vector<2x8xf32>
    %114 = vector.multi_reduction <maximumf>, %113, %cst_60 [2] : vector<2x8x8xf32> to vector<2x8xf32>
    %115 = vector.shape_cast %114 : vector<2x8xf32> to vector<2x8x1xf32>
    %116 = vector.broadcast %115 : vector<2x8x1xf32> to vector<2x8x8xf32>
    %117 = arith.subf %113, %116 : vector<2x8x8xf32>
    %118 = math.exp %117 : vector<2x8x8xf32>
    %cst_61 = arith.constant dense<0.000000e+00> : vector<2x8xf32>
    %119 = vector.multi_reduction <add>, %118, %cst_61 [2] : vector<2x8x8xf32> to vector<2x8xf32>
    %120 = vector.shape_cast %119 : vector<2x8xf32> to vector<2x8x1xf32>
    %121 = tpu.reciprocal %120 {approx = true} : vector<2x8x1xf32> -> vector<2x8x1xf32>
    %122 = vector.broadcast %121 : vector<2x8x1xf32> to vector<2x8x8xf32>
    %123 = arith.mulf %118, %122 : vector<2x8x8xf32>
    %124 = arith.truncf %123 : vector<2x8x8xf32> to vector<2x8x8xbf16>
    "tpu.trace_start"() <{level = 10 : i32, message = "bqk,bkd->bqd"}> : () -> ()
    %cst_62 = arith.constant dense<0.000000e+00> : vector<2x8x8xf32>
    %125 = tpu.matmul %124, %108, %cst_62 {dimension_numbers = #tpu.dot_dimension_numbers<[2], [1], [1], [2], [0, 0, 0, 1, 1, 2], [0], [0]>} : vector<2x8x8xbf16>, vector<2x8x8xbf16>, vector<2x8x8xf32> -> vector<2x8x8xf32>
    "tpu.trace_stop"() : () -> ()
    %126 = vector.shape_cast %125 : vector<2x8x8xf32> to vector<16x8xf32>
    %127 = arith.truncf %126 : vector<16x8xf32> to vector<16x8xbf16>
    %c0_63 = arith.constant 0 : index
    %c24_64 = arith.constant 24 : index
    %128 = vector.load %arg25[%c0_63, %c24_64] : memref<16x32xbf16, #tpu.memory_space<vmem>>, vector<16x8xbf16>
    tpu.vector_store %arg25[%c0_63, %c24_64], %127 {strides = array<i32>} : memref<16x32xbf16, #tpu.memory_space<vmem>>, vector<16x8xbf16>,
    %c0_65 = arith.constant 0 : index
    %c0_66 = arith.constant 0 : index
    %129 = vector.load %arg25[%c0_65, %c0_66] : memref<16x32xbf16, #tpu.memory_space<vmem>>, vector<16x32xbf16>
    %c0_67 = arith.constant 0 : index
    %c0_68 = arith.constant 0 : index
    %c0_69 = arith.constant 0 : index
    %130 = vector.load %arg8[%c0_67, %c0_68, %c0_69] : memref<1x32x32xbf16, #tpu.memory_space<vmem>>, vector<1x32x32xbf16>
    %131 = vector.shape_cast %130 : vector<1x32x32xbf16> to vector<32x32xbf16>
    %cst_70 = arith.constant dense<0.000000e+00> : vector<16x32xf32>
    %132 = tpu.matmul %129, %131, %cst_70 {dimension_numbers = #tpu.dot_dimension_numbers<[1], [0], [0], [1], [0, 0, 1, 1], [], []>} : vector<16x32xbf16>, vector<32x32xbf16>, vector<16x32xf32> -> vector<16x32xf32>
    %c0_71 = arith.constant 0 : index
    %c0_72 = arith.constant 0 : index
    %c0_73 = arith.constant 0 : index
    %133 = vector.load %arg9[%c0_71, %c0_72, %c0_73] : memref<1x1x32xf32, #tpu.memory_space<vmem>>, vector<1x1x32xf32>
    %134 = vector.shape_cast %133 : vector<1x1x32xf32> to vector<1x32xf32>
    %135 = vector.broadcast %134 : vector<1x32xf32> to vector<16x32xf32>
    %136 = arith.addf %132, %135 : vector<16x32xf32>
    %137 = arith.addf %4, %136 : vector<16x32xf32>
    %cst_74 = arith.constant dense<0.000000e+00> : vector<16xf32>
    %138 = vector.multi_reduction <add>, %137, %cst_74 [1] : vector<16x32xf32> to vector<16xf32>
    %139 = vector.shape_cast %138 : vector<16xf32> to vector<16x1xf32>
    %cst_75 = arith.constant 3.200000e+01 : f32
    %140 = vector.broadcast %cst_75 : f32 to vector<16x1xf32>
    %141 = arith.divf %139, %140 : vector<16x1xf32>
    %142 = vector.broadcast %141 : vector<16x1xf32> to vector<16x32xf32>
    %143 = arith.subf %137, %142 : vector<16x32xf32>
    %144 = arith.mulf %143, %143 : vector<16x32xf32>
    %cst_76 = arith.constant dense<0.000000e+00> : vector<16xf32>
    %145 = vector.multi_reduction <add>, %144, %cst_76 [1] : vector<16x32xf32> to vector<16xf32>
    %146 = vector.shape_cast %145 : vector<16xf32> to vector<16x1xf32>
    %cst_77 = arith.constant 3.200000e+01 : f32
    %147 = vector.broadcast %cst_77 : f32 to vector<16x1xf32>
    %148 = arith.divf %146, %147 : vector<16x1xf32>
    %149 = vector.broadcast %141 : vector<16x1xf32> to vector<16x32xf32>
    %150 = arith.subf %137, %149 : vector<16x32xf32>
    %cst_78 = arith.constant 9.99999974E-6 : f32
    %151 = vector.broadcast %cst_78 : f32 to vector<16x1xf32>
    %152 = arith.addf %148, %151 : vector<16x1xf32>
    %153 = math.rsqrt %152 : vector<16x1xf32>
    %154 = vector.broadcast %153 : vector<16x1xf32> to vector<16x32xf32>
    %155 = arith.mulf %150, %154 : vector<16x32xf32>
    %156 = vector.extract_strided_slice %12 {offsets = [0, 0], sizes = [1, 32], strides = [1, 1]} : vector<3x32xf32> to vector<1x32xf32>
    %157 = vector.broadcast %156 : vector<1x32xf32> to vector<16x32xf32>
    %158 = arith.mulf %155, %157 : vector<16x32xf32>
    %159 = vector.extract_strided_slice %14 {offsets = [0, 0], sizes = [1, 32], strides = [1, 1]} : vector<3x32xf32> to vector<1x32xf32>
    %160 = vector.broadcast %159 : vector<1x32xf32> to vector<16x32xf32>
    %161 = arith.addf %158, %160 : vector<16x32xf32>
    %162 = arith.truncf %161 : vector<16x32xf32> to vector<16x32xbf16>
    %c0_79 = arith.constant 0 : index
    %c0_80 = arith.constant 0 : index
    %c0_81 = arith.constant 0 : index
    %163 = vector.load %arg10[%c0_79, %c0_80, %c0_81] : memref<1x32x32xbf16, #tpu.memory_space<vmem>>, vector<1x32x32xbf16>
    %164 = vector.shape_cast %163 : vector<1x32x32xbf16> to vector<32x32xbf16>
    %cst_82 = arith.constant dense<0.000000e+00> : vector<16x32xf32>
    %165 = tpu.matmul %162, %164, %cst_82 {dimension_numbers = #tpu.dot_dimension_numbers<[1], [0], [0], [1], [0, 0, 1, 1], [], []>} : vector<16x32xbf16>, vector<32x32xbf16>, vector<16x32xf32> -> vector<16x32xf32>
    %c0_83 = arith.constant 0 : index
    %c0_84 = arith.constant 0 : index
    %c0_85 = arith.constant 0 : index
    %166 = vector.load %arg11[%c0_83, %c0_84, %c0_85] : memref<1x1x32xf32, #tpu.memory_space<vmem>>, vector<1x1x32xf32>
    %167 = vector.shape_cast %166 : vector<1x1x32xf32> to vector<1x32xf32>
    %168 = vector.broadcast %167 : vector<1x32xf32> to vector<16x32xf32>
    %169 = arith.addf %165, %168 : vector<16x32xf32>
    %170 = arith.truncf %169 : vector<16x32xf32> to vector<16x32xbf16>
    %c0_86 = arith.constant 0 : index
    %c0_87 = arith.constant 0 : index
    %171 = vector.load %arg23[%c0_86, %c0_87] : memref<16x96xbf16, #tpu.memory_space<vmem>>, vector<16x32xbf16>
    tpu.vector_store %arg23[%c0_86, %c0_87], %170 {strides = array<i32>} : memref<16x96xbf16, #tpu.memory_space<vmem>>, vector<16x32xbf16>,
    %c0_88 = arith.constant 0 : index
    %c0_89 = arith.constant 0 : index
    %c0_90 = arith.constant 0 : index
    %172 = vector.load %arg12[%c0_88, %c0_89, %c0_90] : memref<1x32x64xbf16, #tpu.memory_space<vmem>>, vector<1x32x64xbf16>
    %173 = vector.shape_cast %172 : vector<1x32x64xbf16> to vector<32x64xbf16>
    %cst_91 = arith.constant dense<0.000000e+00> : vector<16x64xf32>
    %174 = tpu.matmul %6, %173, %cst_91 {dimension_numbers = #tpu.dot_dimension_numbers<[1], [0], [0], [1], [0, 0, 1, 1], [], []>} : vector<16x32xbf16>, vector<32x64xbf16>, vector<16x64xf32> -> vector<16x64xf32>
    %c0_92 = arith.constant 0 : index
    %c0_93 = arith.constant 0 : index
    %c0_94 = arith.constant 0 : index
    %175 = vector.load %arg13[%c0_92, %c0_93, %c0_94] : memref<1x1x64xf32, #tpu.memory_space<vmem>>, vector<1x1x64xf32>
    %176 = vector.shape_cast %175 : vector<1x1x64xf32> to vector<1x64xf32>
    %177 = vector.broadcast %176 : vector<1x64xf32> to vector<16x64xf32>
    %178 = arith.addf %174, %177 : vector<16x64xf32>
    %179 = arith.truncf %178 : vector<16x64xf32> to vector<16x64xbf16>
    %c0_95 = arith.constant 0 : index
    %c0_96 = arith.constant 0 : index
    %180 = vector.load %arg24[%c0_95, %c0_96] : memref<16x64xbf16, #tpu.memory_space<vmem>>, vector<16x64xbf16>
    tpu.vector_store %arg24[%c0_95, %c0_96], %179 {strides = array<i32>} : memref<16x64xbf16, #tpu.memory_space<vmem>>, vector<16x64xbf16>,
    %c0_97 = arith.constant 0 : index
    %c0_98 = arith.constant 0 : index
    %181 = vector.load %arg23[%c0_97, %c0_98] : memref<16x96xbf16, #tpu.memory_space<vmem>>, vector<16x8xbf16>
    %182 = vector.shape_cast %181 : vector<16x8xbf16> to vector<2x8x8xbf16>
    %c0_99 = arith.constant 0 : index
    %c0_100 = arith.constant 0 : index
    %183 = vector.load %arg24[%c0_99, %c0_100] : memref<16x64xbf16, #tpu.memory_space<vmem>>, vector<16x8xbf16>
    %184 = vector.shape_cast %183 : vector<16x8xbf16> to vector<2x8x8xbf16>
    %c0_101 = arith.constant 0 : index
    %c32_102 = arith.constant 32 : index
    %185 = vector.load %arg24[%c0_101, %c32_102] : memref<16x64xbf16, #tpu.memory_space<vmem>>, vector<16x8xbf16>
    %186 = vector.shape_cast %185 : vector<16x8xbf16> to vector<2x8x8xbf16>
    "tpu.trace_start"() <{level = 10 : i32, message = "bqd,bkd->bqk"}> : () -> ()
    %cst_103 = arith.constant dense<0.000000e+00> : vector<2x8x8xf32>
    %187 = tpu.matmul %182, %184, %cst_103 {dimension_numbers = #tpu.dot_dimension_numbers<[2], [2], [1], [1], [0, 0, 0, 1, 1, 1], [0], [0]>} : vector<2x8x8xbf16>, vector<2x8x8xbf16>, vector<2x8x8xf32> -> vector<2x8x8xf32>
    "tpu.trace_stop"() : () -> ()
    %cst_104 = arith.constant 0.353553385 : f32
    %188 = vector.broadcast %cst_104 : f32 to vector<2x8x8xf32>
    %189 = arith.mulf %187, %188 : vector<2x8x8xf32>
    %190 = vector.broadcast %10 : vector<1x8x8xf32> to vector<2x8x8xf32>
    %191 = arith.addf %189, %190 : vector<2x8x8xf32>
    %cst_105 = arith.constant dense<0xFF800000> : vector<2x8xf32>
    %192 = vector.multi_reduction <maximumf>, %191, %cst_105 [2] : vector<2x8x8xf32> to vector<2x8xf32>
    %193 = vector.shape_cast %192 : vector<2x8xf32> to vector<2x8x1xf32>
    %194 = vector.broadcast %193 : vector<2x8x1xf32> to vector<2x8x8xf32>
    %195 = arith.subf %191, %194 : vector<2x8x8xf32>
    %196 = math.exp %195 : vector<2x8x8xf32>
    %cst_106 = arith.constant dense<0.000000e+00> : vector<2x8xf32>
    %197 = vector.multi_reduction <add>, %196, %cst_106 [2] : vector<2x8x8xf32> to vector<2x8xf32>
    %198 = vector.shape_cast %197 : vector<2x8xf32> to vector<2x8x1xf32>
    %199 = tpu.reciprocal %198 {approx = true} : vector<2x8x1xf32> -> vector<2x8x1xf32>
    %200 = vector.broadcast %199 : vector<2x8x1xf32> to vector<2x8x8xf32>
    %201 = arith.mulf %196, %200 : vector<2x8x8xf32>
    %202 = arith.truncf %201 : vector<2x8x8xf32> to vector<2x8x8xbf16>
    "tpu.trace_start"() <{level = 10 : i32, message = "bqk,bkd->bqd"}> : () -> ()
    %cst_107 = arith.constant dense<0.000000e+00> : vector<2x8x8xf32>
    %203 = tpu.matmul %202, %186, %cst_107 {dimension_numbers = #tpu.dot_dimension_numbers<[2], [1], [1], [2], [0, 0, 0, 1, 1, 2], [0], [0]>} : vector<2x8x8xbf16>, vector<2x8x8xbf16>, vector<2x8x8xf32> -> vector<2x8x8xf32>
    "tpu.trace_stop"() : () -> ()
    %204 = vector.shape_cast %203 : vector<2x8x8xf32> to vector<16x8xf32>
    %205 = arith.truncf %204 : vector<16x8xf32> to vector<16x8xbf16>
    %c0_108 = arith.constant 0 : index
    %c0_109 = arith.constant 0 : index
    %206 = vector.load %arg25[%c0_108, %c0_109] : memref<16x32xbf16, #tpu.memory_space<vmem>>, vector<16x8xbf16>
    tpu.vector_store %arg25[%c0_108, %c0_109], %205 {strides = array<i32>} : memref<16x32xbf16, #tpu.memory_space<vmem>>, vector<16x8xbf16>,
    %c0_110 = arith.constant 0 : index
    %c8_111 = arith.constant 8 : index
    %207 = vector.load %arg23[%c0_110, %c8_111] : memref<16x96xbf16, #tpu.memory_space<vmem>>, vector<16x8xbf16>
    %208 = vector.shape_cast %207 : vector<16x8xbf16> to vector<2x8x8xbf16>
    %c0_112 = arith.constant 0 : index
    %c8_113 = arith.constant 8 : index
    %209 = vector.load %arg24[%c0_112, %c8_113] : memref<16x64xbf16, #tpu.memory_space<vmem>>, vector<16x8xbf16>
    %210 = vector.shape_cast %209 : vector<16x8xbf16> to vector<2x8x8xbf16>
    %c0_114 = arith.constant 0 : index
    %c40_115 = arith.constant 40 : index
    %211 = vector.load %arg24[%c0_114, %c40_115] : memref<16x64xbf16, #tpu.memory_space<vmem>>, vector<16x8xbf16>
    %212 = vector.shape_cast %211 : vector<16x8xbf16> to vector<2x8x8xbf16>
    "tpu.trace_start"() <{level = 10 : i32, message = "bqd,bkd->bqk"}> : () -> ()
    %cst_116 = arith.constant dense<0.000000e+00> : vector<2x8x8xf32>
    %213 = tpu.matmul %208, %210, %cst_116 {dimension_numbers = #tpu.dot_dimension_numbers<[2], [2], [1], [1], [0, 0, 0, 1, 1, 1], [0], [0]>} : vector<2x8x8xbf16>, vector<2x8x8xbf16>, vector<2x8x8xf32> -> vector<2x8x8xf32>
    "tpu.trace_stop"() : () -> ()
    %cst_117 = arith.constant 0.353553385 : f32
    %214 = vector.broadcast %cst_117 : f32 to vector<2x8x8xf32>
    %215 = arith.mulf %213, %214 : vector<2x8x8xf32>
    %216 = vector.broadcast %10 : vector<1x8x8xf32> to vector<2x8x8xf32>
    %217 = arith.addf %215, %216 : vector<2x8x8xf32>
    %cst_118 = arith.constant dense<0xFF800000> : vector<2x8xf32>
    %218 = vector.multi_reduction <maximumf>, %217, %cst_118 [2] : vector<2x8x8xf32> to vector<2x8xf32>
    %219 = vector.shape_cast %218 : vector<2x8xf32> to vector<2x8x1xf32>
    %220 = vector.broadcast %219 : vector<2x8x1xf32> to vector<2x8x8xf32>
    %221 = arith.subf %217, %220 : vector<2x8x8xf32>
    %222 = math.exp %221 : vector<2x8x8xf32>
    %cst_119 = arith.constant dense<0.000000e+00> : vector<2x8xf32>
    %223 = vector.multi_reduction <add>, %222, %cst_119 [2] : vector<2x8x8xf32> to vector<2x8xf32>
    %224 = vector.shape_cast %223 : vector<2x8xf32> to vector<2x8x1xf32>
    %225 = tpu.reciprocal %224 {approx = true} : vector<2x8x1xf32> -> vector<2x8x1xf32>
    %226 = vector.broadcast %225 : vector<2x8x1xf32> to vector<2x8x8xf32>
    %227 = arith.mulf %222, %226 : vector<2x8x8xf32>
    %228 = arith.truncf %227 : vector<2x8x8xf32> to vector<2x8x8xbf16>
    "tpu.trace_start"() <{level = 10 : i32, message = "bqk,bkd->bqd"}> : () -> ()
    %cst_120 = arith.constant dense<0.000000e+00> : vector<2x8x8xf32>
    %229 = tpu.matmul %228, %212, %cst_120 {dimension_numbers = #tpu.dot_dimension_numbers<[2], [1], [1], [2], [0, 0, 0, 1, 1, 2], [0], [0]>} : vector<2x8x8xbf16>, vector<2x8x8xbf16>, vector<2x8x8xf32> -> vector<2x8x8xf32>
    "tpu.trace_stop"() : () -> ()
    %230 = vector.shape_cast %229 : vector<2x8x8xf32> to vector<16x8xf32>
    %231 = arith.truncf %230 : vector<16x8xf32> to vector<16x8xbf16>
    %c0_121 = arith.constant 0 : index
    %c8_122 = arith.constant 8 : index
    %232 = vector.load %arg25[%c0_121, %c8_122] : memref<16x32xbf16, #tpu.memory_space<vmem>>, vector<16x8xbf16>
    tpu.vector_store %arg25[%c0_121, %c8_122], %231 {strides = array<i32>} : memref<16x32xbf16, #tpu.memory_space<vmem>>, vector<16x8xbf16>,
    %c0_123 = arith.constant 0 : index
    %c16_124 = arith.constant 16 : index
    %233 = vector.load %arg23[%c0_123, %c16_124] : memref<16x96xbf16, #tpu.memory_space<vmem>>, vector<16x8xbf16>
    %234 = vector.shape_cast %233 : vector<16x8xbf16> to vector<2x8x8xbf16>
    %c0_125 = arith.constant 0 : index
    %c16_126 = arith.constant 16 : index
    %235 = vector.load %arg24[%c0_125, %c16_126] : memref<16x64xbf16, #tpu.memory_space<vmem>>, vector<16x8xbf16>
    %236 = vector.shape_cast %235 : vector<16x8xbf16> to vector<2x8x8xbf16>
    %c0_127 = arith.constant 0 : index
    %c48_128 = arith.constant 48 : index
    %237 = vector.load %arg24[%c0_127, %c48_128] : memref<16x64xbf16, #tpu.memory_space<vmem>>, vector<16x8xbf16>
    %238 = vector.shape_cast %237 : vector<16x8xbf16> to vector<2x8x8xbf16>
    "tpu.trace_start"() <{level = 10 : i32, message = "bqd,bkd->bqk"}> : () -> ()
    %cst_129 = arith.constant dense<0.000000e+00> : vector<2x8x8xf32>
    %239 = tpu.matmul %234, %236, %cst_129 {dimension_numbers = #tpu.dot_dimension_numbers<[2], [2], [1], [1], [0, 0, 0, 1, 1, 1], [0], [0]>} : vector<2x8x8xbf16>, vector<2x8x8xbf16>, vector<2x8x8xf32> -> vector<2x8x8xf32>
    "tpu.trace_stop"() : () -> ()
    %cst_130 = arith.constant 0.353553385 : f32
    %240 = vector.broadcast %cst_130 : f32 to vector<2x8x8xf32>
    %241 = arith.mulf %239, %240 : vector<2x8x8xf32>
    %242 = vector.broadcast %10 : vector<1x8x8xf32> to vector<2x8x8xf32>
    %243 = arith.addf %241, %242 : vector<2x8x8xf32>
    %cst_131 = arith.constant dense<0xFF800000> : vector<2x8xf32>
    %244 = vector.multi_reduction <maximumf>, %243, %cst_131 [2] : vector<2x8x8xf32> to vector<2x8xf32>
    %245 = vector.shape_cast %244 : vector<2x8xf32> to vector<2x8x1xf32>
    %246 = vector.broadcast %245 : vector<2x8x1xf32> to vector<2x8x8xf32>
    %247 = arith.subf %243, %246 : vector<2x8x8xf32>
    %248 = math.exp %247 : vector<2x8x8xf32>
    %cst_132 = arith.constant dense<0.000000e+00> : vector<2x8xf32>
    %249 = vector.multi_reduction <add>, %248, %cst_132 [2] : vector<2x8x8xf32> to vector<2x8xf32>
    %250 = vector.shape_cast %249 : vector<2x8xf32> to vector<2x8x1xf32>
    %251 = tpu.reciprocal %250 {approx = true} : vector<2x8x1xf32> -> vector<2x8x1xf32>
    %252 = vector.broadcast %251 : vector<2x8x1xf32> to vector<2x8x8xf32>
    %253 = arith.mulf %248, %252 : vector<2x8x8xf32>
    %254 = arith.truncf %253 : vector<2x8x8xf32> to vector<2x8x8xbf16>
    "tpu.trace_start"() <{level = 10 : i32, message = "bqk,bkd->bqd"}> : () -> ()
    %cst_133 = arith.constant dense<0.000000e+00> : vector<2x8x8xf32>
    %255 = tpu.matmul %254, %238, %cst_133 {dimension_numbers = #tpu.dot_dimension_numbers<[2], [1], [1], [2], [0, 0, 0, 1, 1, 2], [0], [0]>} : vector<2x8x8xbf16>, vector<2x8x8xbf16>, vector<2x8x8xf32> -> vector<2x8x8xf32>
    "tpu.trace_stop"() : () -> ()
    %256 = vector.shape_cast %255 : vector<2x8x8xf32> to vector<16x8xf32>
    %257 = arith.truncf %256 : vector<16x8xf32> to vector<16x8xbf16>
    %c0_134 = arith.constant 0 : index
    %c16_135 = arith.constant 16 : index
    %258 = vector.load %arg25[%c0_134, %c16_135] : memref<16x32xbf16, #tpu.memory_space<vmem>>, vector<16x8xbf16>
    tpu.vector_store %arg25[%c0_134, %c16_135], %257 {strides = array<i32>} : memref<16x32xbf16, #tpu.memory_space<vmem>>, vector<16x8xbf16>,
    %c0_136 = arith.constant 0 : index
    %c24_137 = arith.constant 24 : index
    %259 = vector.load %arg23[%c0_136, %c24_137] : memref<16x96xbf16, #tpu.memory_space<vmem>>, vector<16x8xbf16>
    %260 = vector.shape_cast %259 : vector<16x8xbf16> to vector<2x8x8xbf16>
    %c0_138 = arith.constant 0 : index
    %c24_139 = arith.constant 24 : index
    %261 = vector.load %arg24[%c0_138, %c24_139] : memref<16x64xbf16, #tpu.memory_space<vmem>>, vector<16x8xbf16>
    %262 = vector.shape_cast %261 : vector<16x8xbf16> to vector<2x8x8xbf16>
    %c0_140 = arith.constant 0 : index
    %c56_141 = arith.constant 56 : index
    %263 = vector.load %arg24[%c0_140, %c56_141] : memref<16x64xbf16, #tpu.memory_space<vmem>>, vector<16x8xbf16>
    %264 = vector.shape_cast %263 : vector<16x8xbf16> to vector<2x8x8xbf16>
    "tpu.trace_start"() <{level = 10 : i32, message = "bqd,bkd->bqk"}> : () -> ()
    %cst_142 = arith.constant dense<0.000000e+00> : vector<2x8x8xf32>
    %265 = tpu.matmul %260, %262, %cst_142 {dimension_numbers = #tpu.dot_dimension_numbers<[2], [2], [1], [1], [0, 0, 0, 1, 1, 1], [0], [0]>} : vector<2x8x8xbf16>, vector<2x8x8xbf16>, vector<2x8x8xf32> -> vector<2x8x8xf32>
    "tpu.trace_stop"() : () -> ()
    %cst_143 = arith.constant 0.353553385 : f32
    %266 = vector.broadcast %cst_143 : f32 to vector<2x8x8xf32>
    %267 = arith.mulf %265, %266 : vector<2x8x8xf32>
    %268 = vector.broadcast %10 : vector<1x8x8xf32> to vector<2x8x8xf32>
    %269 = arith.addf %267, %268 : vector<2x8x8xf32>
    %cst_144 = arith.constant dense<0xFF800000> : vector<2x8xf32>
    %270 = vector.multi_reduction <maximumf>, %269, %cst_144 [2] : vector<2x8x8xf32> to vector<2x8xf32>
    %271 = vector.shape_cast %270 : vector<2x8xf32> to vector<2x8x1xf32>
    %272 = vector.broadcast %271 : vector<2x8x1xf32> to vector<2x8x8xf32>
    %273 = arith.subf %269, %272 : vector<2x8x8xf32>
    %274 = math.exp %273 : vector<2x8x8xf32>
    %cst_145 = arith.constant dense<0.000000e+00> : vector<2x8xf32>
    %275 = vector.multi_reduction <add>, %274, %cst_145 [2] : vector<2x8x8xf32> to vector<2x8xf32>
    %276 = vector.shape_cast %275 : vector<2x8xf32> to vector<2x8x1xf32>
    %277 = tpu.reciprocal %276 {approx = true} : vector<2x8x1xf32> -> vector<2x8x1xf32>
    %278 = vector.broadcast %277 : vector<2x8x1xf32> to vector<2x8x8xf32>
    %279 = arith.mulf %274, %278 : vector<2x8x8xf32>
    %280 = arith.truncf %279 : vector<2x8x8xf32> to vector<2x8x8xbf16>
    "tpu.trace_start"() <{level = 10 : i32, message = "bqk,bkd->bqd"}> : () -> ()
    %cst_146 = arith.constant dense<0.000000e+00> : vector<2x8x8xf32>
    %281 = tpu.matmul %280, %264, %cst_146 {dimension_numbers = #tpu.dot_dimension_numbers<[2], [1], [1], [2], [0, 0, 0, 1, 1, 2], [0], [0]>} : vector<2x8x8xbf16>, vector<2x8x8xbf16>, vector<2x8x8xf32> -> vector<2x8x8xf32>
    "tpu.trace_stop"() : () -> ()
    %282 = vector.shape_cast %281 : vector<2x8x8xf32> to vector<16x8xf32>
    %283 = arith.truncf %282 : vector<16x8xf32> to vector<16x8xbf16>
    %c0_147 = arith.constant 0 : index
    %c24_148 = arith.constant 24 : index
    %284 = vector.load %arg25[%c0_147, %c24_148] : memref<16x32xbf16, #tpu.memory_space<vmem>>, vector<16x8xbf16>
    tpu.vector_store %arg25[%c0_147, %c24_148], %283 {strides = array<i32>} : memref<16x32xbf16, #tpu.memory_space<vmem>>, vector<16x8xbf16>,
    %c0_149 = arith.constant 0 : index
    %c0_150 = arith.constant 0 : index
    %285 = vector.load %arg25[%c0_149, %c0_150] : memref<16x32xbf16, #tpu.memory_space<vmem>>, vector<16x32xbf16>
    %c0_151 = arith.constant 0 : index
    %c0_152 = arith.constant 0 : index
    %c0_153 = arith.constant 0 : index
    %286 = vector.load %arg14[%c0_151, %c0_152, %c0_153] : memref<1x32x32xbf16, #tpu.memory_space<vmem>>, vector<1x32x32xbf16>
    %287 = vector.shape_cast %286 : vector<1x32x32xbf16> to vector<32x32xbf16>
    %cst_154 = arith.constant dense<0.000000e+00> : vector<16x32xf32>
    %288 = tpu.matmul %285, %287, %cst_154 {dimension_numbers = #tpu.dot_dimension_numbers<[1], [0], [0], [1], [0, 0, 1, 1], [], []>} : vector<16x32xbf16>, vector<32x32xbf16>, vector<16x32xf32> -> vector<16x32xf32>
    %c0_155 = arith.constant 0 : index
    %c0_156 = arith.constant 0 : index
    %c0_157 = arith.constant 0 : index
    %289 = vector.load %arg15[%c0_155, %c0_156, %c0_157] : memref<1x1x32xf32, #tpu.memory_space<vmem>>, vector<1x1x32xf32>
    %290 = vector.shape_cast %289 : vector<1x1x32xf32> to vector<1x32xf32>
    %291 = vector.broadcast %290 : vector<1x32xf32> to vector<16x32xf32>
    %292 = arith.addf %288, %291 : vector<16x32xf32>
    %293 = arith.addf %161, %292 : vector<16x32xf32>
    %cst_158 = arith.constant dense<0.000000e+00> : vector<16xf32>
    %294 = vector.multi_reduction <add>, %293, %cst_158 [1] : vector<16x32xf32> to vector<16xf32>
    %295 = vector.shape_cast %294 : vector<16xf32> to vector<16x1xf32>
    %cst_159 = arith.constant 3.200000e+01 : f32
    %296 = vector.broadcast %cst_159 : f32 to vector<16x1xf32>
    %297 = arith.divf %295, %296 : vector<16x1xf32>
    %298 = vector.broadcast %297 : vector<16x1xf32> to vector<16x32xf32>
    %299 = arith.subf %293, %298 : vector<16x32xf32>
    %300 = arith.mulf %299, %299 : vector<16x32xf32>
    %cst_160 = arith.constant dense<0.000000e+00> : vector<16xf32>
    %301 = vector.multi_reduction <add>, %300, %cst_160 [1] : vector<16x32xf32> to vector<16xf32>
    %302 = vector.shape_cast %301 : vector<16xf32> to vector<16x1xf32>
    %cst_161 = arith.constant 3.200000e+01 : f32
    %303 = vector.broadcast %cst_161 : f32 to vector<16x1xf32>
    %304 = arith.divf %302, %303 : vector<16x1xf32>
    %305 = vector.broadcast %297 : vector<16x1xf32> to vector<16x32xf32>
    %306 = arith.subf %293, %305 : vector<16x32xf32>
    %cst_162 = arith.constant 9.99999974E-6 : f32
    %307 = vector.broadcast %cst_162 : f32 to vector<16x1xf32>
    %308 = arith.addf %304, %307 : vector<16x1xf32>
    %309 = math.rsqrt %308 : vector<16x1xf32>
    %310 = vector.broadcast %309 : vector<16x1xf32> to vector<16x32xf32>
    %311 = arith.mulf %306, %310 : vector<16x32xf32>
    %312 = vector.extract_strided_slice %12 {offsets = [1, 0], sizes = [1, 32], strides = [1, 1]} : vector<3x32xf32> to vector<1x32xf32>
    %313 = vector.broadcast %312 : vector<1x32xf32> to vector<16x32xf32>
    %314 = arith.mulf %311, %313 : vector<16x32xf32>
    %315 = vector.extract_strided_slice %14 {offsets = [1, 0], sizes = [1, 32], strides = [1, 1]} : vector<3x32xf32> to vector<1x32xf32>
    %316 = vector.broadcast %315 : vector<1x32xf32> to vector<16x32xf32>
    %317 = arith.addf %314, %316 : vector<16x32xf32>
    %318 = arith.truncf %317 : vector<16x32xf32> to vector<16x32xbf16>
    %c0_163 = arith.constant 0 : index
    %c0_164 = arith.constant 0 : index
    %c0_165 = arith.constant 0 : index
    %319 = vector.load %arg19[%c0_163, %c0_164, %c0_165] : memref<1x1x32xf32, #tpu.memory_space<vmem>>, vector<1x1x32xf32>
    %320 = vector.shape_cast %319 : vector<1x1x32xf32> to vector<1x32xf32>
    %c0_166 = arith.constant 0 : index
    %c0_167 = arith.constant 0 : index
    %c0_168 = arith.constant 0 : index
    %321 = vector.load %arg16[%c0_166, %c0_167, %c0_168] : memref<1x32x64xbf16, #tpu.memory_space<vmem>>, vector<1x32x64xbf16>
    %322 = vector.shape_cast %321 : vector<1x32x64xbf16> to vector<32x64xbf16>
    %cst_169 = arith.constant dense<0.000000e+00> : vector<16x64xf32>
    %323 = tpu.matmul %318, %322, %cst_169 {dimension_numbers = #tpu.dot_dimension_numbers<[1], [0], [0], [1], [0, 0, 1, 1], [], []>} : vector<16x32xbf16>, vector<32x64xbf16>, vector<16x64xf32> -> vector<16x64xf32>
    %c0_170 = arith.constant 0 : index
    %c0_171 = arith.constant 0 : index
    %c0_172 = arith.constant 0 : index
    %324 = vector.load %arg17[%c0_170, %c0_171, %c0_172] : memref<1x1x64xf32, #tpu.memory_space<vmem>>, vector<1x1x64xf32>
    %325 = vector.shape_cast %324 : vector<1x1x64xf32> to vector<1x64xf32>
    %326 = vector.broadcast %325 : vector<1x64xf32> to vector<16x64xf32>
    %327 = arith.addf %323, %326 : vector<16x64xf32>
    %cst_173 = arith.constant 0.000000e+00 : f32
    %328 = vector.broadcast %cst_173 : f32 to vector<16x64xf32>
    %329 = arith.maximumf %327, %328 : vector<16x64xf32>
    %330 = arith.truncf %329 : vector<16x64xf32> to vector<16x64xbf16>
    %c0_174 = arith.constant 0 : index
    %c0_175 = arith.constant 0 : index
    %c0_176 = arith.constant 0 : index
    %331 = vector.load %arg18[%c0_174, %c0_175, %c0_176] : memref<1x64x32xbf16, #tpu.memory_space<vmem>>, vector<1x64x32xbf16>
    %332 = vector.shape_cast %331 : vector<1x64x32xbf16> to vector<64x32xbf16>
    %cst_177 = arith.constant dense<0.000000e+00> : vector<16x32xf32>
    %333 = tpu.matmul %330, %332, %cst_177 {dimension_numbers = #tpu.dot_dimension_numbers<[1], [0], [0], [1], [0, 0, 1, 1], [], []>} : vector<16x64xbf16>, vector<64x32xbf16>, vector<16x32xf32> -> vector<16x32xf32>
    %334 = vector.broadcast %320 : vector<1x32xf32> to vector<16x32xf32>
    %335 = arith.addf %334, %333 : vector<16x32xf32>
    %336 = arith.addf %317, %335 : vector<16x32xf32>
    %cst_178 = arith.constant dense<0.000000e+00> : vector<16xf32>
    %337 = vector.multi_reduction <add>, %336, %cst_178 [1] : vector<16x32xf32> to vector<16xf32>
    %338 = vector.shape_cast %337 : vector<16xf32> to vector<16x1xf32>
    %cst_179 = arith.constant 3.200000e+01 : f32
    %339 = vector.broadcast %cst_179 : f32 to vector<16x1xf32>
    %340 = arith.divf %338, %339 : vector<16x1xf32>
    %341 = vector.broadcast %340 : vector<16x1xf32> to vector<16x32xf32>
    %342 = arith.subf %336, %341 : vector<16x32xf32>
    %343 = arith.mulf %342, %342 : vector<16x32xf32>
    %cst_180 = arith.constant dense<0.000000e+00> : vector<16xf32>
    %344 = vector.multi_reduction <add>, %343, %cst_180 [1] : vector<16x32xf32> to vector<16xf32>
    %345 = vector.shape_cast %344 : vector<16xf32> to vector<16x1xf32>
    %cst_181 = arith.constant 3.200000e+01 : f32
    %346 = vector.broadcast %cst_181 : f32 to vector<16x1xf32>
    %347 = arith.divf %345, %346 : vector<16x1xf32>
    %348 = vector.broadcast %340 : vector<16x1xf32> to vector<16x32xf32>
    %349 = arith.subf %336, %348 : vector<16x32xf32>
    %cst_182 = arith.constant 9.99999974E-6 : f32
    %350 = vector.broadcast %cst_182 : f32 to vector<16x1xf32>
    %351 = arith.addf %347, %350 : vector<16x1xf32>
    %352 = math.rsqrt %351 : vector<16x1xf32>
    %353 = vector.broadcast %352 : vector<16x1xf32> to vector<16x32xf32>
    %354 = arith.mulf %349, %353 : vector<16x32xf32>
    %355 = vector.extract_strided_slice %12 {offsets = [2, 0], sizes = [1, 32], strides = [1, 1]} : vector<3x32xf32> to vector<1x32xf32>
    %356 = vector.broadcast %355 : vector<1x32xf32> to vector<16x32xf32>
    %357 = arith.mulf %354, %356 : vector<16x32xf32>
    %358 = vector.extract_strided_slice %14 {offsets = [2, 0], sizes = [1, 32], strides = [1, 1]} : vector<3x32xf32> to vector<1x32xf32>
    %359 = vector.broadcast %358 : vector<1x32xf32> to vector<16x32xf32>
    %360 = arith.addf %357, %359 : vector<16x32xf32>
    %361 = vector.shape_cast %360 : vector<16x32xf32> to vector<2x8x32xf32>
    %c0_183 = arith.constant 0 : index
    %c0_184 = arith.constant 0 : index
    %c0_185 = arith.constant 0 : index
    %362 = vector.load %arg22[%c0_183, %c0_184, %c0_185] : memref<2x8x32xf32, #tpu.memory_space<vmem>>, vector<2x8x32xf32>
    tpu.vector_store %arg22[%c0_183, %c0_184, %c0_185], %361 {strides = array<i32>} : memref<2x8x32xf32, #tpu.memory_space<vmem>>, vector<2x8x32xf32>,
    return
  }
  func.func @transform_0(%arg0: i32, %arg1: i32) -> (i32, i32, i32) {
    %c0_i32 = arith.constant 0 : i32
    %c0_i32_0 = arith.constant 0 : i32
    %c0_i32_1 = arith.constant 0 : i32
    return %arg0, %c0_i32, %c0_i32_0 : i32, i32, i32
  }
  func.func @transform_1(%arg0: i32, %arg1: i32) -> (i32, i32, i32) {
    %c0_i32 = arith.constant 0 : i32
    %c0_i32_0 = arith.constant 0 : i32
    %c0_i32_1 = arith.constant 0 : i32
    return %arg0, %c0_i32, %c0_i32_0 : i32, i32, i32
  }
  func.func @transform_2(%arg0: i32, %arg1: i32) -> (i32, i32) {
    %c0_i32 = arith.constant 0 : i32
    %c0_i32_0 = arith.constant 0 : i32
    %c0_i32_1 = arith.constant 0 : i32
    return %c0_i32, %c0_i32_0 : i32, i32
  }
  func.func @transform_3(%arg0: i32, %arg1: i32) -> (i32, i32) {
    %c0_i32 = arith.constant 0 : i32
    %c0_i32_0 = arith.constant 0 : i32
    %c0_i32_1 = arith.constant 0 : i32
    return %c0_i32, %c0_i32_0 : i32, i32
  }
  func.func @transform_4(%arg0: i32, %arg1: i32) -> (i32, i32, i32) {
    %c0_i32 = arith.constant 0 : i32
    %c0_i32_0 = arith.constant 0 : i32
    %c0_i32_1 = arith.constant 0 : i32
    return %arg1, %c0_i32, %c0_i32_0 : i32, i32, i32
  }
  func.func @transform_5(%arg0: i32, %arg1: i32) -> (i32, i32, i32) {
    %c0_i32 = arith.constant 0 : i32
    %c0_i32_0 = arith.constant 0 : i32
    %c0_i32_1 = arith.constant 0 : i32
    return %arg1, %c0_i32, %c0_i32_0 : i32, i32, i32
  }
  func.func @transform_6(%arg0: i32, %arg1: i32) -> (i32, i32, i32) {
    %c0_i32 = arith.constant 0 : i32
    %c0_i32_0 = arith.constant 0 : i32
    %c0_i32_1 = arith.constant 0 : i32
    return %arg1, %c0_i32, %c0_i32_0 : i32, i32, i32
  }
  func.func @transform_7(%arg0: i32, %arg1: i32) -> (i32, i32, i32) {
    %c0_i32 = arith.constant 0 : i32
    %c0_i32_0 = arith.constant 0 : i32
    %c0_i32_1 = arith.constant 0 : i32
    return %arg1, %c0_i32, %c0_i32_0 : i32, i32, i32
  }
  func.func @transform_8(%arg0: i32, %arg1: i32) -> (i32, i32, i32) {
    %c0_i32 = arith.constant 0 : i32
    %c0_i32_0 = arith.constant 0 : i32
    %c0_i32_1 = arith.constant 0 : i32
    return %arg1, %c0_i32, %c0_i32_0 : i32, i32, i32
  }
  func.func @transform_9(%arg0: i32, %arg1: i32) -> (i32, i32, i32) {
    %c0_i32 = arith.constant 0 : i32
    %c0_i32_0 = arith.constant 0 : i32
    %c0_i32_1 = arith.constant 0 : i32
    return %arg1, %c0_i32, %c0_i32_0 : i32, i32, i32
  }
  func.func @transform_10(%arg0: i32, %arg1: i32) -> (i32, i32, i32) {
    %c0_i32 = arith.constant 0 : i32
    %c0_i32_0 = arith.constant 0 : i32
    %c0_i32_1 = arith.constant 0 : i32
    return %arg1, %c0_i32, %c0_i32_0 : i32, i32, i32
  }
  func.func @transform_11(%arg0: i32, %arg1: i32) -> (i32, i32, i32) {
    %c0_i32 = arith.constant 0 : i32
    %c0_i32_0 = arith.constant 0 : i32
    %c0_i32_1 = arith.constant 0 : i32
    return %arg1, %c0_i32, %c0_i32_0 : i32, i32, i32
  }
  func.func @transform_12(%arg0: i32, %arg1: i32) -> (i32, i32, i32) {
    %c0_i32 = arith.constant 0 : i32
    %c0_i32_0 = arith.constant 0 : i32
    %c0_i32_1 = arith.constant 0 : i32
    return %arg1, %c0_i32, %c0_i32_0 : i32, i32, i32
  }
  func.func @transform_13(%arg0: i32, %arg1: i32) -> (i32, i32, i32) {
    %c0_i32 = arith.constant 0 : i32
    %c0_i32_0 = arith.constant 0 : i32
    %c0_i32_1 = arith.constant 0 : i32
    return %arg1, %c0_i32, %c0_i32_0 : i32, i32, i32
  }
  func.func @transform_14(%arg0: i32, %arg1: i32) -> (i32, i32, i32) {
    %c0_i32 = arith.constant 0 : i32
    %c0_i32_0 = arith.constant 0 : i32
    %c0_i32_1 = arith.constant 0 : i32
    return %arg1, %c0_i32, %c0_i32_0 : i32, i32, i32
  }
  func.func @transform_15(%arg0: i32, %arg1: i32) -> (i32, i32, i32) {
    %c0_i32 = arith.constant 0 : i32
    %c0_i32_0 = arith.constant 0 : i32
    %c0_i32_1 = arith.constant 0 : i32
    return %arg1, %c0_i32, %c0_i32_0 : i32, i32, i32
  }
  func.func @transform_16(%arg0: i32, %arg1: i32) -> (i32, i32, i32) {
    %c0_i32 = arith.constant 0 : i32
    %c0_i32_0 = arith.constant 0 : i32
    %c0_i32_1 = arith.constant 0 : i32
    return %arg1, %c0_i32, %c0_i32_0 : i32, i32, i32
  }
  func.func @transform_17(%arg0: i32, %arg1: i32) -> (i32, i32, i32) {
    %c0_i32 = arith.constant 0 : i32
    %c0_i32_0 = arith.constant 0 : i32
    %c0_i32_1 = arith.constant 0 : i32
    return %arg1, %c0_i32, %c0_i32_0 : i32, i32, i32
  }
  func.func @transform_18(%arg0: i32, %arg1: i32) -> (i32, i32, i32) {
    %c0_i32 = arith.constant 0 : i32
    %c0_i32_0 = arith.constant 0 : i32
    %c0_i32_1 = arith.constant 0 : i32
    return %arg1, %c0_i32, %c0_i32_0 : i32, i32, i32
  }
  func.func @transform_19(%arg0: i32, %arg1: i32) -> (i32, i32, i32) {
    %c0_i32 = arith.constant 0 : i32
    %c0_i32_0 = arith.constant 0 : i32
    %c0_i32_1 = arith.constant 0 : i32
    return %arg1, %c0_i32, %c0_i32_0 : i32, i32, i32
  }
  func.func @transform_20(%arg0: i32, %arg1: i32) -> (i32, i32, i32) {
    %c0_i32 = arith.constant 0 : i32
    %c0_i32_0 = arith.constant 0 : i32
    %c0_i32_1 = arith.constant 0 : i32
    return %arg0, %c0_i32, %c0_i32_0 : i32, i32, i32
  }
}

</mosaic_0001>

<bundles_post_ra>
// kernel: tpu_custom_call.1
= control target key start
LH: loop header
LB: loop body
LE: loop exit
PB: predicated region body
PF: predicated region fallthrough
CT: control target
= control target key end

     0   :  { %s6184_s0 = inlined_call_operand.hbm [shape: f32[2,8,32], index: 0, kind: input, shape index: {}]   ;;  %s6185_s1 = inlined_call_operand.hbm [shape: bf16[2,8,32], index: 1, kind: input, shape index: {}]   ;;  %s6186_s2 = inlined_call_operand.hbm [shape: f32[8,8], index: 2, kind: input, shape index: {}]   ;;  %s6187_s3 = inlined_call_operand.hbm [shape: f32[8,8], index: 3, kind: input, shape index: {}]   ;;  %s6188_s4 = inlined_call_operand.vmem [shape: bf16[2,32,96], index: 4, kind: input, shape index: {}]   ;;  %s6189_s5 = inlined_call_operand.hbm [shape: f32[2,1,96], index: 5, kind: input, shape index: {}]   ;;  %s6190_s6 = inlined_call_operand.vmem [shape: bf16[2,32,32], index: 6, kind: input, shape index: {}]   ;;  %s6191_s7 = inlined_call_operand.hbm [shape: f32[2,1,32], index: 7, kind: input, shape index: {}]   ;;  %s6192_s8 = inlined_call_operand.vmem [shape: bf16[2,32,32], index: 8, kind: input, shape index: {}]   ;;  %s6193_s9 = inlined_call_operand.hbm [shape: f32[2,1,32], index: 9, kind: input, shape index: {}]   ;;  %s6194_s10 = inlined_call_operand.vmem [shape: bf16[2,32,64], index: 10, kind: input, shape index: {}]   ;;  %s6195_s11 = inlined_call_operand.hbm [shape: f32[2,1,64], index: 11, kind: input, shape index: {}]   ;;  %s6196_s12 = inlined_call_operand.hbm [shape: bf16[2,32,32], index: 12, kind: input, shape index: {}]   ;;  %s6197_s13 = inlined_call_operand.hbm [shape: f32[2,1,32], index: 13, kind: input, shape index: {}]   ;;  %s6198_s14 = inlined_call_operand.hbm [shape: bf16[2,32,64], index: 14, kind: input, shape index: {}]   ;;  %s6199_s15 = inlined_call_operand.vmem [shape: f32[2,1,64], index: 15, kind: input, shape index: {}]   ;;  %s6200_s16 = inlined_call_operand.vmem [shape: bf16[2,64,32], index: 16, kind: input, shape index: {}]   ;;  %s6201_s17 = inlined_call_operand.vmem [shape: f32[2,1,32], index: 17, kind: input, shape index: {}]   ;;  %s6202_s18 = inlined_call_operand.vmem [shape: f32[2,3,32], index: 18, kind: input, shape index: {}]   ;;  %s6203_s19 = inlined_call_operand.vmem [shape: f32[2,3,32], index: 19, kind: input, shape index: {}]   ;;  %s6204_s20 = inlined_call_operand.hbm [shape: f32[2,8,32], index: 20, kind: output, shape index: {}]  }
   0x1   :  { %6237 = sst [smem:[#allocation32_spill]] %s6184_s0 }
   0x2   :  { %6238 = sst [smem:[#allocation33_spill]] %s6185_s1 }
   0x3   :  { %6239 = sst [smem:[#allocation34_spill]] %s6186_s2 }
   0x4   :  { %6240 = sst [smem:[#allocation35_spill]] %s6187_s3 }
   0x5   :  { %6241 = sst [smem:[#allocation36_spill]] %s6188_s4 }
   0x6   :  { %6242 = sst [smem:[#allocation37_spill]] %s6189_s5 }
   0x7   :  { %6243 = sst [smem:[#allocation38_spill]] %s6190_s6 }
   0x8   :  { %6244 = sst [smem:[#allocation39_spill]] %s6191_s7 }
   0x9   :  { %6245 = sst [smem:[#allocation40_spill]] %s6192_s8 }
   0xa   :  { %6246 = sst [smem:[#allocation41_spill]] %s6193_s9 }
   0xb   :  { %6247 = sst [smem:[#allocation42_spill]] %s6194_s10 }
   0xc   :  { %6248 = sst [smem:[#allocation43_spill]] %s6195_s11 }
   0xd   :  { %6249 = sst [smem:[#allocation44_spill]] %s6196_s12 }
   0xe   :  { %6250 = sst [smem:[#allocation45_spill]] %s6197_s13 }
   0xf   :  { %6251 = sst [smem:[#allocation46_spill]] %s6198_s14 }
  0x10   :  { %6252 = sst [smem:[#allocation47_spill]] %s6199_s15 }
  0x11   :  { %6253 = sst [smem:[#allocation48_spill]] %s6200_s16 }
  0x12   :  { %6254 = sst [smem:[#allocation49_spill]] %s6201_s17 }
  0x13   :  { %6255 = sst [smem:[#allocation50_spill]] %s6202_s18 }
  0x14   :  { %6256 = sst [smem:[#allocation51_spill]] %s6203_s19 }
  0x15   :  { %6257 = sst [smem:[#allocation52_spill]] %s6204_s20 }
  0x16   :  { %25 = vsyncpa [#allocation6], 0 }
  0x17   :  { %26 = vsyncpa [#allocation9], 0 }
  0x18   :  { %27 = vsyncpa [#allocation12], 0 }
  0x19   :  { %28 = vsyncpa [#allocation7], 0  ;;  %s5229_s1 = smov 0   ;;  %s5231_s22 = smov 0  }
  0x1a   :  { %s5233_s23 = smov 0   ;;  %s5235_s24 = smov 0  }
  0x1b   :  { %s5237_s2 = smov 0   ;;  %s5239_s25 = smov 0  }
  0x1c LB: > { %6258 = sst [smem:[#allocation26_spill]] %s5077_s23  ;;  %s5258_s3 = sadd.s32 4294967295, %s5089_s25   ;;  %s5089_s25 = sphi %s5239_s25, %s34_s25   ;;  %s5085_s2 = sphi %s5237_s2, %s6327_s2   ;;  %s5081_s24 = sphi %s5235_s24, %s6326_s24   ;;  %s5077_s23 = sphi %s5233_s23, %s6322_s23   ;;  %s5073_s22 = sphi %s5231_s22, %s6325_s22   ;;  %s5069_s1 = sphi %s5229_s1, %s6324_s1  }
  0x1d   : > { %6259 = sst [smem:[#allocation27_spill]] %s5081_s24  ;;  %p186_p0 = scmp.ne.s32.totalorder %s5073_s22, %s5069_s1 }
  0x1e   : > { %6260 = sst [smem:[#allocation28_spill]] %s5089_s25  ;;  %p6210_p1 = scmp.eq.s32.totalorder %s5258_s3, 0 }
  0x1f   : > { %p3948_p2 = scmp.ge.s32.totalorder %s5089_s25, 1  ;;  %p587_p3 = scmp.lt.s32.totalorder %s5089_s25, 3 }
  0x20   : > { %p5266_p4 = por %p6210_p1, %p186_p0  ;;  %s5091_s28 = smov [#allocation5]  }
  0x21   : > { %p5270_p5 = pnand %p3948_p2, %p587_p3  ;;  %s602_s4 = sshll.u32 %s5091_s28, 4  ;;  %s603_s4 = int_to_ptr.vmem [resolvable:$true] %s602_s4 }
  0x22   : > { %s6261_s26 = scalar_select %p5266_p4, 1, 0 }
  0x23   : > { %s6263_s27 = scalar_select %p5270_p5, 1, 0 }
  0x24   : > { %6262 = sst [smem:[#allocation29_spill]] %s6261_s26  ;;  %p4456_p6 = pneg %p5270_p5 }
  0x25   : > { %s43_s30 = sadd.s32 1, %s5085_s2  ;;  %s6265_s1 = sld [smem:[#allocation32_spill]] }
  0x26   : > { %p5278_p7 = pnand %p4456_p6, %p6210_p1 }
  0x28   : > { %s6264_s29 = scalar_select %p5278_p7, 1, 0 }
  0x29   : > { %p5291_p9 = pneg %p5278_p7 }
  0x2b   : > { %s6266_s20 = smov %s6265_s1  ;;  %s4675_s19 = scalar_lea.hbm %s6265_s1, 256 }
  0x2c   : > { %p4676_p8 = scmp.ne.s32.totalorder %s6266_s20, %s4675_s19  ;;  %p4682_p12 = scmp.lt.u32.totalorder %s4675_s19, %s6266_s20 }
  0x2d   : > { %s6267_s28 = scalar_select %p5291_p9, 1, 0 }
  0x2e   : > { %p4678_p10 = pnand %p5291_p9, %p4676_p8 }
  0x30   : > { %p4679_p11 = pneg %p4678_p10 }
  0x32   : > { %p4684_p13 = pnand %p4682_p12, %p4679_p11 }
  0x34   : > { %4687 = shalt.err (!%p4684_p13)
}
  0x35   : > { %s4688_s0 = scalar_lea.vmem %s603_s4, 256  ;;  %p4696_p6 = scmp.lt.s32.totalorder %s603_s4, %s603_s4 }
  0x36   : > { %p4689_p0 = scmp.ne.s32.totalorder %s603_s4, %s4688_s0  ;;  %p4697_p1 = scmp.lt.s32.totalorder %s4688_s0, %s4688_s0 }
  0x38   : > { %p4691_p2 = pnand %p4689_p0, %p5291_p9  ;;  %p4698_p4 = por %p4697_p1, %p4696_p6 }
  0x3a   : > { %p4692_p3 = pneg %p4691_p2 }
  0x3c   : > { %p4699_p5 = pnand %p4698_p4, %p4692_p3 }
  0x3e   : > { %4702 = shalt.err (!%p4699_p5)
}
  0x3f   : > { %s5092_s16 = smov 128   ;;  %s5093_s10 = smov 8  }
  0x40   : > { %4459 = dma.hbm_to_vmem [thread:$0]  (!%p5278_p7), %s6266_s20, 256, %s603_s4, [#allocation6], %s5092_s16, %s5092_s16, %s5093_s10  }
  0x41   : > { %p44_p1 = scmp.ge.s32.totalorder %s43_s30, 2  ;;  %s173_s19 = sadd.s32 1, %s5077_s23 }
  0x42   : > { %p180_p4 = scmp.ne.s32.totalorder %s5077_s23, %s5073_s22  ;;  %p181_p5 = scmp.eq.s32.totalorder %s5089_s25, 0 }
  0x43   : > { %s6329_s30 = smov (%p44_p1, %s43_s30), 0  ;;  %p4495_p10 = scmp.lt.s32.totalorder %s5089_s25, 2 }
  0x44   : > { %6268 = sst [smem:[#allocation30_spill]] %s6329_s30  ;;  %p182_p8 = por %p181_p5, %p180_p4 }
  0x45   : > { %s170_s21 = ssub.s32 %s5085_s2, %s6329_s30  ;;  %s662_s1 = sand.u32 1, %s5089_s25  }
  0x46   : > { %p171_p11 = scmp.eq.s32.totalorder %s170_s21, 0  ;;  %s5318_s0 = sand.u32 1, %s5077_s23  }
  0x47   : > { %s5321_s8 = sshll.u32 %s5085_s2, 4  ;;  %s6270_s5 = sld [smem:[#allocation37_spill]] }
  0x48   : > { %s5324_s4 = scalar_select %p171_p11, %s5077_s23, %s173_s19  }
  0x49   : > { %s665_s18 = scalar_lea.vmem [#allocation13], %s5318_s0  ;;  %p5333_p12 = pnand %p4495_p10, %p182_p8 }
  0x4a   : > { %6269 = sst [smem:[#allocation31_spill]] %s5324_s4  ;;  %s672_s21 = sshll.u32 %s665_s18, 4  ;;  %s5337_s21 = int_to_ptr.vmem [resolvable:$true] %s672_s21 }
  0x4b   : > { %s6271_s20 = scalar_select %p5333_p12, 1, 0 }
  0x4c   : > { %s6272_s7 = sld [smem:[#allocation39_spill]]  ;;  %s5345_s16 = scalar_lea.sflag [#allocation6], %s662_s1 }
  0x4d   : > { %s5330_s17 = scalar_lea.hbm %s6270_s5, %s5321_s8  ;;  %p5351_p0 = pneg %p5333_p12 }
  0x4e   : > { %s4703_s10 = scalar_lea.hbm %s5330_s17, 16  ;;  %s4708_s6 = scalar_lea.hbm %s6270_s5, 32 }
  0x4f   : > { %p4704_p13 = scmp.ne.s32.totalorder %s5330_s17, %s4703_s10  ;;  %p4709_p6 = scmp.lt.u32.totalorder %s5330_s17, %s6270_s5 }
  0x50   : > { %s6273_s23 = scalar_select %p5351_p0, 1, 0 }
  0x51   : > { %p4706_p2 = pnand %p5351_p0, %p4704_p13  ;;  %p4710_p1 = scmp.lt.u32.totalorder %s4708_s6, %s4703_s10 }
  0x52   : > { %s5343_s4 = scalar_lea.hbm %s6272_s7, %s5321_s8  ;;  %p4712_p5 = scmp.lt.u32.totalorder %s4703_s10, %s5330_s17 }
  0x53   : > { %p4707_p3 = pneg %p4706_p2  ;;  %p4711_p4 = por %p4710_p1, %p4709_p6 }
  0x55   : > { %p4713_p8 = por %p4712_p5, %p4711_p4 }
  0x57   : > { %p4714_p10 = pnand %p4713_p8, %p4707_p3 }
  0x59   : > { %4717 = shalt.err (!%p4714_p10)
}
  0x5a   : > { %s4718_s1 = scalar_lea.vmem %s5337_s21, 16  ;;  %s5094_s25 = smov [#allocation13]  }
  0x5b   : > { %p4719_p11 = scmp.ne.s32.totalorder %s5337_s21, %s4718_s1  ;;  %s4723_s18 = sshll.u32 %s5094_s25, 4  ;;  %s4724_s18 = int_to_ptr.vmem [resolvable:$false] %s4723_s18 }
  0x5c   : > { %s4725_s30 = scalar_lea.vmem %s4724_s18, 32  ;;  %p4726_p7 = scmp.lt.s32.totalorder %s5337_s21, %s4724_s18 }
  0x5d   : > { %p4721_p13 = pnand %p4719_p11, %p5351_p0  ;;  %p4727_p9 = scmp.lt.s32.totalorder %s4725_s30, %s4718_s1 }
  0x5f   : > { %p4722_p2 = pneg %p4721_p13  ;;  %p4728_p6 = por %p4727_p9, %p4726_p7 }
  0x61   : > { %p4729_p1 = pnand %p4728_p6, %p4722_p2 }
  0x63   : > { %4732 = shalt.err (!%p4729_p1)
}
  0x64   : > { %4472 = dma.hbm_to_vmem [thread:$0]  (!%p5333_p12), %s5330_s17, 16, %s5337_s21, %s5345_s16  }
  0x65   : > { %s690_s6 = scalar_lea.vmem [#allocation14], %s5318_s0  ;;  %s6274_s9 = sld [smem:[#allocation41_spill]] }
  0x66   : > { %s697_s10 = sshll.u32 %s690_s6, 4  ;;  %s4733_s18 = scalar_lea.hbm %s5343_s4, 16  ;;  %s698_s10 = int_to_ptr.vmem [resolvable:$true] %s697_s10 }
  0x67   : > { %p4734_p7 = scmp.ne.s32.totalorder %s5343_s4, %s4733_s18  ;;  %s4738_s15 = scalar_lea.hbm %s6272_s7, 32 }
  0x68   : > { %p4739_p4 = scmp.lt.u32.totalorder %s5343_s4, %s6272_s7  ;;  %p4740_p5 = scmp.lt.u32.totalorder %s4738_s15, %s4733_s18 }
  0x69   : > { %p4736_p9 = pnand %p4734_p7, %p5351_p0  ;;  %p4742_p10 = scmp.lt.u32.totalorder %s4733_s18, %s5343_s4 }
  0x6a   : > { %p4741_p8 = por %p4740_p5, %p4739_p4 }
  0x6b   : > { %s5380_s25 = scalar_lea.hbm %s6274_s9, %s5321_s8  ;;  %p4737_p3 = pneg %p4736_p9 }
  0x6c   : > { %p4743_p11 = por %p4742_p10, %p4741_p8 }
  0x6e   : > { %p4744_p13 = pnand %p4743_p11, %p4737_p3 }
  0x70   : > { %4747 = shalt.err (!%p4744_p13)
}
  0x71   : > { %s4748_s17 = scalar_lea.vmem %s698_s10, 16  ;;  %s5095_s21 = smov [#allocation14]  }
  0x72   : > { %p4749_p2 = scmp.ne.s32.totalorder %s698_s10, %s4748_s17  ;;  %s4753_s6 = sshll.u32 %s5095_s21, 4  ;;  %s4754_s6 = int_to_ptr.vmem [resolvable:$false] %s4753_s6 }
  0x73   : > { %s4755_s5 = scalar_lea.vmem %s4754_s6, 32  ;;  %p4756_p7 = scmp.lt.s32.totalorder %s698_s10, %s4754_s6 }
  0x74   : > { %p4751_p6 = pnand %p4749_p2, %p5351_p0  ;;  %p4757_p9 = scmp.lt.s32.totalorder %s4755_s5, %s4748_s17 }
  0x76   : > { %p4752_p1 = pneg %p4751_p6  ;;  %p4758_p12 = por %p4757_p9, %p4756_p7 }
  0x78   : > { %p4759_p4 = pnand %p4758_p12, %p4752_p1 }
  0x7a   : > { %4762 = shalt.err (!%p4759_p4)
}
  0x7b   : > { %p6275_p5 = scmp.ne.s32.totalorder %s6271_s20, 0  ;;  %s715_s15 = scalar_lea.vmem [#allocation15], %s5318_s0 }
  0x7c   : > { %s722_s24 = sshll.u32 %s715_s15, 4  ;;  %s6276_s11 = sld [smem:[#allocation43_spill]]  ;;  %s723_s24 = int_to_ptr.vmem [resolvable:$true] %s722_s24 }
  0x7d   : > { %4475 = dma.hbm_to_vmem [thread:$0]  (!%p6275_p5), %s5343_s4, 16, %s698_s10, %s5345_s16  }
  0x7e   : > { %s4763_s18 = scalar_lea.hbm %s5380_s25, 16  ;;  %s4768_s21 = scalar_lea.hbm %s6274_s9, 32 }
  0x7f   : > { %p4764_p12 = scmp.ne.s32.totalorder %s5380_s25, %s4763_s18  ;;  %p4769_p10 = scmp.lt.u32.totalorder %s5380_s25, %s6274_s9 }
  0x80   : > { %p4770_p11 = scmp.lt.u32.totalorder %s4768_s21, %s4763_s18  ;;  %p4772_p2 = scmp.lt.u32.totalorder %s4763_s18, %s5380_s25 }
  0x81   : > { %p4766_p3 = pnand %p4764_p12, %p5351_p0 }
  0x82   : > { %s5405_s1 = scalar_lea.hbm %s6276_s11, %s5321_s8  ;;  %p4771_p13 = por %p4770_p11, %p4769_p10 }
  0x83   : > { %p4767_p8 = pneg %p4766_p3 }
  0x84   : > { %p4773_p6 = por %p4772_p2, %p4771_p13 }
  0x86   : > { %p4774_p1 = pnand %p4773_p6, %p4767_p8 }
  0x88   : > { %4777 = shalt.err (!%p4774_p1)
}
  0x89   : > { %s4778_s4 = scalar_lea.vmem %s723_s24, 16  ;;  %s5096_s10 = smov [#allocation15]  }
  0x8a   : > { %p4779_p7 = scmp.ne.s32.totalorder %s723_s24, %s4778_s4  ;;  %s4783_s15 = sshll.u32 %s5096_s10, 4  ;;  %s4784_s15 = int_to_ptr.vmem [resolvable:$false] %s4783_s15 }
  0x8b   : > { %s4785_s26 = scalar_lea.vmem %s4784_s15, 32  ;;  %p4786_p12 = scmp.lt.s32.totalorder %s723_s24, %s4784_s15 }
  0x8c   : > { %p4781_p9 = pnand %p4779_p7, %p5351_p0  ;;  %p4787_p3 = scmp.lt.s32.totalorder %s4785_s26, %s4778_s4 }
  0x8e   : > { %p4782_p4 = pneg %p4781_p9  ;;  %p4788_p5 = por %p4787_p3, %p4786_p12 }
  0x90   : > { %p4789_p10 = pnand %p4788_p5, %p4782_p4 }
  0x92   : > { %4792 = shalt.err (!%p4789_p10)
}
  0x93   : > { %p6277_p11 = scmp.ne.s32.totalorder %s6271_s20, 0  ;;  %s740_s19 = scalar_lea.vmem [#allocation16], %s5318_s0 }
  0x94   : > { %s747_s18 = sshll.u32 %s740_s19, 4  ;;  %s4793_s30 = scalar_lea.hbm %s5405_s1, 16  ;;  %s748_s18 = int_to_ptr.vmem [resolvable:$true] %s747_s18 }
  0x95   : > { %4478 = dma.hbm_to_vmem [thread:$0]  (!%p6277_p11), %s5380_s25, 16, %s723_s24, %s5345_s16  }
  0x96   : > { %p4794_p8 = scmp.ne.s32.totalorder %s5405_s1, %s4793_s30  ;;  %s4798_s6 = scalar_lea.hbm %s6276_s11, 32 }
  0x97   : > { %p4799_p2 = scmp.lt.u32.totalorder %s5405_s1, %s6276_s11  ;;  %p4800_p6 = scmp.lt.u32.totalorder %s4798_s6, %s4793_s30 }
  0x98   : > { %p4796_p13 = pnand %p4794_p8, %p5351_p0  ;;  %p4802_p7 = scmp.lt.u32.totalorder %s4793_s30, %s5405_s1 }
  0x99   : > { %p4801_p1 = por %p4800_p6, %p4799_p2 }
  0x9a   : > { %p4797_p5 = pneg %p4796_p13 }
  0x9b   : > { %p4803_p9 = por %p4802_p7, %p4801_p1 }
  0x9d   : > { %p4804_p4 = pnand %p4803_p9, %p4797_p5 }
  0x9f   : > { %4807 = shalt.err (!%p4804_p4)
}
  0xa0   : > { %s4808_s25 = scalar_lea.vmem %s748_s18, 16  ;;  %s5097_s24 = smov [#allocation16]  }
  0xa1   : > { %p4809_p12 = scmp.ne.s32.totalorder %s748_s18, %s4808_s25  ;;  %s4813_s10 = sshll.u32 %s5097_s24, 4  ;;  %s4814_s10 = int_to_ptr.vmem [resolvable:$false] %s4813_s10 }
  0xa2   : > { %s4815_s15 = scalar_lea.vmem %s4814_s10, 32  ;;  %p4816_p8 = scmp.lt.s32.totalorder %s748_s18, %s4814_s10 }
  0xa3   : > { %p4811_p3 = pnand %p4809_p12, %p5351_p0  ;;  %p4817_p13 = scmp.lt.s32.totalorder %s4815_s15, %s4808_s25 }
  0xa5   : > { %p4812_p10 = pneg %p4811_p3  ;;  %p4818_p11 = por %p4817_p13, %p4816_p8 }
  0xa7   : > { %p4819_p2 = pnand %p4818_p11, %p4812_p10 }
  0xa9   : > { %4822 = shalt.err (!%p4819_p2)
}
  0xaa   : > { %p6278_p6 = scmp.ne.s32.totalorder %s6271_s20, 0  ;;  %s6226_s26 = sshll.u32 %s5318_s0, 4 }
  0xab   : > { %s6227_s19 = sshll.u32 %s5085_s2, 8  ;;  %s6279_s12 = sld [smem:[#allocation44_spill]] }
  0xac   : > { %4481 = dma.hbm_to_vmem [thread:$0]  (!%p6278_p6), %s5405_s1, 16, %s748_s18, %s5345_s16  }
  0xad   : > { %s758_s6 = scalar_lea.vmem [#allocation17], %s6226_s26  ;;  %s5098_s4 = smov [#allocation8]  }
  0xae   : > { %s765_s5 = sshll.u32 %s758_s6, 4  ;;  %s5457_s25 = sshll.u32 %s5098_s4, 4  ;;  %s5455_s5 = int_to_ptr.vmem [resolvable:$true] %s765_s5  ;;  %s619_s25 = int_to_ptr.vmem [resolvable:$true] %s5457_s25 }
  0xb1   : > { %s5451_s21 = scalar_lea.hbm %s6279_s12, %s6227_s19  ;;  %s4828_s10 = scalar_lea.hbm %s6279_s12, 512 }
  0xb2   : > { %s4823_s1 = scalar_lea.hbm %s5451_s21, 256  ;;  %p4829_p7 = scmp.lt.u32.totalorder %s5451_s21, %s6279_s12 }
  0xb3   : > { %p4824_p11 = scmp.ne.s32.totalorder %s5451_s21, %s4823_s1  ;;  %p4830_p9 = scmp.lt.u32.totalorder %s4828_s10, %s4823_s1 }
  0xb4   : > { %p4832_p12 = scmp.lt.u32.totalorder %s4823_s1, %s5451_s21 }
  0xb5   : > { %p4826_p5 = pnand %p4824_p11, %p5351_p0  ;;  %p4831_p4 = por %p4830_p9, %p4829_p7 }
  0xb7   : > { %p4827_p1 = pneg %p4826_p5  ;;  %p4833_p3 = por %p4832_p12, %p4831_p4 }
  0xb9   : > { %p4834_p10 = pnand %p4833_p3, %p4827_p1 }
  0xbb   : > { %4837 = shalt.err (!%p4834_p10)
}
  0xbc   : > { %s4838_s17 = scalar_lea.vmem %s5455_s5, 256  ;;  %s5099_s6 = smov [#allocation17]  }
  0xbd   : > { %p4839_p8 = scmp.ne.s32.totalorder %s5455_s5, %s4838_s17  ;;  %s4843_s4 = sshll.u32 %s5099_s6, 4  ;;  %s4844_s4 = int_to_ptr.vmem [resolvable:$false] %s4843_s4 }
  0xbe   : > { %s4845_s18 = scalar_lea.vmem %s4844_s4, 512  ;;  %p4846_p11 = scmp.lt.s32.totalorder %s5455_s5, %s4844_s4 }
  0xbf   : > { %p4841_p13 = pnand %p4839_p8, %p5351_p0  ;;  %p4847_p5 = scmp.lt.s32.totalorder %s4845_s18, %s4838_s17 }
  0xc1   : > { %p4842_p2 = pneg %p4841_p13  ;;  %p4848_p7 = por %p4847_p5, %p4846_p11 }
  0xc3   : > { %p4849_p9 = pnand %p4848_p7, %p4842_p2 }
  0xc5   : > { %4852 = shalt.err (!%p4849_p9)
}
  0xc6   : > { %s6230_s1 = smov 64   ;;  %s6231_s24 = smov 4  }
  0xc7   : > { %4484 = dma.hbm_to_vmem [thread:$0]  (!%p6278_p6), %s5451_s21, 256, %s5455_s5, %s5345_s16, %s6230_s1, %s6230_s1, %s6231_s24  }
  0xc8   : > { %s6280_s30 = sld [smem:[#allocation33_spill]]  ;;  %p6281_p4 = scmp.ne.s32.totalorder %s6267_s28, 0 }
  0xce   : > { %s4853_s17 = scalar_lea.hbm %s6280_s30, 128 }
  0xcf   : > { %p4854_p1 = scmp.ne.s32.totalorder %s6280_s30, %s4853_s17  ;;  %p4860_p10 = scmp.lt.u32.totalorder %s4853_s17, %s6280_s30 }
  0xd1   : > { %p4856_p12 = pnand %p4854_p1, %p6281_p4 }
  0xd3   : > { %p4857_p3 = pneg %p4856_p12 }
  0xd5   : > { %p4862_p8 = pnand %p4860_p10, %p4857_p3 }
  0xd7   : > { %4865 = shalt.err (!%p4862_p8)
}
  0xd8   : > { %s4866_s19 = scalar_lea.vmem %s619_s25, 128  ;;  %p4874_p5 = scmp.lt.s32.totalorder %s619_s25, %s619_s25 }
  0xd9   : > { %p4867_p13 = scmp.ne.s32.totalorder %s619_s25, %s4866_s19  ;;  %p4875_p7 = scmp.lt.s32.totalorder %s4866_s19, %s4866_s19 }
  0xdb   : > { %p4869_p2 = pnand %p4867_p13, %p6281_p4  ;;  %p4876_p9 = por %p4875_p7, %p4874_p5 }
  0xdd   : > { %p4870_p11 = pneg %p4869_p2 }
  0xdf   : > { %p4877_p6 = pnand %p4876_p9, %p4870_p11 }
  0xe1   : > { %4880 = shalt.err (!%p4877_p6)
}
  0xe2   : > { %p6282_p1 = scmp.ne.s32.totalorder %s6264_s29, 0  ;;  %s6283_s13 = sld [smem:[#allocation45_spill]] }
  0xe3   : > { %s778_s19 = scalar_lea.vmem [#allocation18], %s5318_s0 }
  0xe4   : > { %4462 = dma.hbm_to_vmem [thread:$0]  (!%p6282_p1), %s6280_s30, 128, %s619_s25, [#allocation9], %s6230_s1, %s6230_s1, %s6231_s24  }
  0xe5   : > { %s785_s17 = sshll.u32 %s778_s19, 4  ;;  %s786_s17 = int_to_ptr.vmem [resolvable:$true] %s785_s17 }
  0xe8   : > { %s5510_s15 = scalar_lea.hbm %s6283_s13, %s5321_s8  ;;  %s4886_s25 = scalar_lea.hbm %s6283_s13, 32 }
  0xe9   : > { %s4881_s6 = scalar_lea.hbm %s5510_s15, 16  ;;  %p4887_p10 = scmp.lt.u32.totalorder %s5510_s15, %s6283_s13 }
  0xea   : > { %p4882_p6 = scmp.ne.s32.totalorder %s5510_s15, %s4881_s6  ;;  %p4888_p8 = scmp.lt.u32.totalorder %s4886_s25, %s4881_s6 }
  0xeb   : > { %p4890_p2 = scmp.lt.u32.totalorder %s4881_s6, %s5510_s15 }
  0xec   : > { %p4884_p12 = pnand %p4882_p6, %p5351_p0  ;;  %p4889_p13 = por %p4888_p8, %p4887_p10 }
  0xee   : > { %p4885_p3 = pneg %p4884_p12  ;;  %p4891_p11 = por %p4890_p2, %p4889_p13 }
  0xf0   : > { %p4892_p5 = pnand %p4891_p11, %p4885_p3 }
  0xf2   : > { %4895 = shalt.err (!%p4892_p5)
}
  0xf3   : > { %s4896_s8 = scalar_lea.vmem %s786_s17, 16  ;;  %s5102_s5 = smov [#allocation18]  }
  0xf4   : > { %p4897_p7 = scmp.ne.s32.totalorder %s786_s17, %s4896_s8  ;;  %s4901_s10 = sshll.u32 %s5102_s5, 4  ;;  %s4902_s10 = int_to_ptr.vmem [resolvable:$false] %s4901_s10 }
  0xf5   : > { %s4903_s19 = scalar_lea.vmem %s4902_s10, 32  ;;  %p4904_p12 = scmp.lt.s32.totalorder %s786_s17, %s4902_s10 }
  0xf6   : > { %p4899_p9 = pnand %p4897_p7, %p5351_p0  ;;  %p4905_p1 = scmp.lt.s32.totalorder %s4903_s19, %s4896_s8 }
  0xf8   : > { %p4900_p6 = pneg %p4899_p9  ;;  %p4906_p4 = por %p4905_p1, %p4904_p12 }
  0xfa   : > { %p4907_p8 = pnand %p4906_p4, %p4900_p6 }
  0xfc   : > { %4910 = shalt.err (!%p4907_p8)
}
  0xfd   : > { %p6284_p10 = scmp.ne.s32.totalorder %s6271_s20, 0  ;;  %s5103_s6 = smov [#allocation10]  }
  0xfe   : > { %s632_s4 = sshll.u32 %s5103_s6, 4  ;;  %s5104_s18 = smov [#allocation11]   ;;  %s633_s4 = int_to_ptr.vmem [resolvable:$true] %s632_s4 }
  0xff   : > { %4487 = dma.hbm_to_vmem [thread:$0]  (!%p6284_p10), %s5510_s15, 16, %s786_s17, %s5345_s16  }
 0x100   : > { %s643_s25 = sshll.u32 %s5104_s18, 4  ;;  %s6285_s5 = sld [smem:[#allocation34_spill]]  ;;  %s644_s25 = int_to_ptr.vmem [resolvable:$true] %s643_s25 }
 0x101   : > { %p6286_p1 = scmp.ne.s32.totalorder %s6267_s28, 0 }
 0x106   : > { %s4911_s1 = scalar_lea.hbm %s6285_s5, 128 }
 0x107   : > { %p4912_p4 = scmp.ne.s32.totalorder %s6285_s5, %s4911_s1  ;;  %p4918_p2 = scmp.lt.u32.totalorder %s4911_s1, %s6285_s5 }
 0x109   : > { %p4914_p3 = pnand %p4912_p4, %p6286_p1 }
 0x10b   : > { %p4915_p13 = pneg %p4914_p3 }
 0x10d   : > { %p4920_p11 = pnand %p4918_p2, %p4915_p13 }
 0x10f   : > { %4923 = shalt.err (!%p4920_p11)
}
 0x110   : > { %s4924_s15 = scalar_lea.vmem %s633_s4, 128  ;;  %p4932_p6 = scmp.lt.s32.totalorder %s633_s4, %s633_s4 }
 0x111   : > { %p4925_p5 = scmp.ne.s32.totalorder %s633_s4, %s4924_s15  ;;  %p4933_p12 = scmp.lt.s32.totalorder %s4924_s15, %s4924_s15 }
 0x113   : > { %p4927_p7 = pnand %p4925_p5, %p6286_p1  ;;  %p4934_p8 = por %p4933_p12, %p4932_p6 }
 0x115   : > { %p4928_p9 = pneg %p4927_p7 }
 0x117   : > { %p4935_p10 = pnand %p4934_p8, %p4928_p9 }
 0x119   : > { %4938 = shalt.err (!%p4935_p10)
}
 0x11a   : > { %p6287_p4 = scmp.ne.s32.totalorder %s6264_s29, 0  ;;  %s6288_s18 = sld [smem:[#allocation35_spill]] }
 0x11c   : > { %4465 = dma.hbm_to_vmem [thread:$0]  (!%p6287_p4), %s6285_s5, 128, %s633_s4, [#allocation9]  }
 0x120   : > { %s4939_s26 = scalar_lea.hbm %s6288_s18, 128 }
 0x121   : > { %p4940_p3 = scmp.ne.s32.totalorder %s6288_s18, %s4939_s26  ;;  %p4946_p10 = scmp.lt.u32.totalorder %s4939_s26, %s6288_s18 }
 0x123   : > { %p4942_p13 = pnand %p4940_p3, %p6286_p1 }
 0x125   : > { %p4943_p2 = pneg %p4942_p13 }
 0x127   : > { %p4948_p11 = pnand %p4946_p10, %p4943_p2 }
 0x129   : > { %4951 = shalt.err (!%p4948_p11)
}
 0x12a   : > { %s4952_s15 = scalar_lea.vmem %s644_s25, 128  ;;  %p4960_p6 = scmp.lt.s32.totalorder %s644_s25, %s644_s25 }
 0x12b   : > { %p4953_p5 = scmp.ne.s32.totalorder %s644_s25, %s4952_s15  ;;  %p4961_p12 = scmp.lt.s32.totalorder %s4952_s15, %s4952_s15 }
 0x12d   : > { %p4955_p7 = pnand %p4953_p5, %p6286_p1  ;;  %p4962_p8 = por %p4961_p12, %p4960_p6 }
 0x12f   : > { %p4956_p9 = pneg %p4955_p7 }
 0x131   : > { %p4963_p0 = pnand %p4962_p8, %p4956_p9 }
 0x133   : > { %4966 = shalt.err (!%p4963_p0)
}
 0x134   : > { %4468 = dma.hbm_to_vmem [thread:$0]  (!%p6287_p4), %s6288_s18, 128, %s644_s25, [#allocation12]  }
 0x135   : > { %s6289_s6 = sshll.u32 %s5085_s2, 8  ;;  %s6290_s14 = sld [smem:[#allocation46_spill]] }
 0x136   : > { %s6291_s26 = sshll.u32 %s5318_s0, 4  ;;  %p6292_p1 = scmp.ne.s32.totalorder %s6273_s23, 0 }
 0x137   : > { %s796_s21 = scalar_lea.vmem [#allocation19], %s6291_s26 }
 0x138   : > { %s803_s29 = sshll.u32 %s796_s21, 4  ;;  %s5576_s29 = int_to_ptr.vmem [resolvable:$true] %s803_s29 }
 0x13b   : > { %s5572_s28 = scalar_lea.hbm %s6290_s14, %s6289_s6  ;;  %s4972_s19 = scalar_lea.hbm %s6290_s14, 512 }
 0x13c   : > { %s4967_s10 = scalar_lea.hbm %s5572_s28, 256  ;;  %p4973_p13 = scmp.lt.u32.totalorder %s5572_s28, %s6290_s14 }
 0x13d   : > { %p4968_p0 = scmp.ne.s32.totalorder %s5572_s28, %s4967_s10  ;;  %p4974_p2 = scmp.lt.u32.totalorder %s4972_s19, %s4967_s10 }
 0x13e   : > { %p4976_p11 = scmp.lt.u32.totalorder %s4967_s10, %s5572_s28 }
 0x13f   : > { %p4970_p3 = pnand %p4968_p0, %p6292_p1  ;;  %p4975_p10 = por %p4974_p2, %p4973_p13 }
 0x141   : > { %p4971_p4 = pneg %p4970_p3  ;;  %p4977_p5 = por %p4976_p11, %p4975_p10 }
 0x143   : > { %p4978_p7 = pnand %p4977_p5, %p4971_p4 }
 0x145   : > { %4981 = shalt.err (!%p4978_p7)
}
 0x146   : > { %s4982_s0 = scalar_lea.vmem %s5576_s29, 256  ;;  %s5105_s17 = smov [#allocation19]  }
 0x147   : > { %p4983_p9 = scmp.ne.s32.totalorder %s5576_s29, %s4982_s0  ;;  %s4987_s6 = sshll.u32 %s5105_s17, 4  ;;  %s4988_s6 = int_to_ptr.vmem [resolvable:$false] %s4987_s6 }
 0x148   : > { %s4989_s1 = scalar_lea.vmem %s4988_s6, 512  ;;  %p4990_p8 = scmp.lt.s32.totalorder %s5576_s29, %s4988_s6 }
 0x149   : > { %p4985_p6 = pnand %p4983_p9, %p6292_p1  ;;  %p4991_p0 = scmp.lt.s32.totalorder %s4989_s1, %s4982_s0 }
 0x14b   : > { %p4986_p12 = pneg %p4985_p6  ;;  %p4992_p3 = por %p4991_p0, %p4990_p8 }
 0x14d   : > { %p4993_p13 = pnand %p4992_p3, %p4986_p12 }
 0x14f   : > { %4996 = shalt.err (!%p4993_p13)
}
 0x150   : > { %p6293_p4 = scmp.ne.s32.totalorder %s6271_s20, 0  ;;  %s6294_s24 = smov 4  }
 0x151   : > { %s6295_s26 = smov 64   ;;  %p6296_p1 = scmp.ne.s32.totalorder %s6263_s27, 0 }
 0x152   : > { %4490 = dma.hbm_to_vmem [thread:$0]  (!%p6293_p4), %s5572_s28, 256, %s5576_s29, %s5345_s16, %s6295_s26, %s6295_s26, %s6294_s24  }
 0x153   : > { %849 = sbr.rel (%p6296_p1) target bundleno = 7797 (0x1e75), region = 100  ;;  %p6297_p2 = scmp.eq.s32.totalorder (!%p6296_p1), %s5258_s3, 0 }
 0x15a   : > { %5048 = dma.done.wait (%p6297_p2), [#allocation6], 256   ;;  %p6298_p10 = pmov %p6297_p2 }
 0x15b   : > { %p6299_p11 = pmov %p6297_p2 }
 0x15c   : > { %5050 = vsyncadd (%p6298_p10), [#allocation6], 4294967040 }
 0x15d   : > { %5052 = dma.done.wait (%p6299_p11), [#allocation9], 256   ;;  %p6300_p5 = pmov %p6297_p2 }
 0x15e   : > { %p6301_p7 = pmov %p6297_p2 }
 0x15f   : > { %5054 = vsyncadd (%p6300_p5), [#allocation9], 4294967040 }
 0x160   : > { %5056 = dma.done.wait (%p6301_p7), [#allocation12], 128   ;;  %p6302_p9 = pmov %p6297_p2 }
 0x161   : > { %s6303_s20 = sld [smem:[#allocation29_spill]]  ;;  %s867_s23 = sand.u32 1, %s5258_s3  }
 0x162   : > { %5058 = vsyncadd (%p6302_p9), [#allocation12], 4294967168  ;;  %s5619_s27 = sand.u32 1, %s5073_s22   ;;  %s868_s16 = scalar_lea.sflag [#allocation6], %s867_s23 }
 0x167   : > { %p6304_p6 = scmp.ne.s32.totalorder %s6303_s20, 0 }
 0x169   : > { %5060 = dma.done.wait (%p6304_p6), %s868_s16, 592  }
 0x16a   : > { %5062 = vsyncadd (%p6304_p6), %s868_s16, 4294966704  ;;  %s6305_s21 = sld [smem:[#allocation27_spill]]  ;;  %s3970_s29 = sshll.u32 %s5619_s27, 4 }
 0x16b   : > { %s6307_s6 = sld [smem:[#allocation36_spill]]  ;;  %s6308_s20 = sld [smem:[#allocation38_spill]] }
 0x16c   : > { %s6309_s5 = sld [smem:[#allocation40_spill]]  ;;  %s6310_s12 = sld [smem:[#allocation42_spill]] }
 0x16d   : > { %s6311_s0 = sld [smem:[#allocation49_spill]]  ;;  %s6312_s24 = sld [smem:[#allocation48_spill]] }
 0x16e   : > { %s6314_s11 = sld [smem:[#allocation51_spill]]  ;;  %s886_s30 = scalar_lea.vmem [#allocation15], %s5619_s27 }
 0x16f   : > { %s894_s4 = scalar_lea.vmem [#allocation16], %s5619_s27  ;;  %s5678_s15 = scalar_lea.vmem [#allocation17], %s3970_s29 }
 0x170   : > { %p1038_p12 = scmp.lt.s32.totalorder %s6305_s21, 1  ;;  %s5681_s13 = scalar_lea.vmem [#allocation19], %s3970_s29 }
 0x171   : > { %p3984_p8 = scmp.ne.s32.totalorder %s6305_s21, 0 }
 0x172   : > { %s5629_s10 = scalar_select %p1038_p12, %s6305_s21, 1 }
 0x173   : > { %v1083_v0 = vld [vmem:[#allocation5] sm:$0xff] (!%p3984_p8)  ;;  %vm1085_vm0 = vcmask (!%p3984_p8), 261120   ;;  %v1084_v1 = vld [vmem:[#allocation5 + $0x8] sm:$0xff] (!%p3984_p8) }
 0x174   : > { %s4078_s25 = sshll.u32 %s5629_s10, 4  ;;  %s4082_s19 = sshll.u32 %s5629_s10, 5  ;;  %1086 = vst.msk [vmem:[#allocation20] sm:$0xff] (!%p3984_p8), %vm1085_vm0, %v1083_v0  ;;  %1087 = vst.msk [vmem:[#allocation20 + $0x8] sm:$0xff] (!%p3984_p8), %vm1085_vm0, %v1084_v1 }
 0x175   : > { %s1042_s1 = scalar_lea.vmem %s6307_s6, %s4078_s25  ;;  %s5642_s23 = scalar_lea.vmem %s6308_s20, %s4078_s25 }
 0x176   : > { %s5647_s7 = scalar_lea.vmem %s6309_s5, %s4078_s25  ;;  %s5652_s8 = scalar_lea.vmem %s6310_s12, %s4078_s25 }
 0x177   : > { %s1068_s17 = scalar_lea.vmem %s6311_s0, %s5629_s10  ;;  %s5662_s26 = scalar_lea.vmem %s6312_s24, %s4082_s19 }
 0x178   : > { %s3982_s20 = sshll.u32 %s5629_s10, 2  ;;  %s6313_s5 = sld [smem:[#allocation50_spill]] }
 0x179   : > { %s5673_s12 = scalar_lea.vmem %s6314_s11, %s3982_s20  ;;  %s878_s25 = scalar_lea.vmem [#allocation14], %s5619_s27 }
 0x17a   : > { %s911_s0 = scalar_lea.vmem [#allocation18], %s5619_s27  ;;  %1082 = sbr.rel (%p3984_p8) target bundleno = 385 (0x181), region = 148 }
 0x17e   : > { %s5668_s16 = scalar_lea.vmem %s6313_s5, %s3982_s20 }
 0x181 PF: > { %v4576_v2 = vld [vmem:[%s1042_s1] sm:$0xff]   ;;  %v5106_v3 = vmov 0.0   ;;  %v4577_v4 = vld [vmem:[%s1042_s1 + $0x8] sm:$0xff]   ;;  %vm5107_vm1 = vmmov 0   ;;  %v5690_v6 = vld [vmem:[#allocation20 + $0x8] sm:$0xff]  ;;  %vm1120_vm2 = vcmask 261120  }
 0x182   : > { %4170 = vmatprep.subr.bf16.mxu1 %v5106_v3  ;;  %4184 = vmatprep.subr.bf16.mxu0 %v5106_v3  ;;  %v5688_v5 = vld [vmem:[#allocation20] sm:$0xff]  ;;  %s6315_s14 = scalar_lea.vmem [#allocation13], %s5619_s27  ;;  %vm1166_vm3 = vcmask 785408   ;;  %s5108_s18 = smov 96   ;;  %vm1176_vm4 = vcmask 64512   ;;  %vm1304_vm5 = vcmask 1043456  }
 0x183   : > { %4171 = vmatpush3.bf16.msra.mxu1 %v4576_v2  ;;  %4174 = vmatprep.mubr.msk.bf16.mxu1 %vm5107_vm1, %v5106_v3  ;;  %v1096_v7 = vpack.c.bf16 %v5690_v6, %v5688_v5  ;;  %v3985_v8 = vld [vmem:[%s6315_s14] ss:$0 sm:$0xff]  ;;  %v5723_v24 = vld [vmem:[#allocation10] sm:$0xff]  ;;  %s5109_s21 = smov 64   ;;  %s5110_s29 = smov 88   ;;  %vm1633_vm6 = vcmask 130112  }
 0x184   : > { %4172 = vmatprep.subr.bf16.mxu1 %v5106_v3  ;;  %4186 = vmatprep.mubr.msk.bf16.mxu0 %vm5107_vm1, %v5106_v3  ;;  %s5111_s1 = smov 120   ;;  %s5112_s19 = smov 56   ;;  %vm1870_vm7 = vcmask 195712   ;;  %vm2107_vm8 = vcmask 261312   ;;  %vm2361_vm9 = vcmask 523264  }
 0x185   : > { %s5113_s6 = smov 80   ;;  %s5114_s24 = smov 112  }
 0x186   : > { %s5115_s20 = smov 48   ;;  %s5116_s28 = smov 72  }
 0x187   : > { %4173 = vmatpush3.bf16.msra.mxu1 %v4577_v4  ;;  %s5117_s5 = smov 104   ;;  %s5118_s9 = smov 40  }
 0x188   : > { %4178 = vmatprep.subr.bf16.mxu1 %v5106_v3  ;;  %s5119_s11 = smov 8   ;;  %s5120_s14 = smov 16  }
 0x189   : > { %s6316_s27 = sld [smem:[#allocation47_spill]]  ;;  %p4500_p0 = scmp.eq.s32.totalorder %s5258_s3, 1 }
 0x18a   : > { %4175 = vmatmul.mubr.msk.bf16.vlgmr.msra.gmra.mrb[0].mxu1 %vm1120_vm2, %v1096_v7 }
 0x18b   : > { %4180 = vmatprep.mubr.msk.bf16.mxu1 %vm5107_vm1, %v5106_v3 }
 0x25d   : > { %v1158_v9 = vpop.f32.mrb[0].mxu1 }
 0x25e   : > { %v4176_v10 = vpop.f32.mrb[1].mxu1  ;;  %v1159_v12 = vadd.f32 %v3985_v8, %v1158_v9 }
 0x25f   : > { %v1161_v11 = vpop.f32.mrb[2].mxu1 }
 0x260   : > { %v1162_v13 = vadd.f32 %v3985_v8, %v1161_v11  ;;  %v4177_v14 = vpop.f32.mrb[3].mxu1 }
 0x262   : > { %v1165_v15 = vpack.c.bf16 %v1162_v13, %v1159_v12 }
 0x264   : > { %1167 = vst.msk [vmem:[#allocation2] sm:$0xff] %vm1166_vm3, %v1165_v15 }
 0x26b   : > { %v1168_v16 = vld [vmem:[#allocation2] sm:$0xff] }
 0x26c   : > { %v5703_v17 = vcombine.low %v1168_v16, %v1168_v16  ;;  %v5707_v18 = vcombine.high %v1168_v16, %v1168_v16 }
 0x26e   : > { %1174 = vrot.lane.b32.xlu0 %v5703_v17, %s5108_s18 }
 0x272   : > { %1223 = vrot.lane.b32.xlu0 %v5707_v18, %s5108_s18 }
 0x2e0   : > { %v1175_v19 = vpop.permute.xlu0 %1174 }
 0x2e1   : > { %v1181_v20 = vsel %vm1176_vm4, %v1175_v19, 0 }
 0x2e2   : > { %4179 = vmatpush3.bf16.xpose.msra.mxu1 %v1181_v20 }
 0x2e3   : > { %4190 = vmatprep.subr.bf16.mxu1 %v5106_v3 }
 0x2e4   : > { %v1224_v21 = vpop.permute.xlu0 %1223 }
 0x2e5   : > { %v1229_v22 = vsel %vm1176_vm4, %v1224_v21, 0 }
 0x2e6   : > { %4185 = vmatpush3.bf16.xpose.msra.mxu0 %v1229_v22 }
 0x2e7   : > { %4196 = vmatprep.subr.bf16.mxu0 %v5106_v3 }
 0x2e9   : > { %4181 = vmatmul.mubr.msk.bf16.vlgmr.msra.gmra.mrb[4].mxu1 %vm1176_vm4, %v5703_v17 }
 0x2ea   : > { %4192 = vmatprep.mubr.msk.bf16.mxu1 %vm5107_vm1, %v5106_v3 }
 0x2ed   : > { %4187 = vmatmul.mubr.msk.bf16.vlgmr.msra.gmra.mrb[0].mxu0 %vm1176_vm4, %v5707_v18 }
 0x2ee   : > { %4198 = vmatprep.mubr.msk.bf16.mxu0 %vm5107_vm1, %v5106_v3 }
 0x3bc   : > { %v1217_v23 = vpop.f32.mrb[4].mxu1 }
 0x3bd   : > { %v1271_v25 = vmul.f32 0.35355338, %v1217_v23  ;;  %v4182_v26 = vpop.f32.mrb[5].mxu1 }
 0x3be   : > { %v1220_v27 = vpop.f32.mrb[6].mxu1 }
 0x3bf   : > { %v4183_v28 = vpop.f32.mrb[7].mxu1  ;;  %v1273_v29 = vadd.f32 %v1271_v25, %v5723_v24 }
 0x3c0   : > { %v1265_v30 = vpop.f32.mrb[0].mxu0 }
 0x3c1   : > { %v1272_v31 = vmul.f32 0.35355338, %v1265_v30  ;;  %v4188_v32 = vpop.f32.mrb[1].mxu0  ;;  %v1275_v33 = vsel %vm1176_vm4, %v1273_v29, -inf }
 0x3c2   : > { %v1268_v34 = vpop.f32.mrb[2].mxu0  ;;  %1276 = vmax.xlane.f32.xlu1 %v1275_v33 }
 0x3c3   : > { %v4189_v35 = vpop.f32.mrb[3].mxu0  ;;  %v1274_v36 = vadd.f32 %v1272_v31, %v5723_v24 }
 0x3c5   : > { %v1278_v37 = vsel %vm1176_vm4, %v1274_v36, -inf }
 0x3c6   : > { %1279 = vmax.xlane.f32.xlu1 %v1278_v37 }
 0x3d7   : > { %1299 = vrot.lane.b32.xlu1 %v5703_v17, %s5109_s21 }
 0x3db   : > { %1348 = vrot.lane.b32.xlu1 %v5707_v18, %s5109_s21  ;;  %s5121_s21 = smov 24  }
 0x3df   : > { %1405 = vrot.lane.b32.xlu1 %v5703_v17, %s5110_s29 }
 0x44f   : > { %v1277_v38 = vpop.xlane.xlu1 %1276 }
 0x450   : > { %v1281_v39 = vsub.f32 %v1273_v29, %v1277_v38 }
 0x452   : > { %v1283_v40 = vmul.f32 1.442695, %v1281_v39 }
 0x453   : > { %v1280_v41 = vpop.xlane.xlu1 %1279 }
 0x454   : > { %4599 = vpow2.f32 %v1283_v40  ;;  %v1282_v42 = vsub.f32 %v1274_v36, %v1280_v41 }
 0x456   : > { %v1285_v43 = vmul.f32 1.442695, %v1282_v42 }
 0x457   : > { %v1300_v44 = vpop.permute.xlu1 %1299 }
 0x458   : > { %4601 = vpow2.f32 %v1285_v43  ;;  %v1306_v45 = vsel %vm1304_vm5, %v1300_v44, 0 }
 0x459   : > { %4191 = vmatpush3.bf16.msra.mxu1 %v1306_v45 }
 0x45a   : > { %4202 = vmatprep.subr.bf16.mxu1 %v5106_v3 }
 0x45b   : > { %v1349_v46 = vpop.permute.xlu1 %1348 }
 0x45c   : > { %v1354_v47 = vsel %vm1304_vm5, %v1349_v46, 0 }
 0x45d   : > { %4197 = vmatpush3.bf16.msra.mxu0 %v1354_v47 }
 0x45e   : > { %v4600_v48 = vpop.eup %4599  ;;  %4208 = vmatprep.subr.bf16.mxu0 %v5106_v3 }
 0x45f   : > { %v1287_v49 = vsel %vm1176_vm4, %v4600_v48, 0.0  ;;  %v1406_v52 = vpop.permute.xlu1 %1405 }
 0x460   : > { %1288 = vadd.xlane.f32.xlu0 %v1287_v49  ;;  %v1411_v59 = vsel %vm1176_vm4, %v1406_v52, 0 }
 0x462   : > { %v4602_v50 = vpop.eup %4601 }
 0x463   : > { %v1290_v51 = vsel %vm1176_vm4, %v4602_v50, 0.0 }
 0x464   : > { %1291 = vadd.xlane.f32.xlu1 %v1290_v51 }
 0x475   : > { %1456 = vrot.lane.b32.xlu1 %v5707_v18, %s5110_s29 }
 0x476   : > { %1403 = vrot.lane.b32.xlu0 %v5703_v17, %s5111_s1 }
 0x479   : > { %1454 = vrot.lane.b32.xlu1 %v5707_v18, %s5111_s1 }
 0x4ed   : > { %v1289_v53 = vpop.xlane.xlu0 %1288 }
 0x4ee   : > { %4603 = vrcp.f32 %v1289_v53 }
 0x4f1   : > { %v1292_v54 = vpop.xlane.xlu1 %1291  ;;  %v1404_v0 = vpop.permute.xlu0 %1403 }
 0x4f2   : > { %4605 = vrcp.f32 %v1292_v54 }
 0x4f5   : > { %v1457_v61 = vpop.permute.xlu1 %1456 }
 0x4f6   : > { %v1462_v63 = vsel %vm1176_vm4, %v1457_v61, 0 }
 0x4f8   : > { %v4604_v55 = vpop.eup %4603 }
 0x4f9   : > { %v1295_v56 = vmul.f32 %v4604_v55, %v4600_v48  ;;  %v1455_v1 = vpop.permute.xlu1 %1454 }
 0x4fb   : > { %v1297_v57 = vpack.c.bf16 %v1295_v56, %v1295_v56 }
 0x4fc   : > { %v4606_v58 = vpop.eup %4605 }
 0x4fd   : > { %v1296_v60 = vmul.f32 %v4606_v58, %v4602_v50  ;;  %4193 = vmatmul.mubr.msk.bf16.vlgmr.msra.gmra.mrb[8].mxu1 %vm1176_vm4, %v1297_v57 }
 0x4fe   : > { %4203 = vmatpush3.bf16.xpose.msra.mxu1 %v1411_v59  ;;  %4204 = vmatprep.mubr.msk.bf16.mxu1 %vm5107_vm1, %v5106_v3 }
 0x4ff   : > { %v1298_v62 = vpack.c.bf16 %v1296_v60, %v1296_v60  ;;  %4214 = vmatprep.subr.bf16.mxu1 %v5106_v3 }
 0x501   : > { %4199 = vmatmul.mubr.msk.bf16.vlgmr.msra.gmra.mrb[4].mxu0 %vm1176_vm4, %v1298_v62 }
 0x502   : > { %4209 = vmatpush3.bf16.xpose.msra.mxu0 %v1462_v63  ;;  %4210 = vmatprep.mubr.msk.bf16.mxu0 %vm5107_vm1, %v5106_v3 }
 0x503   : > { %4220 = vmatprep.subr.bf16.mxu0 %v5106_v3 }
 0x505   : > { %4205 = vmatmul.mubr.msk.bf16.vlgmr.msra.gmra.mrb[12].mxu1 %vm1176_vm4, %v1404_v0 }
 0x506   : > { %4216 = vmatprep.mubr.msk.bf16.mxu1 %vm5107_vm1, %v5106_v3 }
 0x509   : > { %4211 = vmatmul.mubr.msk.bf16.vlgmr.msra.gmra.mrb[8].mxu0 %vm1176_vm4, %v1455_v1 }
 0x50a   : > { %4222 = vmatprep.mubr.msk.bf16.mxu0 %vm5107_vm1, %v5106_v3 }
 0x5d0   : > { %v1342_v2 = vpop.f32.mrb[8].mxu1 }
 0x5d1   : > { %v4194_v4 = vpop.f32.mrb[9].mxu1 }
 0x5d2   : > { %v1345_v7 = vpop.f32.mrb[10].mxu1 }
 0x5d3   : > { %v4195_v8 = vpop.f32.mrb[11].mxu1 }
 0x5d4   : > { %v1390_v9 = vpop.f32.mrb[4].mxu0 }
 0x5d5   : > { %v1396_v10 = vpack.c.bf16 %v1390_v9, %v1342_v2  ;;  %v4200_v11 = vpop.f32.mrb[5].mxu0 }
 0x5d6   : > { %v1393_v12 = vpop.f32.mrb[6].mxu0 }
 0x5d7   : > { %1397 = vst.msk [vmem:[#allocation4] sm:$0xff] %vm1176_vm4, %v1396_v10  ;;  %v4201_v13 = vpop.f32.mrb[7].mxu0 }
 0x5d8   : > { %v1447_v14 = vpop.f32.mrb[12].mxu1 }
 0x5d9   : > { %v1504_v15 = vmul.f32 0.35355338, %v1447_v14  ;;  %v4206_v16 = vpop.f32.mrb[13].mxu1 }
 0x5da   : > { %v1450_v19 = vpop.f32.mrb[14].mxu1 }
 0x5db   : > { %v4207_v20 = vpop.f32.mrb[15].mxu1  ;;  %v1506_v21 = vadd.f32 %v1504_v15, %v5723_v24 }
 0x5dc   : > { %v1498_v22 = vpop.f32.mrb[8].mxu0 }
 0x5dd   : > { %v1505_v23 = vmul.f32 0.35355338, %v1498_v22  ;;  %v4212_v25 = vpop.f32.mrb[9].mxu0  ;;  %v1508_v26 = vsel %vm1176_vm4, %v1506_v21, -inf }
 0x5de   : > { %v1501_v27 = vpop.f32.mrb[10].mxu0  ;;  %1509 = vmax.xlane.f32.xlu1 %v1508_v26 }
 0x5df   : > { %v4213_v28 = vpop.f32.mrb[11].mxu0  ;;  %v1507_v29 = vadd.f32 %v1505_v23, %v5723_v24 }
 0x5e1   : > { %v1511_v30 = vsel %vm1176_vm4, %v1507_v29, -inf }
 0x5e2   : > { %1512 = vmax.xlane.f32.xlu0 %v1511_v30 }
 0x5ef   : > { %1532 = vrot.lane.b32.xlu1 %v5703_v17, %s5112_s19 }
 0x5f3   : > { %1642 = vrot.lane.b32.xlu1 %v5703_v17, %s5113_s6 }
 0x5f8   : > { %1580 = vrot.lane.b32.xlu0 %v5707_v18, %s5112_s19 }
 0x5fc   : > { %1640 = vrot.lane.b32.xlu0 %v5703_v17, %s5114_s24 }
 0x66b   : > { %v1510_v31 = vpop.xlane.xlu1 %1509 }
 0x66c   : > { %v1514_v32 = vsub.f32 %v1506_v21, %v1510_v31 }
 0x66e   : > { %v1516_v33 = vmul.f32 1.442695, %v1514_v32 }
 0x66f   : > { %v1513_v34 = vpop.xlane.xlu0 %1512  ;;  %v1533_v35 = vpop.permute.xlu1 %1532 }
 0x670   : > { %4607 = vpow2.f32 %v1516_v33  ;;  %v1515_v36 = vsub.f32 %v1507_v29, %v1513_v34  ;;  %v1538_v37 = vsel %vm1304_vm5, %v1533_v35, 0 }
 0x671   : > { %4215 = vmatpush3.bf16.msra.mxu1 %v1538_v37 }
 0x672   : > { %v1518_v38 = vmul.f32 1.442695, %v1515_v36  ;;  %4226 = vmatprep.subr.bf16.mxu1 %v5106_v3 }
 0x673   : > { %v1581_v39 = vpop.permute.xlu0 %1580  ;;  %v1643_v45 = vpop.permute.xlu1 %1642 }
 0x674   : > { %4609 = vpow2.f32 %v1518_v38  ;;  %v1586_v40 = vsel %vm1304_vm5, %v1581_v39, 0  ;;  %v1648_v52 = vsel %vm1176_vm4, %v1643_v45, 0 }
 0x675   : > { %4221 = vmatpush3.bf16.msra.mxu0 %v1586_v40 }
 0x676   : > { %4232 = vmatprep.subr.bf16.mxu0 %v5106_v3 }
 0x677   : > { %v1641_v57 = vpop.permute.xlu0 %1640 }
 0x67a   : > { %v4608_v41 = vpop.eup %4607 }
 0x67b   : > { %v1520_v42 = vsel %vm1176_vm4, %v4608_v41, 0.0 }
 0x67c   : > { %1521 = vadd.xlane.f32.xlu1 %v1520_v42 }
 0x67e   : > { %v4610_v43 = vpop.eup %4609 }
 0x67f   : > { %v1523_v44 = vsel %vm1176_vm4, %v4610_v43, 0.0 }
 0x680   : > { %1524 = vadd.xlane.f32.xlu1 %v1523_v44 }
 0x691   : > { %1693 = vrot.lane.b32.xlu1 %v5707_v18, %s5113_s6 }
 0x695   : > { %1691 = vrot.lane.b32.xlu1 %v5707_v18, %s5114_s24 }
 0x709   : > { %v1522_v46 = vpop.xlane.xlu1 %1521 }
 0x70a   : > { %4611 = vrcp.f32 %v1522_v46 }
 0x70d   : > { %v1525_v47 = vpop.xlane.xlu1 %1524 }
 0x70e   : > { %4613 = vrcp.f32 %v1525_v47 }
 0x711   : > { %v1694_v54 = vpop.permute.xlu1 %1693 }
 0x712   : > { %v1699_v56 = vsel %vm1176_vm4, %v1694_v54, 0 }
 0x714   : > { %v4612_v48 = vpop.eup %4611 }
 0x715   : > { %v1528_v49 = vmul.f32 %v4612_v48, %v4608_v41  ;;  %v1692_v58 = vpop.permute.xlu1 %1691 }
 0x717   : > { %v1530_v50 = vpack.c.bf16 %v1528_v49, %v1528_v49 }
 0x718   : > { %v4614_v51 = vpop.eup %4613 }
 0x719   : > { %v1529_v53 = vmul.f32 %v4614_v51, %v4610_v43  ;;  %4217 = vmatmul.mubr.msk.bf16.vlgmr.msra.gmra.mrb[16].mxu1 %vm1176_vm4, %v1530_v50 }
 0x71a   : > { %4227 = vmatpush3.bf16.xpose.msra.mxu1 %v1648_v52  ;;  %4228 = vmatprep.mubr.msk.bf16.mxu1 %vm5107_vm1, %v5106_v3 }
 0x71b   : > { %v1531_v55 = vpack.c.bf16 %v1529_v53, %v1529_v53  ;;  %4238 = vmatprep.subr.bf16.mxu1 %v5106_v3 }
 0x71d   : > { %4223 = vmatmul.mubr.msk.bf16.vlgmr.msra.gmra.mrb[12].mxu0 %vm1176_vm4, %v1531_v55 }
 0x71e   : > { %4233 = vmatpush3.bf16.xpose.msra.mxu0 %v1699_v56  ;;  %4234 = vmatprep.mubr.msk.bf16.mxu0 %vm5107_vm1, %v5106_v3 }
 0x71f   : > { %4244 = vmatprep.subr.bf16.mxu0 %v5106_v3 }
 0x721   : > { %4229 = vmatmul.mubr.msk.bf16.vlgmr.msra.gmra.mrb[20].mxu1 %vm1176_vm4, %v1641_v57 }
 0x722   : > { %4240 = vmatprep.mubr.msk.bf16.mxu1 %vm5107_vm1, %v5106_v3 }
 0x725   : > { %4235 = vmatmul.mubr.msk.bf16.vlgmr.msra.gmra.mrb[16].mxu0 %vm1176_vm4, %v1692_v58 }
 0x726   : > { %4246 = vmatprep.mubr.msk.bf16.mxu0 %vm5107_vm1, %v5106_v3 }
 0x7ec   : > { %v5798_v59 = vpop.f32.mrb[16].mxu1 }
 0x7ed   : > { %v4218_v60 = vpop.f32.mrb[17].mxu1 }
 0x7ee   : > { %v1577_v61 = vpop.f32.mrb[18].mxu1 }
 0x7ef   : > { %v4219_v62 = vpop.f32.mrb[19].mxu1 }
 0x7f0   : > { %v5800_v63 = vpop.f32.mrb[12].mxu0 }
 0x7f1   : > { %v1628_v0 = vpack.c.bf16 %v5800_v63, %v5798_v59  ;;  %v4224_v1 = vpop.f32.mrb[13].mxu0 }
 0x7f2   : > { %v1625_v2 = vpop.f32.mrb[14].mxu0 }
 0x7f3   : > { %v4225_v4 = vpop.f32.mrb[15].mxu0 }
 0x7f4   : > { %v1684_v7 = vpop.f32.mrb[20].mxu1 }
 0x7f5   : > { %v1741_v8 = vmul.f32 0.35355338, %v1684_v7  ;;  %v4230_v9 = vpop.f32.mrb[21].mxu1 }
 0x7f6   : > { %v1687_v10 = vpop.f32.mrb[22].mxu1 }
 0x7f7   : > { %v4231_v11 = vpop.f32.mrb[23].mxu1  ;;  %v1743_v12 = vadd.f32 %v1741_v8, %v5723_v24 }
 0x7f8   : > { %v1735_v13 = vpop.f32.mrb[16].mxu0 }
 0x7f9   : > { %v1742_v14 = vmul.f32 0.35355338, %v1735_v13  ;;  %v4236_v15 = vpop.f32.mrb[17].mxu0  ;;  %v1745_v16 = vsel %vm1176_vm4, %v1743_v12, -inf }
 0x7fa   : > { %v1738_v19 = vpop.f32.mrb[18].mxu0  ;;  %1746 = vmax.xlane.f32.xlu0 %v1745_v16 }
 0x7fb   : > { %v4237_v20 = vpop.f32.mrb[19].mxu0  ;;  %v1744_v21 = vadd.f32 %v1742_v14, %v5723_v24 }
 0x7fd   : > { %v1748_v22 = vsel %vm1176_vm4, %v1744_v21, -inf }
 0x7fe   : > { %1749 = vmax.xlane.f32.xlu1 %v1748_v22 }
 0x80f   : > { %1769 = vrot.lane.b32.xlu1 %v5703_v17, %s5115_s20 }
 0x813   : > { %1879 = vrot.lane.b32.xlu1 %v5703_v17, %s5116_s28 }
 0x817   : > { %1930 = vrot.lane.b32.xlu1 %v5707_v18, %s5116_s28 }
 0x81b   : > { %1928 = vrot.lane.b32.xlu1 %v5707_v18, %s5117_s5 }
 0x887   : > { %v1747_v23 = vpop.xlane.xlu0 %1746 }
 0x888   : > { %v1751_v25 = vsub.f32 %v1743_v12, %v1747_v23 }
 0x88a   : > { %v1753_v26 = vmul.f32 1.442695, %v1751_v25 }
 0x88b   : > { %v1750_v27 = vpop.xlane.xlu1 %1749 }
 0x88c   : > { %4615 = vpow2.f32 %v1753_v26  ;;  %v1752_v28 = vsub.f32 %v1744_v21, %v1750_v27 }
 0x88e   : > { %v1755_v29 = vmul.f32 1.442695, %v1752_v28 }
 0x88f   : > { %v1770_v30 = vpop.permute.xlu1 %1769 }
 0x890   : > { %4617 = vpow2.f32 %v1755_v29  ;;  %v1775_v31 = vsel %vm1304_vm5, %v1770_v30, 0 }
 0x891   : > { %4239 = vmatpush3.bf16.msra.mxu1 %v1775_v31 }
 0x892   : > { %4250 = vmatprep.subr.bf16.mxu1 %v5106_v3 }
 0x893   : > { %v1880_v41 = vpop.permute.xlu1 %1879 }
 0x894   : > { %v1885_v45 = vsel %vm1176_vm4, %v1880_v41, 0 }
 0x896   : > { %v4616_v32 = vpop.eup %4615 }
 0x897   : > { %v1757_v33 = vsel %vm1176_vm4, %v4616_v32, 0.0  ;;  %v1931_v47 = vpop.permute.xlu1 %1930 }
 0x898   : > { %1758 = vadd.xlane.f32.xlu0 %v1757_v33  ;;  %v1936_v49 = vsel %vm1176_vm4, %v1931_v47, 0 }
 0x89a   : > { %v4618_v34 = vpop.eup %4617 }
 0x89b   : > { %v1760_v35 = vsel %vm1176_vm4, %v4618_v34, 0.0  ;;  %v1929_v51 = vpop.permute.xlu1 %1928 }
 0x89c   : > { %1761 = vadd.xlane.f32.xlu0 %v1760_v35 }
 0x8b2   : > { %1817 = vrot.lane.b32.xlu0 %v5707_v18, %s5115_s20 }
 0x8b6   : > { %1877 = vrot.lane.b32.xlu0 %v5703_v17, %s5117_s5 }
 0x925   : > { %v1759_v36 = vpop.xlane.xlu0 %1758 }
 0x926   : > { %4619 = vrcp.f32 %v1759_v36 }
 0x929   : > { %v1762_v37 = vpop.xlane.xlu0 %1761 }
 0x92a   : > { %4621 = vrcp.f32 %v1762_v37 }
 0x92d   : > { %v1818_v38 = vpop.permute.xlu0 %1817 }
 0x92e   : > { %v1823_v39 = vsel %vm1304_vm5, %v1818_v38, 0  ;;  %v4580_v38 = vld [vmem:[%s5642_s23] sm:$0xff]  }
 0x92f   : > { %4245 = vmatpush3.bf16.msra.mxu0 %v1823_v39  ;;  %v4581_v39 = vld [vmem:[%s5642_s23 + $0x8] sm:$0xff]   ;;  %s6317_s23 = scalar_lea.vmem %s6316_s27, %s5629_s10  ;;  %s5122_s10 = smov [#allocation20]  }
 0x930   : > { %v4620_v40 = vpop.eup %4619  ;;  %4256 = vmatprep.subr.bf16.mxu0 %v5106_v3 }
 0x931   : > { %v1765_v42 = vmul.f32 %v4620_v40, %v4616_v32  ;;  %v1878_v50 = vpop.permute.xlu0 %1877 }
 0x933   : > { %v1767_v43 = vpack.c.bf16 %v1765_v42, %v1765_v42 }
 0x934   : > { %v4622_v44 = vpop.eup %4621 }
 0x935   : > { %v1766_v46 = vmul.f32 %v4622_v44, %v4618_v34  ;;  %4241 = vmatmul.mubr.msk.bf16.vlgmr.msra.gmra.mrb[24].mxu1 %vm1176_vm4, %v1767_v43 }
 0x936   : > { %4251 = vmatpush3.bf16.xpose.msra.mxu1 %v1885_v45  ;;  %4252 = vmatprep.mubr.msk.bf16.mxu1 %vm5107_vm1, %v5106_v3 }
 0x937   : > { %v1768_v48 = vpack.c.bf16 %v1766_v46, %v1766_v46  ;;  %4262 = vmatprep.subr.bf16.mxu1 %v5106_v3 }
 0x939   : > { %4247 = vmatmul.mubr.msk.bf16.vlgmr.msra.gmra.mrb[20].mxu0 %vm1176_vm4, %v1768_v48 }
 0x93a   : > { %4257 = vmatpush3.bf16.xpose.msra.mxu0 %v1936_v49  ;;  %4258 = vmatprep.mubr.msk.bf16.mxu0 %vm5107_vm1, %v5106_v3 }
 0x93b   : > { %4268 = vmatprep.subr.bf16.mxu0 %v5106_v3 }
 0x93d   : > { %4253 = vmatmul.mubr.msk.bf16.vlgmr.msra.gmra.mrb[28].mxu1 %vm1176_vm4, %v1878_v50 }
 0x93e   : > { %4264 = vmatprep.mubr.msk.bf16.mxu1 %vm5107_vm1, %v5106_v3 }
 0x941   : > { %4259 = vmatmul.mubr.msk.bf16.vlgmr.msra.gmra.mrb[24].mxu0 %vm1176_vm4, %v1929_v51  ;;  %v4013_v51 = vld [vmem:[%s878_s25] ss:$0 sm:$0xff] }
 0x942   : > { %4270 = vmatprep.mubr.msk.bf16.mxu0 %vm5107_vm1, %v5106_v3 }
 0xa08   : > { %v1811_v52 = vpop.f32.mrb[24].mxu1 }
 0xa09   : > { %v4242_v53 = vpop.f32.mrb[25].mxu1 }
 0xa0a   : > { %v1814_v54 = vpop.f32.mrb[26].mxu1 }
 0xa0b   : > { %v4243_v55 = vpop.f32.mrb[27].mxu1 }
 0xa0c   : > { %v1859_v56 = vpop.f32.mrb[20].mxu0 }
 0xa0d   : > { %v1865_v57 = vpack.c.bf16 %v1859_v56, %v1811_v52  ;;  %v4248_v58 = vpop.f32.mrb[21].mxu0 }
 0xa0e   : > { %v1862_v60 = vpop.f32.mrb[22].mxu0 }
 0xa0f   : > { %v4249_v61 = vpop.f32.mrb[23].mxu0 }
 0xa10   : > { %v1921_v62 = vpop.f32.mrb[28].mxu1 }
 0xa11   : > { %v1978_v1 = vmul.f32 0.35355338, %v1921_v62  ;;  %v4254_v2 = vpop.f32.mrb[29].mxu1 }
 0xa12   : > { %v1924_v4 = vpop.f32.mrb[30].mxu1 }
 0xa13   : > { %v4255_v7 = vpop.f32.mrb[31].mxu1  ;;  %v1980_v8 = vadd.f32 %v1978_v1, %v5723_v24 }
 0xa14   : > { %v1972_v9 = vpop.f32.mrb[24].mxu0 }
 0xa15   : > { %v1979_v10 = vmul.f32 0.35355338, %v1972_v9  ;;  %v4260_v11 = vpop.f32.mrb[25].mxu0  ;;  %v1982_v12 = vsel %vm1176_vm4, %v1980_v8, -inf }
 0xa16   : > { %v1975_v13 = vpop.f32.mrb[26].mxu0  ;;  %1983 = vmax.xlane.f32.xlu0 %v1982_v12  ;;  %v4582_v12 = vld [vmem:[%s5652_s8] sm:$0xff]  }
 0xa17   : > { %v4261_v14 = vpop.f32.mrb[27].mxu0  ;;  %v1981_v15 = vadd.f32 %v1979_v10, %v5723_v24  ;;  %v4583_v13 = vld [vmem:[%s5652_s8 + $0x8] sm:$0xff]  }
 0xa18   : > { %v4584_v14 = vld [vmem:[#allocation8] sm:$0xff]  }
 0xa19   : > { %v1985_v16 = vsel %vm1176_vm4, %v1981_v15, -inf }
 0xa1a   : > { %1986 = vmax.xlane.f32.xlu1 %v1985_v16  ;;  %v4586_v16 = vld [vmem:[%s5647_s7 + $0x8] sm:$0xff]  }
 0xa2b   : > { %2006 = vrot.lane.b32.xlu1 %v5703_v17, %s5118_s9 }
 0xa2f   : > { %1630 = vrot.lane.b32.xlu1 %v1628_v0, %s5119_s11 }
 0xa33   : > { %1867 = vrot.lane.b32.xlu1 %v1865_v57, %s5120_s14 }
 0xaa3   : > { %v1984_v19 = vpop.xlane.xlu0 %1983 }
 0xaa4   : > { %v1988_v20 = vsub.f32 %v1980_v8, %v1984_v19 }
 0xaa6   : > { %v1990_v21 = vmul.f32 1.442695, %v1988_v20 }
 0xaa7   : > { %v1987_v22 = vpop.xlane.xlu1 %1986 }
 0xaa8   : > { %4623 = vpow2.f32 %v1990_v21  ;;  %v1989_v24 = vsub.f32 %v1981_v15, %v1987_v22  ;;  %v4585_v15 = vld [vmem:[%s5647_s7] sm:$0xff]   ;;  %v2206_v21 = vlaneseq }
 0xaaa   : > { %v1992_v23 = vmul.f32 1.442695, %v1989_v24 }
 0xaab   : > { %v2007_v25 = vpop.permute.xlu1 %2006 }
 0xaac   : > { %4625 = vpow2.f32 %v1992_v23  ;;  %v2012_v17 = vsel %vm1304_vm5, %v2007_v25, 0 }
 0xaad   : > { %4263 = vmatpush3.bf16.msra.mxu1 %v2012_v17  ;;  %v5893_v17 = vshrl.u32 %v2206_v21, 7 }
 0xaae   : > { %4274 = vmatprep.subr.bf16.mxu1 %v5106_v3 }
 0xaaf   : > { %v1631_v59 = vpop.permute.xlu1 %1630 }
 0xab0   : > { %1634 = vst.msk [vmem:[#allocation4] sm:$0xff] %vm1633_vm6, %v1631_v59  ;;  %v2208_v59 = vsub.s32 0, %v5893_v17 }
 0xab2   : > { %v4624_v63 = vpop.eup %4623 }
 0xab3   : > { %v1868_v0 = vpop.permute.xlu1 %1867  ;;  %v1994_v26 = vsel %vm1176_vm4, %v4624_v63, 0.0 }
 0xab4   : > { %1871 = vst.msk [vmem:[#allocation4] sm:$0xff] %vm1870_vm7, %v1868_v0  ;;  %1995 = vadd.xlane.f32.xlu0 %v1994_v26 }
 0xab6   : > { %v4626_v27 = vpop.eup %4625 }
 0xab7   : > { %v1997_v28 = vsel %vm1176_vm4, %v4626_v27, 0.0 }
 0xab8   : > { %1998 = vadd.xlane.f32.xlu0 %v1997_v28 }
 0xace   : > { %2054 = vrot.lane.b32.xlu0 %v5707_v18, %s5118_s9 }
 0xb41   : > { %v1996_v29 = vpop.xlane.xlu0 %1995 }
 0xb42   : > { %4627 = vrcp.f32 %v1996_v29 }
 0xb45   : > { %v1999_v30 = vpop.xlane.xlu0 %1998 }
 0xb46   : > { %4629 = vrcp.f32 %v1999_v30 }
 0xb49   : > { %v2055_v31 = vpop.permute.xlu0 %2054 }
 0xb4a   : > { %v2060_v32 = vsel %vm1304_vm5, %v2055_v31, 0 }
 0xb4b   : > { %4269 = vmatpush3.bf16.msra.mxu0 %v2060_v32 }
 0xb4c   : > { %v4628_v33 = vpop.eup %4627  ;;  %4282 = vmatprep.subr.bf16.mxu0 %v5106_v3 }
 0xb4d   : > { %v2002_v34 = vmul.f32 %v4628_v33, %v4624_v63  ;;  %v5897_v63 = vld [vmem:[%s5668_s16] sm:$0x7] }
 0xb4e   : > { %v2209_v0 = vrot.slane %v5897_v63, %v2208_v59 }
 0xb4f   : > { %v2004_v35 = vpack.c.bf16 %v2002_v34, %v2002_v34 }
 0xb50   : > { %v4630_v36 = vpop.eup %4629 }
 0xb51   : > { %v2003_v37 = vmul.f32 %v4630_v36, %v4626_v27  ;;  %4265 = vmatmul.mubr.msk.bf16.vlgmr.msra.gmra.mrb[32].mxu1 %vm1176_vm4, %v2004_v35  ;;  %v5901_v27 = vld [vmem:[%s5673_s12] sm:$0x7] }
 0xb52   : > { %4278 = vmatprep.mubr.msk.bf16.mxu1 %vm5107_vm1, %v5106_v3  ;;  %4275 = vmatpush3.bf16.msra.mxu1 %v4580_v38  ;;  %v2215_v32 = vrot.slane %v5901_v27, %v2208_v59 }
 0xb53   : > { %v2005_v18 = vpack.c.bf16 %v2003_v37, %v2003_v37  ;;  %4276 = vmatprep.subr.bf16.mxu1 %v5106_v3  ;;  %v4021_v37 = vld [vmem:[%s894_s4] ss:$0 sm:$0xff] }
 0xb55   : > { %4271 = vmatmul.mubr.msk.bf16.vlgmr.msra.gmra.mrb[28].mxu0 %vm1176_vm4, %v2005_v18 }
 0xb56   : > { %4286 = vmatprep.mubr.msk.bf16.mxu0 %vm5107_vm1, %v5106_v3  ;;  %4277 = vmatpush3.bf16.msra.mxu1 %v4581_v39 }
 0xb57   : > { %4290 = vmatprep.subr.bf16.mxu1 %v5106_v3  ;;  %4283 = vmatpush3.bf16.msra.mxu0 %v4585_v15 }
 0xb58   : > { %4284 = vmatprep.subr.bf16.mxu0 %v5106_v3 }
 0xb5b   : > { %4285 = vmatpush3.bf16.msra.mxu0 %v4586_v16 }
 0xb5c   : > { %4298 = vmatprep.subr.bf16.mxu0 %v5106_v3 }
 0xc24   : > { %v2048_v40 = vpop.f32.mrb[32].mxu1 }
 0xc25   : > { %v4266_v41 = vpop.f32.mrb[33].mxu1 }
 0xc26   : > { %v2051_v42 = vpop.f32.mrb[34].mxu1 }
 0xc27   : > { %v4267_v43 = vpop.f32.mrb[35].mxu1 }
 0xc28   : > { %v2096_v44 = vpop.f32.mrb[28].mxu0 }
 0xc29   : > { %v2102_v45 = vpack.c.bf16 %v2096_v44, %v2048_v40  ;;  %v4272_v46 = vpop.f32.mrb[29].mxu0 }
 0xc2a   : > { %v2099_v47 = vpop.f32.mrb[30].mxu0 }
 0xc2b   : > { %v4273_v48 = vpop.f32.mrb[31].mxu0  ;;  %2104 = vrot.lane.b32.xlu0 %v2102_v45, %s5121_s21 }
 0xc9d   : > { %v2105_v49 = vpop.permute.xlu0 %2104 }
 0xc9e   : > { %2108 = vst.msk [vmem:[#allocation4] sm:$0xff] %vm2107_vm8, %v2105_v49  ;;  %v4017_v49 = vld [vmem:[%s886_s30] ss:$0 sm:$0xff] }
 0xca5   : > { %v2109_v50 = vld [vmem:[#allocation4] sm:$0xff] }
 0xca6   : > { %4279 = vmatmul.mubr.msk.bf16.vlgmr.msra.gmra.mrb[36].mxu1 %vm1120_vm2, %v2109_v50 }
 0xca7   : > { %4294 = vmatprep.mubr.msk.bf16.mxu1 %vm5107_vm1, %v5106_v3  ;;  %4291 = vmatpush3.bf16.msra.mxu1 %v4582_v12 }
 0xca8   : > { %4292 = vmatprep.subr.bf16.mxu1 %v5106_v3 }
 0xcab   : > { %4293 = vmatpush3.bf16.msra.mxu1 %v4583_v13 }
 0xcac   : > { %4304 = vmatprep.subr.bf16.mxu1 %v5106_v3 }
 0xcae   : > { %4295 = vmatmul.mubr.msk.bf16.vlgmr.msra.gmra.mrb[40].mxu1 %vm1120_vm2, %v4584_v14 }
 0xcaf   : > { %4306 = vmatprep.mubr.msk.bf16.mxu1 %vm5107_vm1, %v5106_v3 }
 0xd79   : > { %v2170_v52 = vpop.f32.mrb[36].mxu1 }
 0xd7a   : > { %v2171_v53 = vadd.f32 %v4013_v51, %v2170_v52  ;;  %v4280_v54 = vpop.f32.mrb[37].mxu1 }
 0xd7b   : > { %v2173_v55 = vpop.f32.mrb[38].mxu1 }
 0xd7c   : > { %v2174_v56 = vadd.f32 %v4013_v51, %v2173_v55  ;;  %v4281_v57 = vpop.f32.mrb[39].mxu1  ;;  %v2177_v58 = vadd.f32 %v2171_v53, %v5688_v5 }
 0xd7e   : > { %v2179_v60 = vsel %vm1120_vm2, %v2177_v58, 0.0  ;;  %v2178_v61 = vadd.f32 %v2174_v56, %v5690_v6 }
 0xd7f   : > { %2180 = vadd.xlane.f32.xlu1 %v2179_v60 }
 0xd80   : > { %v2182_v62 = vsel %vm1120_vm2, %v2178_v61, 0.0 }
 0xd81   : > { %2183 = vadd.xlane.f32.xlu0 %v2182_v62  ;;  %v2353_v18 = vpop.f32.mrb[40].mxu1 }
 0xd82   : > { %v2354_v38 = vadd.f32 %v4021_v37, %v2353_v18  ;;  %v4296_v39 = vpop.f32.mrb[41].mxu1 }
 0xd83   : > { %v2356_v40 = vpop.f32.mrb[42].mxu1 }
 0xd84   : > { %v2357_v41 = vadd.f32 %v4021_v37, %v2356_v40  ;;  %v4297_v42 = vpop.f32.mrb[43].mxu1 }
 0xd86   : > { %v2360_v43 = vpack.c.bf16 %v2357_v41, %v2354_v38 }
 0xd88   : > { %2362 = vst.msk [vmem:[#allocation3] sm:$0xff] %vm2361_vm9, %v2360_v43 }
 0xd8f   : > { %v2369_v44 = vld [vmem:[#allocation3] sm:$0xff] }
 0xd90   : > { %v5916_v45 = vcombine.low %v2369_v44, %v2369_v44  ;;  %v5918_v46 = vcombine.high %v2369_v44, %v2369_v44 }
 0xd92   : > { %v2379_v47 = vsel %vm1176_vm4, %v5916_v45, 0  ;;  %v2425_v48 = vsel %vm1176_vm4, %v5918_v46, 0 }
 0xd93   : > { %4305 = vmatpush3.bf16.xpose.msra.mxu1 %v2425_v48 }
 0xd94   : > { %4316 = vmatprep.subr.bf16.mxu1 %v5106_v3 }
 0xe0c   : > { %v2181_v1 = vpop.xlane.xlu1 %2180 }
 0xe0d   : > { %v2186_v2 = vmul.f32 0.03125, %v2181_v1  ;;  %v5941_v1 = vld [vmem:[#allocation11] sm:$0xff] }
 0xe0e   : > { %v2184_v4 = vpop.xlane.xlu0 %2183 }
 0xe0f   : > { %v2188_v7 = vsub.f32 %v2177_v58, %v2186_v2  ;;  %v2187_v8 = vmul.f32 0.03125, %v2184_v4 }
 0xe11   : > { %v2189_v9 = vsub.f32 %v2178_v61, %v2187_v8  ;;  %v2190_v10 = vmul.f32 %v2188_v7, %v2188_v7 }
 0xe13   : > { %v2192_v5 = vsel %vm1120_vm2, %v2190_v10, 0.0  ;;  %v2191_v11 = vmul.f32 %v2189_v9, %v2189_v9 }
 0xe14   : > { %2193 = vadd.xlane.f32.xlu0 %v2192_v5 }
 0xe15   : > { %v2195_v6 = vsel %vm1120_vm2, %v2191_v11, 0.0 }
 0xe16   : > { %2196 = vadd.xlane.f32.xlu1 %v2195_v6 }
 0xea1   : > { %v2194_v19 = vpop.xlane.xlu0 %2193 }
 0xea2   : > { %v2198_v20 = vmul.f32 0.03125, %v2194_v19 }
 0xea3   : > { %v2197_v22 = vpop.xlane.xlu1 %2196 }
 0xea4   : > { %v2200_v24 = vadd.f32 1e-05, %v2198_v20  ;;  %v2199_v23 = vmul.f32 0.03125, %v2197_v22 }
 0xea6   : > { %4631 = vrsqrt.f32 %v2200_v24  ;;  %v2201_v25 = vadd.f32 1e-05, %v2199_v23 }
 0xea8   : > { %4633 = vrsqrt.f32 %v2201_v25 }
 0xeb0   : > { %v4632_v26 = vpop.eup %4631 }
 0xeb1   : > { %v2204_v28 = vmul.f32 %v4632_v26, %v2188_v7 }
 0xeb2   : > { %v4634_v29 = vpop.eup %4633 }
 0xeb3   : > { %v2210_v30 = vmul.f32 %v2209_v0, %v2204_v28  ;;  %v2205_v31 = vmul.f32 %v4634_v29, %v2189_v9 }
 0xeb5   : > { %v2211_v33 = vmul.f32 %v2209_v0, %v2205_v31  ;;  %v5904_v34 = vadd.f32 %v2215_v32, %v2210_v30 }
 0xeb7   : > { %v5906_v35 = vadd.f32 %v2215_v32, %v2211_v33 }
 0xeb9   : > { %v2218_v36 = vpack.c.bf16 %v5906_v35, %v5904_v34 }
 0xebb   : > { %4287 = vmatmul.mubr.msk.bf16.vlgmr.msra.gmra.mrb[32].mxu0 %vm1120_vm2, %v2218_v36 }
 0xebc   : > { %4300 = vmatprep.mubr.msk.bf16.mxu0 %vm5107_vm1, %v5106_v3  ;;  %4299 = vmatpush3.bf16.xpose.msra.mxu0 %v2379_v47 }
 0xebd   : > { %4310 = vmatprep.subr.bf16.mxu0 %v5106_v3 }
 0xf8e   : > { %v2279_v50 = vpop.f32.mrb[32].mxu0 }
 0xf8f   : > { %v4288_v51 = vpop.f32.mrb[33].mxu0  ;;  %v2280_v53 = vadd.f32 %v4017_v49, %v2279_v50 }
 0xf90   : > { %v2282_v52 = vpop.f32.mrb[34].mxu0 }
 0xf91   : > { %v2283_v54 = vadd.f32 %v4017_v49, %v2282_v52  ;;  %v4289_v55 = vpop.f32.mrb[35].mxu0 }
 0xf93   : > { %v2286_v56 = vpack.c.bf16 %v2283_v54, %v2280_v53 }
 0xf95   : > { %2287 = vst.msk [vmem:[#allocation2] sm:$0xff] %vm1120_vm2, %v2286_v56 }
 0xf9c   : > { %v2363_v57 = vld [vmem:[#allocation2] sm:$0xff] }
 0xf9d   : > { %v5929_v58 = vcombine.low %v2363_v57, %v2363_v57  ;;  %v5931_v60 = vcombine.high %v2363_v57, %v2363_v57 }
 0xf9f   : > { %4301 = vmatmul.mubr.msk.bf16.vlgmr.msra.gmra.mrb[36].mxu0 %vm1176_vm4, %v5929_v58  ;;  %4307 = vmatmul.mubr.msk.bf16.vlgmr.msra.gmra.mrb[44].mxu1 %vm1176_vm4, %v5931_v60 }
 0xfa0   : > { %4312 = vmatprep.mubr.msk.bf16.mxu0 %vm5107_vm1, %v5106_v3  ;;  %4318 = vmatprep.mubr.msk.bf16.mxu1 %vm5107_vm1, %v5106_v3 }
0x1072   : > { %v2415_v61 = vpop.f32.mrb[36].mxu0  ;;  %v2461_v62 = vpop.f32.mrb[44].mxu1 }
0x1073   : > { %v2467_v2 = vmul.f32 0.35355338, %v2415_v61  ;;  %v2468_v4 = vmul.f32 0.35355338, %v2461_v62  ;;  %v4302_v7 = vpop.f32.mrb[37].mxu0  ;;  %v4308_v8 = vpop.f32.mrb[45].mxu1 }
0x1074   : > { %v2418_v9 = vpop.f32.mrb[38].mxu0  ;;  %v2464_v10 = vpop.f32.mrb[46].mxu1 }
0x1075   : > { %v4303_v5 = vpop.f32.mrb[39].mxu0  ;;  %v4309_v11 = vpop.f32.mrb[47].mxu1  ;;  %v2469_v6 = vadd.f32 %v2467_v2, %v5941_v1  ;;  %v2470_v12 = vadd.f32 %v2468_v4, %v5941_v1 }
0x1077   : > { %v2471_v13 = vsel %vm1176_vm4, %v2469_v6, -inf  ;;  %v2474_v14 = vsel %vm1176_vm4, %v2470_v12, -inf }
0x1078   : > { %2472 = vmax.xlane.f32.xlu0 %v2471_v13  ;;  %2475 = vmax.xlane.f32.xlu1 %v2474_v14 }
0x1089   : > { %2543 = vrot.lane.b32.xlu1 %v5918_v46, %s5108_s18 }
0x108e   : > { %2495 = vrot.lane.b32.xlu0 %v5916_v45, %s5108_s18 }
0x1105   : > { %v2473_v15 = vpop.xlane.xlu0 %2472  ;;  %v2476_v16 = vpop.xlane.xlu1 %2475 }
0x1106   : > { %v2477_v19 = vsub.f32 %v2469_v6, %v2473_v15  ;;  %v2478_v20 = vsub.f32 %v2470_v12, %v2476_v16 }
0x1108   : > { %v2479_v21 = vmul.f32 1.442695, %v2477_v19  ;;  %v2481_v22 = vmul.f32 1.442695, %v2478_v20 }
0x1109   : > { %v2496_v24 = vpop.permute.xlu0 %2495  ;;  %v2544_v23 = vpop.permute.xlu1 %2543 }
0x110a   : > { %4635 = vpow2.f32 %v2479_v21  ;;  %v2501_v25 = vsel %vm1304_vm5, %v2496_v24, 0  ;;  %v2549_v59 = vsel %vm1304_vm5, %v2544_v23, 0 }
0x110b   : > { %4637 = vpow2.f32 %v2481_v22  ;;  %4311 = vmatpush3.bf16.msra.mxu0 %v2501_v25  ;;  %4317 = vmatpush3.bf16.msra.mxu1 %v2549_v59 }
0x110c   : > { %4322 = vmatprep.subr.bf16.mxu0 %v5106_v3  ;;  %4328 = vmatprep.subr.bf16.mxu1 %v5106_v3 }
0x1114   : > { %v4636_v0 = vpop.eup %4635 }
0x1115   : > { %v4638_v26 = vpop.eup %4637  ;;  %v2483_v28 = vsel %vm1176_vm4, %v4636_v0, 0.0 }
0x1116   : > { %2484 = vadd.xlane.f32.xlu0 %v2483_v28  ;;  %v2486_v29 = vsel %vm1176_vm4, %v4638_v26, 0.0 }
0x1117   : > { %2487 = vadd.xlane.f32.xlu1 %v2486_v29 }
0x1128   : > { %2605 = vrot.lane.b32.xlu1 %v5916_v45, %s5111_s1 }
0x112c   : > { %2602 = vrot.lane.b32.xlu1 %v5929_v58, %s5111_s1  ;;  %2657 = vrot.lane.b32.xlu0 %v5918_v46, %s5111_s1 }
0x1130   : > { %2654 = vrot.lane.b32.xlu0 %v5931_v60, %s5111_s1 }
0x11a3   : > { %v2485_v30 = vpop.xlane.xlu0 %2484 }
0x11a4   : > { %4639 = vrcp.f32 %v2485_v30  ;;  %v2488_v31 = vpop.xlane.xlu1 %2487 }
0x11a5   : > { %4641 = vrcp.f32 %v2488_v31 }
0x11a7   : > { %v2658_v38 = vpop.permute.xlu0 %2657 }
0x11a8   : > { %v2606_v18 = vpop.permute.xlu1 %2605  ;;  %v2663_v42 = vsel %vm1176_vm4, %v2658_v38, 0 }
0x11a9   : > { %v2611_v41 = vsel %vm1176_vm4, %v2606_v18, 0 }
0x11ab   : > { %v2655_v44 = vpop.permute.xlu0 %2654 }
0x11ac   : > { %v2603_v43 = vpop.permute.xlu1 %2602 }
0x11ae   : > { %v4640_v32 = vpop.eup %4639 }
0x11af   : > { %v4642_v33 = vpop.eup %4641  ;;  %v2491_v36 = vmul.f32 %v4640_v32, %v4636_v0 }
0x11b0   : > { %v2492_v37 = vmul.f32 %v4642_v33, %v4638_v26 }
0x11b1   : > { %v2493_v39 = vpack.c.bf16 %v2491_v36, %v2491_v36 }
0x11b2   : > { %v2494_v40 = vpack.c.bf16 %v2492_v37, %v2492_v37 }
0x11b3   : > { %4313 = vmatmul.mubr.msk.bf16.vlgmr.msra.gmra.mrb[40].mxu0 %vm1176_vm4, %v2493_v39 }
0x11b4   : > { %4319 = vmatmul.mubr.msk.bf16.vlgmr.msra.gmra.mrb[48].mxu1 %vm1176_vm4, %v2494_v40  ;;  %4323 = vmatpush3.bf16.xpose.msra.mxu0 %v2611_v41 }
0x11b5   : > { %4329 = vmatpush3.bf16.xpose.msra.mxu1 %v2663_v42  ;;  %4324 = vmatprep.mubr.msk.bf16.mxu0 %vm5107_vm1, %v5106_v3 }
0x11b6   : > { %4330 = vmatprep.mubr.msk.bf16.mxu1 %vm5107_vm1, %v5106_v3  ;;  %4334 = vmatprep.subr.bf16.mxu0 %v5106_v3 }
0x11b7   : > { %4340 = vmatprep.subr.bf16.mxu1 %v5106_v3 }
0x11bb   : > { %4325 = vmatmul.mubr.msk.bf16.vlgmr.msra.gmra.mrb[44].mxu0 %vm1176_vm4, %v2603_v43 }
0x11bc   : > { %4331 = vmatmul.mubr.msk.bf16.vlgmr.msra.gmra.mrb[52].mxu1 %vm1176_vm4, %v2655_v44  ;;  %4336 = vmatprep.mubr.msk.bf16.mxu0 %vm5107_vm1, %v5106_v3 }
0x11bd   : > { %4342 = vmatprep.mubr.msk.bf16.mxu1 %vm5107_vm1, %v5106_v3 }
0x1286   : > { %v2537_v47 = vpop.f32.mrb[40].mxu0 }
0x1287   : > { %v2585_v48 = vpop.f32.mrb[48].mxu1  ;;  %v4314_v49 = vpop.f32.mrb[41].mxu0 }
0x1288   : > { %v2591_v50 = vpack.c.bf16 %v2585_v48, %v2537_v47  ;;  %v4320_v51 = vpop.f32.mrb[49].mxu1  ;;  %v2540_v52 = vpop.f32.mrb[42].mxu0 }
0x1289   : > { %v2588_v53 = vpop.f32.mrb[50].mxu1  ;;  %v4315_v54 = vpop.f32.mrb[43].mxu0 }
0x128a   : > { %2592 = vst.msk [vmem:[#allocation4] sm:$0xff] %vm1176_vm4, %v2591_v50  ;;  %v4321_v55 = vpop.f32.mrb[51].mxu1 }
0x128e   : > { %v2647_v56 = vpop.f32.mrb[44].mxu0 }
0x128f   : > { %v2705_v57 = vmul.f32 0.35355338, %v2647_v56  ;;  %v2699_v61 = vpop.f32.mrb[52].mxu1  ;;  %v4326_v62 = vpop.f32.mrb[45].mxu0 }
0x1290   : > { %v2706_v2 = vmul.f32 0.35355338, %v2699_v61  ;;  %v4332_v4 = vpop.f32.mrb[53].mxu1  ;;  %v2650_v7 = vpop.f32.mrb[46].mxu0 }
0x1291   : > { %v2702_v8 = vpop.f32.mrb[54].mxu1  ;;  %v4327_v9 = vpop.f32.mrb[47].mxu0  ;;  %v2707_v10 = vadd.f32 %v2705_v57, %v5941_v1 }
0x1292   : > { %v4333_v5 = vpop.f32.mrb[55].mxu1  ;;  %v2708_v11 = vadd.f32 %v2706_v2, %v5941_v1 }
0x1293   : > { %v2709_v6 = vsel %vm1176_vm4, %v2707_v10, -inf }
0x1294   : > { %2710 = vmax.xlane.f32.xlu1 %v2709_v6  ;;  %v2712_v12 = vsel %vm1176_vm4, %v2708_v11, -inf }
0x1295   : > { %2713 = vmax.xlane.f32.xlu0 %v2712_v12 }
0x12a5   : > { %2781 = vrot.lane.b32.xlu1 %v5918_v46, %s5110_s29 }
0x12ab   : > { %2733 = vrot.lane.b32.xlu0 %v5916_v45, %s5110_s29 }
0x1321   : > { %v2711_v13 = vpop.xlane.xlu1 %2710 }
0x1322   : > { %v2715_v14 = vsub.f32 %v2707_v10, %v2711_v13  ;;  %v2714_v15 = vpop.xlane.xlu0 %2713 }
0x1323   : > { %v2716_v16 = vsub.f32 %v2708_v11, %v2714_v15 }
0x1324   : > { %v2717_v19 = vmul.f32 1.442695, %v2715_v14 }
0x1325   : > { %v2719_v20 = vmul.f32 1.442695, %v2716_v16  ;;  %v2782_v21 = vpop.permute.xlu1 %2781 }
0x1326   : > { %4643 = vpow2.f32 %v2717_v19  ;;  %v2787_v22 = vsel %vm1304_vm5, %v2782_v21, 0  ;;  %v2734_v24 = vpop.permute.xlu0 %2733 }
0x1327   : > { %4645 = vpow2.f32 %v2719_v20  ;;  %v2739_v23 = vsel %vm1304_vm5, %v2734_v24, 0  ;;  %4341 = vmatpush3.bf16.msra.mxu1 %v2787_v22 }
0x1328   : > { %4335 = vmatpush3.bf16.msra.mxu0 %v2739_v23  ;;  %4352 = vmatprep.subr.bf16.mxu1 %v5106_v3 }
0x1329   : > { %4346 = vmatprep.subr.bf16.mxu0 %v5106_v3 }
0x1330   : > { %v4644_v25 = vpop.eup %4643 }
0x1331   : > { %v4646_v59 = vpop.eup %4645  ;;  %v2721_v0 = vsel %vm1176_vm4, %v4644_v25, 0.0 }
0x1332   : > { %2722 = vadd.xlane.f32.xlu0 %v2721_v0  ;;  %v2724_v26 = vsel %vm1176_vm4, %v4646_v59, 0.0 }
0x1333   : > { %2725 = vadd.xlane.f32.xlu1 %v2724_v26 }
0x1344   : > { %2847 = vrot.lane.b32.xlu1 %v5916_v45, %s5114_s24 }
0x1348   : > { %2844 = vrot.lane.b32.xlu1 %v5929_v58, %s5114_s24  ;;  %2899 = vrot.lane.b32.xlu0 %v5918_v46, %s5114_s24 }
0x134c   : > { %2896 = vrot.lane.b32.xlu0 %v5931_v60, %s5114_s24 }
0x13bf   : > { %v2723_v28 = vpop.xlane.xlu0 %2722 }
0x13c0   : > { %v2726_v29 = vpop.xlane.xlu1 %2725  ;;  %4647 = vrcp.f32 %v2723_v28 }
0x13c1   : > { %4649 = vrcp.f32 %v2726_v29 }
0x13c3   : > { %v2900_v37 = vpop.permute.xlu0 %2899 }
0x13c4   : > { %v2848_v36 = vpop.permute.xlu1 %2847  ;;  %v2905_v40 = vsel %vm1176_vm4, %v2900_v37, 0 }
0x13c5   : > { %v2853_v39 = vsel %vm1176_vm4, %v2848_v36, 0 }
0x13c7   : > { %v2897_v42 = vpop.permute.xlu0 %2896 }
0x13c8   : > { %v2845_v41 = vpop.permute.xlu1 %2844 }
0x13ca   : > { %v4648_v30 = vpop.eup %4647 }
0x13cb   : > { %v4650_v31 = vpop.eup %4649  ;;  %v2729_v32 = vmul.f32 %v4648_v30, %v4644_v25 }
0x13cc   : > { %v2730_v33 = vmul.f32 %v4650_v31, %v4646_v59 }
0x13cd   : > { %v2731_v18 = vpack.c.bf16 %v2729_v32, %v2729_v32 }
0x13ce   : > { %v2732_v38 = vpack.c.bf16 %v2730_v33, %v2730_v33 }
0x13cf   : > { %4337 = vmatmul.mubr.msk.bf16.vlgmr.msra.gmra.mrb[48].mxu0 %vm1176_vm4, %v2731_v18 }
0x13d0   : > { %4343 = vmatmul.mubr.msk.bf16.vlgmr.msra.gmra.mrb[56].mxu1 %vm1176_vm4, %v2732_v38  ;;  %4347 = vmatpush3.bf16.xpose.msra.mxu0 %v2853_v39 }
0x13d1   : > { %4353 = vmatpush3.bf16.xpose.msra.mxu1 %v2905_v40  ;;  %4348 = vmatprep.mubr.msk.bf16.mxu0 %vm5107_vm1, %v5106_v3 }
0x13d2   : > { %4354 = vmatprep.mubr.msk.bf16.mxu1 %vm5107_vm1, %v5106_v3  ;;  %4358 = vmatprep.subr.bf16.mxu0 %v5106_v3 }
0x13d3   : > { %4364 = vmatprep.subr.bf16.mxu1 %v5106_v3 }
0x13d7   : > { %4349 = vmatmul.mubr.msk.bf16.vlgmr.msra.gmra.mrb[52].mxu0 %vm1176_vm4, %v2845_v41 }
0x13d8   : > { %4355 = vmatmul.mubr.msk.bf16.vlgmr.msra.gmra.mrb[60].mxu1 %vm1176_vm4, %v2897_v42  ;;  %4360 = vmatprep.mubr.msk.bf16.mxu0 %vm5107_vm1, %v5106_v3 }
0x13d9   : > { %4366 = vmatprep.mubr.msk.bf16.mxu1 %vm5107_vm1, %v5106_v3 }
0x14a2   : > { %v6020_v43 = vpop.f32.mrb[48].mxu0 }
0x14a3   : > { %v6022_v44 = vpop.f32.mrb[56].mxu1  ;;  %v4338_v47 = vpop.f32.mrb[49].mxu0 }
0x14a4   : > { %v2829_v48 = vpack.c.bf16 %v6022_v44, %v6020_v43  ;;  %v4344_v49 = vpop.f32.mrb[57].mxu1  ;;  %v2778_v50 = vpop.f32.mrb[50].mxu0 }
0x14a5   : > { %v2826_v51 = vpop.f32.mrb[58].mxu1  ;;  %v4339_v52 = vpop.f32.mrb[51].mxu0 }
0x14a6   : > { %v4345_v53 = vpop.f32.mrb[59].mxu1 }
0x14aa   : > { %v2889_v54 = vpop.f32.mrb[52].mxu0 }
0x14ab   : > { %v2947_v55 = vmul.f32 0.35355338, %v2889_v54  ;;  %v2941_v56 = vpop.f32.mrb[60].mxu1  ;;  %v4350_v57 = vpop.f32.mrb[53].mxu0 }
0x14ac   : > { %v2948_v61 = vmul.f32 0.35355338, %v2941_v56  ;;  %v4356_v62 = vpop.f32.mrb[61].mxu1  ;;  %v2892_v2 = vpop.f32.mrb[54].mxu0 }
0x14ad   : > { %v2944_v4 = vpop.f32.mrb[62].mxu1  ;;  %v4351_v7 = vpop.f32.mrb[55].mxu0  ;;  %v2949_v8 = vadd.f32 %v2947_v55, %v5941_v1 }
0x14ae   : > { %v4357_v9 = vpop.f32.mrb[63].mxu1  ;;  %v2950_v10 = vadd.f32 %v2948_v61, %v5941_v1 }
0x14af   : > { %v2951_v5 = vsel %vm1176_vm4, %v2949_v8, -inf }
0x14b0   : > { %2952 = vmax.xlane.f32.xlu1 %v2951_v5  ;;  %v2954_v11 = vsel %vm1176_vm4, %v2950_v10, -inf }
0x14b1   : > { %2955 = vmax.xlane.f32.xlu0 %v2954_v11 }
0x14c1   : > { %3023 = vrot.lane.b32.xlu1 %v5918_v46, %s5113_s6 }
0x14c7   : > { %2975 = vrot.lane.b32.xlu0 %v5916_v45, %s5113_s6 }
0x153d   : > { %v2953_v6 = vpop.xlane.xlu1 %2952 }
0x153e   : > { %v2957_v12 = vsub.f32 %v2949_v8, %v2953_v6  ;;  %v2956_v13 = vpop.xlane.xlu0 %2955 }
0x153f   : > { %v2958_v14 = vsub.f32 %v2950_v10, %v2956_v13 }
0x1540   : > { %v2959_v15 = vmul.f32 1.442695, %v2957_v12 }
0x1541   : > { %v2961_v16 = vmul.f32 1.442695, %v2958_v14  ;;  %v3024_v19 = vpop.permute.xlu1 %3023 }
0x1542   : > { %4651 = vpow2.f32 %v2959_v15  ;;  %v3029_v20 = vsel %vm1304_vm5, %v3024_v19, 0  ;;  %v2976_v21 = vpop.permute.xlu0 %2975 }
0x1543   : > { %4653 = vpow2.f32 %v2961_v16  ;;  %v2981_v22 = vsel %vm1304_vm5, %v2976_v21, 0  ;;  %4365 = vmatpush3.bf16.msra.mxu1 %v3029_v20 }
0x1544   : > { %4359 = vmatpush3.bf16.msra.mxu0 %v2981_v22  ;;  %4376 = vmatprep.subr.bf16.mxu1 %v5106_v3 }
0x1545   : > { %4370 = vmatprep.subr.bf16.mxu0 %v5106_v3 }
0x154c   : > { %v4652_v24 = vpop.eup %4651 }
0x154d   : > { %v4654_v23 = vpop.eup %4653  ;;  %v2963_v25 = vsel %vm1176_vm4, %v4652_v24, 0.0 }
0x154e   : > { %2964 = vadd.xlane.f32.xlu0 %v2963_v25  ;;  %v2966_v59 = vsel %vm1176_vm4, %v4654_v23, 0.0 }
0x154f   : > { %2967 = vadd.xlane.f32.xlu1 %v2966_v59 }
0x1560   : > { %3089 = vrot.lane.b32.xlu1 %v5916_v45, %s5117_s5 }
0x1564   : > { %3086 = vrot.lane.b32.xlu1 %v5929_v58, %s5117_s5  ;;  %3141 = vrot.lane.b32.xlu0 %v5918_v46, %s5117_s5 }
0x1568   : > { %3138 = vrot.lane.b32.xlu0 %v5931_v60, %s5117_s5 }
0x15db   : > { %v2965_v0 = vpop.xlane.xlu0 %2964 }
0x15dc   : > { %v2968_v26 = vpop.xlane.xlu1 %2967  ;;  %4655 = vrcp.f32 %v2965_v0 }
0x15dd   : > { %4657 = vrcp.f32 %v2968_v26 }
0x15df   : > { %v3142_v33 = vpop.permute.xlu0 %3141 }
0x15e0   : > { %v3090_v32 = vpop.permute.xlu1 %3089  ;;  %v3147_v18 = vsel %vm1176_vm4, %v3142_v33, 0 }
0x15e1   : > { %v3095_v58 = vsel %vm1176_vm4, %v3090_v32, 0 }
0x15e3   : > { %v3139_v38 = vpop.permute.xlu0 %3138 }
0x15e4   : > { %v3087_v60 = vpop.permute.xlu1 %3086 }
0x15e6   : > { %v4656_v28 = vpop.eup %4655 }
0x15e7   : > { %v4658_v29 = vpop.eup %4657  ;;  %v2971_v30 = vmul.f32 %v4656_v28, %v4652_v24 }
0x15e8   : > { %v2972_v31 = vmul.f32 %v4658_v29, %v4654_v23  ;;  %v4591_v29 = vld [vmem:[%s5678_s15] sm:$0xff]  }
0x15e9   : > { %v2973_v36 = vpack.c.bf16 %v2971_v30, %v2971_v30  ;;  %v4592_v30 = vld [vmem:[%s5678_s15 + $0x8] sm:$0xff]  }
0x15ea   : > { %v2974_v37 = vpack.c.bf16 %v2972_v31, %v2972_v31 }
0x15eb   : > { %4361 = vmatmul.mubr.msk.bf16.vlgmr.msra.gmra.mrb[56].mxu0 %vm1176_vm4, %v2973_v36 }
0x15ec   : > { %4367 = vmatmul.mubr.msk.bf16.vlgmr.msra.gmra.mrb[64].mxu1 %vm1176_vm4, %v2974_v37  ;;  %4371 = vmatpush3.bf16.xpose.msra.mxu0 %v3095_v58 }
0x15ed   : > { %4377 = vmatpush3.bf16.xpose.msra.mxu1 %v3147_v18  ;;  %4372 = vmatprep.mubr.msk.bf16.mxu0 %vm5107_vm1, %v5106_v3 }
0x15ee   : > { %4378 = vmatprep.mubr.msk.bf16.mxu1 %vm5107_vm1, %v5106_v3  ;;  %4382 = vmatprep.subr.bf16.mxu0 %v5106_v3 }
0x15ef   : > { %4388 = vmatprep.subr.bf16.mxu1 %v5106_v3 }
0x15f3   : > { %4373 = vmatmul.mubr.msk.bf16.vlgmr.msra.gmra.mrb[60].mxu0 %vm1176_vm4, %v3087_v60 }
0x15f4   : > { %4379 = vmatmul.mubr.msk.bf16.vlgmr.msra.gmra.mrb[68].mxu1 %vm1176_vm4, %v3139_v38  ;;  %4384 = vmatprep.mubr.msk.bf16.mxu0 %vm5107_vm1, %v5106_v3 }
0x15f5   : > { %4390 = vmatprep.mubr.msk.bf16.mxu1 %vm5107_vm1, %v5106_v3 }
0x16be   : > { %v3017_v39 = vpop.f32.mrb[56].mxu0 }
0x16bf   : > { %v3065_v40 = vpop.f32.mrb[64].mxu1  ;;  %v4362_v41 = vpop.f32.mrb[57].mxu0 }
0x16c0   : > { %v3071_v42 = vpack.c.bf16 %v3065_v40, %v3017_v39  ;;  %v4368_v47 = vpop.f32.mrb[65].mxu1  ;;  %v3020_v49 = vpop.f32.mrb[58].mxu0  ;;  %v4058_v41 = vld [vmem:[%s911_s0] ss:$0 sm:$0xff] }
0x16c1   : > { %v3068_v50 = vpop.f32.mrb[66].mxu1  ;;  %v4363_v51 = vpop.f32.mrb[59].mxu0 }
0x16c2   : > { %v4369_v52 = vpop.f32.mrb[67].mxu1 }
0x16c6   : > { %v3131_v53 = vpop.f32.mrb[60].mxu0 }
0x16c7   : > { %v3189_v54 = vmul.f32 0.35355338, %v3131_v53  ;;  %v3183_v55 = vpop.f32.mrb[68].mxu1  ;;  %v4374_v56 = vpop.f32.mrb[61].mxu0 }
0x16c8   : > { %v3190_v57 = vmul.f32 0.35355338, %v3183_v55  ;;  %v4380_v61 = vpop.f32.mrb[69].mxu1  ;;  %v3134_v62 = vpop.f32.mrb[62].mxu0 }
0x16c9   : > { %v3186_v2 = vpop.f32.mrb[70].mxu1  ;;  %v4375_v4 = vpop.f32.mrb[63].mxu0  ;;  %v3191_v7 = vadd.f32 %v3189_v54, %v5941_v1 }
0x16ca   : > { %v4381_v8 = vpop.f32.mrb[71].mxu1  ;;  %v3192_v9 = vadd.f32 %v3190_v57, %v5941_v1 }
0x16cb   : > { %v3193_v10 = vsel %vm1176_vm4, %v3191_v7, -inf }
0x16cc   : > { %3194 = vmax.xlane.f32.xlu1 %v3193_v10  ;;  %v3196_v5 = vsel %vm1176_vm4, %v3192_v9, -inf  ;;  %v4593_v10 = vld [vmem:[%s5681_s13] sm:$0xff]  }
0x16cd   : > { %3197 = vmax.xlane.f32.xlu0 %v3196_v5  ;;  %v4594_v5 = vld [vmem:[%s5681_s13 + $0x8] sm:$0xff]  }
0x1759   : > { %v3195_v11 = vpop.xlane.xlu1 %3194 }
0x175a   : > { %v3199_v6 = vsub.f32 %v3191_v7, %v3195_v11  ;;  %v3198_v12 = vpop.xlane.xlu0 %3197  ;;  %v4595_v11 = vld [vmem:[%s5662_s26] sm:$0xff]  }
0x175b   : > { %v3200_v13 = vsub.f32 %v3192_v9, %v3198_v12 }
0x175c   : > { %v3201_v14 = vmul.f32 1.442695, %v3199_v6  ;;  %v4596_v6 = vld [vmem:[%s5662_s26 + $0x8] sm:$0xff]  }
0x175d   : > { %v3203_v15 = vmul.f32 1.442695, %v3200_v13 }
0x175e   : > { %4659 = vpow2.f32 %v3201_v14 }
0x175f   : > { %4661 = vpow2.f32 %v3203_v15 }
0x1768   : > { %v4660_v16 = vpop.eup %4659 }
0x1769   : > { %v4662_v19 = vpop.eup %4661  ;;  %v3205_v20 = vsel %vm1176_vm4, %v4660_v16, 0.0 }
0x176a   : > { %3206 = vadd.xlane.f32.xlu0 %v3205_v20  ;;  %v3208_v1 = vsel %vm1176_vm4, %v4662_v19, 0.0  ;;  %v3417_v20 = vsub.s32 1, %v5893_v17 }
0x176b   : > { %3209 = vadd.xlane.f32.xlu1 %v3208_v1 }
0x177c   : > { %3265 = vrot.lane.b32.xlu1 %v5918_v46, %s5116_s28 }
0x1780   : > { %2831 = vrot.lane.b32.xlu1 %v2829_v48, %s5119_s11  ;;  %3217 = vrot.lane.b32.xlu0 %v5916_v45, %s5116_s28 }
0x1784   : > { %3073 = vrot.lane.b32.xlu0 %v3071_v42, %s5120_s14 }
0x17f7   : > { %v3207_v21 = vpop.xlane.xlu0 %3206 }
0x17f8   : > { %v3210_v22 = vpop.xlane.xlu1 %3209  ;;  %4663 = vrcp.f32 %v3207_v21  ;;  %v3418_v21 = vrot.slane %v5897_v63, %v3417_v20 }
0x17f9   : > { %4665 = vrcp.f32 %v3210_v22 }
0x17fb   : > { %v3218_v24 = vpop.permute.xlu0 %3217 }
0x17fc   : > { %v3266_v23 = vpop.permute.xlu1 %3265  ;;  %v3223_v25 = vsel %vm1304_vm5, %v3218_v24, 0 }
0x17fd   : > { %v3271_v46 = vsel %vm1304_vm5, %v3266_v23, 0  ;;  %4383 = vmatpush3.bf16.msra.mxu0 %v3223_v25 }
0x17fe   : > { %4389 = vmatpush3.bf16.msra.mxu1 %v3271_v46  ;;  %4394 = vmatprep.subr.bf16.mxu0 %v5106_v3  ;;  %v3424_v46 = vrot.slane %v5901_v27, %v3417_v20 }
0x17ff   : > { %v3074_v43 = vpop.permute.xlu0 %3073  ;;  %4402 = vmatprep.subr.bf16.mxu1 %v5106_v3 }
0x1800   : > { %v2832_v45 = vpop.permute.xlu1 %2831 }
0x1801   : > { %2834 = vst.msk [vmem:[#allocation4] sm:$0xff] %vm1633_vm6, %v2832_v45 }
0x1802   : > { %v4664_v44 = vpop.eup %4663  ;;  %3076 = vst.msk [vmem:[#allocation4] sm:$0xff] %vm1870_vm7, %v3074_v43 }
0x1803   : > { %v4666_v48 = vpop.eup %4665  ;;  %v3213_v59 = vmul.f32 %v4664_v44, %v4660_v16 }
0x1804   : > { %v3214_v0 = vmul.f32 %v4666_v48, %v4662_v19 }
0x1805   : > { %v3215_v26 = vpack.c.bf16 %v3213_v59, %v3213_v59  ;;  %v4597_v59 = vld [vmem:[%s5662_s26 + $0x10] sm:$0xff]  }
0x1806   : > { %v3216_v28 = vpack.c.bf16 %v3214_v0, %v3214_v0  ;;  %v4598_v0 = vld [vmem:[%s5662_s26 + $0x18] sm:$0xff]  }
0x1807   : > { %4385 = vmatmul.mubr.msk.bf16.vlgmr.msra.gmra.mrb[64].mxu0 %vm1176_vm4, %v3215_v26  ;;  %v4062_v26 = vld [vmem:[%s6317_s23] ss:$0 sm:$0xff] }
0x1808   : > { %4391 = vmatmul.mubr.msk.bf16.vlgmr.msra.gmra.mrb[72].mxu1 %vm1176_vm4, %v3216_v28  ;;  %4398 = vmatprep.mubr.msk.bf16.mxu0 %vm5107_vm1, %v5106_v3 }
0x1809   : > { %4406 = vmatprep.mubr.msk.bf16.mxu1 %vm5107_vm1, %v5106_v3  ;;  %4395 = vmatpush3.bf16.msra.mxu0 %v4591_v29 }
0x180a   : > { %4396 = vmatprep.subr.bf16.mxu0 %v5106_v3  ;;  %4403 = vmatpush3.bf16.msra.mxu1 %v4593_v10  ;;  %v3613_v10 = vsub.s32 2, %v5893_v17 }
0x180b   : > { %4404 = vmatprep.subr.bf16.mxu1 %v5106_v3 }
0x180d   : > { %4397 = vmatpush3.bf16.msra.mxu0 %v4592_v30 }
0x180e   : > { %4410 = vmatprep.subr.bf16.mxu0 %v5106_v3  ;;  %4405 = vmatpush3.bf16.msra.mxu1 %v4594_v5  ;;  %v3614_v5 = vrot.slane %v5897_v63, %v3613_v10 }
0x18da   : > { %v3259_v31 = vpop.f32.mrb[64].mxu0 }
0x18db   : > { %v3307_v32 = vpop.f32.mrb[72].mxu1  ;;  %v4386_v33 = vpop.f32.mrb[65].mxu0 }
0x18dc   : > { %v3313_v36 = vpack.c.bf16 %v3307_v32, %v3259_v31  ;;  %v4392_v37 = vpop.f32.mrb[73].mxu1  ;;  %v3262_v58 = vpop.f32.mrb[66].mxu0 }
0x18dd   : > { %v3310_v18 = vpop.f32.mrb[74].mxu1  ;;  %v4387_v60 = vpop.f32.mrb[67].mxu0 }
0x18de   : > { %3315 = vrot.lane.b32.xlu1 %v3313_v36, %s5121_s21  ;;  %v4393_v38 = vpop.f32.mrb[75].mxu1 }
0x1950   : > { %v3316_v39 = vpop.permute.xlu1 %3315 }
0x1951   : > { %3318 = vst.msk [vmem:[#allocation4] sm:$0xff] %vm2107_vm8, %v3316_v39 }
0x1958   : > { %v3319_v40 = vld [vmem:[#allocation4] sm:$0xff] }
0x1959   : > { %4399 = vmatmul.mubr.msk.bf16.vlgmr.msra.gmra.mrb[68].mxu0 %vm1120_vm2, %v3319_v40 }
0x195a   : > { %4418 = vmatprep.mubr.msk.bf16.mxu0 %vm5107_vm1, %v5106_v3  ;;  %4411 = vmatpush3.bf16.msra.mxu0 %v4595_v11 }
0x195b   : > { %4412 = vmatprep.subr.bf16.mxu0 %v5106_v3 }
0x195e   : > { %4413 = vmatpush3.bf16.msra.mxu0 %v4596_v6 }
0x195f   : > { %4414 = vmatprep.subr.bf16.mxu0 %v5106_v3 }
0x1962   : > { %4415 = vmatpush3.bf16.msra.mxu0 %v4597_v59 }
0x1963   : > { %4416 = vmatprep.subr.bf16.mxu0 %v5106_v3  ;;  %v4071_v3 = vld [vmem:[%s1068_s17] ss:$0 sm:$0xff]  ;;  %s3634_s17 = sshll.u32 %s5122_s10, 4  ;;  %s3635_s17 = int_to_ptr.vmem [resolvable:$true] %s3634_s17 }
0x1964   : > { %s4997_s12 = scalar_lea.vmem %s3635_s17, 256  ;;  %p5004_p1 = scmp.lt.s32.totalorder %s3635_s17, %s3635_s17 }
0x1965   : > { %p4998_p3 = scmp.ne.s32.totalorder %s3635_s17, %s4997_s12  ;;  %p5005_p2 = scmp.lt.s32.totalorder %s4997_s12, %s4997_s12 }
0x1966   : > { %4417 = vmatpush3.bf16.msra.mxu0 %v4598_v0 }
0x1967   : > { %p4999_p13 = pnand %p4998_p3, %p4500_p0  ;;  %p5006_p10 = por %p5005_p2, %p5004_p1 }
0x1969   : > { %p5000_p4 = pneg %p4999_p13 }
0x196b   : > { %p5007_p11 = pnand %p5006_p10, %p5000_p4 }
0x1a2c   : > { %v3380_v42 = vpop.f32.mrb[68].mxu0 }
0x1a2d   : > { %v3381_v47 = vadd.f32 %v4058_v41, %v3380_v42  ;;  %v4400_v49 = vpop.f32.mrb[69].mxu0 }
0x1a2e   : > { %v3383_v50 = vpop.f32.mrb[70].mxu0 }
0x1a2f   : > { %v3384_v51 = vadd.f32 %v4058_v41, %v3383_v50  ;;  %v4401_v52 = vpop.f32.mrb[71].mxu0  ;;  %v3387_v53 = vadd.f32 %v3381_v47, %v5904_v34 }
0x1a31   : > { %v3389_v54 = vsel %vm1120_vm2, %v3387_v53, 0.0  ;;  %v3388_v55 = vadd.f32 %v3384_v51, %v5906_v35 }
0x1a32   : > { %3390 = vadd.xlane.f32.xlu0 %v3389_v54 }
0x1a33   : > { %v3392_v56 = vsel %vm1120_vm2, %v3388_v55, 0.0 }
0x1a34   : > { %3393 = vadd.xlane.f32.xlu1 %v3392_v56 }
0x1abf   : > { %v3391_v57 = vpop.xlane.xlu0 %3390 }
0x1ac0   : > { %v3395_v61 = vmul.f32 0.03125, %v3391_v57 }
0x1ac1   : > { %v3394_v62 = vpop.xlane.xlu1 %3393 }
0x1ac2   : > { %v3397_v2 = vsub.f32 %v3387_v53, %v3395_v61  ;;  %v3396_v4 = vmul.f32 0.03125, %v3394_v62 }
0x1ac4   : > { %v3398_v7 = vsub.f32 %v3388_v55, %v3396_v4  ;;  %v3399_v8 = vmul.f32 %v3397_v2, %v3397_v2 }
0x1ac6   : > { %v3401_v34 = vsel %vm1120_vm2, %v3399_v8, 0.0  ;;  %v3400_v9 = vmul.f32 %v3398_v7, %v3398_v7 }
0x1ac7   : > { %3402 = vadd.xlane.f32.xlu0 %v3401_v34 }
0x1ac8   : > { %v3404_v35 = vsel %vm1120_vm2, %v3400_v9, 0.0 }
0x1acb   : > { %3405 = vadd.xlane.f32.xlu0 %v3404_v35 }
0x1b54   : > { %v3403_v12 = vpop.xlane.xlu0 %3402 }
0x1b55   : > { %v3407_v13 = vmul.f32 0.03125, %v3403_v12  ;;  %v3620_v12 = vrot.slane %v5901_v27, %v3613_v10 }
0x1b57   : > { %v3409_v14 = vadd.f32 1e-05, %v3407_v13 }
0x1b58   : > { %v3406_v15 = vpop.xlane.xlu0 %3405 }
0x1b59   : > { %4667 = vrsqrt.f32 %v3409_v14  ;;  %v3408_v16 = vmul.f32 0.03125, %v3406_v15 }
0x1b5b   : > { %v3410_v19 = vadd.f32 1e-05, %v3408_v16 }
0x1b5d   : > { %4669 = vrsqrt.f32 %v3410_v19 }
0x1b63   : > { %v4668_v1 = vpop.eup %4667 }
0x1b64   : > { %v3413_v22 = vmul.f32 %v4668_v1, %v3397_v2 }
0x1b66   : > { %v3419_v23 = vmul.f32 %v3418_v21, %v3413_v22 }
0x1b67   : > { %v4670_v24 = vpop.eup %4669 }
0x1b68   : > { %v3414_v25 = vmul.f32 %v4670_v24, %v3398_v7  ;;  %v3425_v45 = vadd.f32 %v3424_v46, %v3419_v23 }
0x1b6a   : > { %v3420_v43 = vmul.f32 %v3418_v21, %v3414_v25 }
0x1b6c   : > { %v3426_v44 = vadd.f32 %v3424_v46, %v3420_v43 }
0x1b6e   : > { %v3427_v48 = vpack.c.bf16 %v3426_v44, %v3425_v45 }
0x1b70   : > { %4407 = vmatmul.mubr.msk.bf16.vlgmr.msra.gmra.mrb[76].mxu1 %vm1120_vm2, %v3427_v48 }
0x1c43   : > { %v3489_v28 = vpop.f32.mrb[76].mxu1 }
0x1c44   : > { %v3490_v29 = vadd.f32 %v4062_v26, %v3489_v28  ;;  %v4408_v30 = vpop.f32.mrb[77].mxu1 }
0x1c45   : > { %v3492_v31 = vpop.f32.mrb[78].mxu1 }
0x1c46   : > { %v3493_v32 = vadd.f32 %v4062_v26, %v3492_v31  ;;  %v4409_v33 = vpop.f32.mrb[79].mxu1  ;;  %v3496_v36 = vmax.f32 %v3490_v29, 0.0 }
0x1c48   : > { %v3497_v37 = vmax.f32 %v3493_v32, 0.0 }
0x1c4a   : > { %v3498_v58 = vpack.c.bf16 %v3497_v37, %v3496_v36 }
0x1c4c   : > { %4419 = vmatmul.mubr.msk.bf16.vlgmr.msra.gmra.mrb[72].mxu0 %vm2361_vm9, %v3498_v58 }
0x1d1f   : > { %v3568_v18 = vpop.f32.mrb[72].mxu0 }
0x1d20   : > { %v3581_v60 = vadd.f32 %v4071_v3, %v3568_v18  ;;  %v4420_v38 = vpop.f32.mrb[73].mxu0 }
0x1d21   : > { %v3571_v39 = vpop.f32.mrb[74].mxu0 }
0x1d22   : > { %v3582_v40 = vadd.f32 %v4071_v3, %v3571_v39  ;;  %v4421_v41 = vpop.f32.mrb[75].mxu0  ;;  %v3583_v42 = vadd.f32 %v3581_v60, %v3425_v45 }
0x1d24   : > { %v3585_v47 = vsel %vm1120_vm2, %v3583_v42, 0.0  ;;  %v3584_v49 = vadd.f32 %v3582_v40, %v3426_v44 }
0x1d25   : > { %3586 = vadd.xlane.f32.xlu1 %v3585_v47 }
0x1d26   : > { %v3588_v50 = vsel %vm1120_vm2, %v3584_v49, 0.0 }
0x1d27   : > { %3589 = vadd.xlane.f32.xlu0 %v3588_v50 }
0x1db2   : > { %v3587_v51 = vpop.xlane.xlu1 %3586 }
0x1db3   : > { %v3591_v52 = vmul.f32 0.03125, %v3587_v51 }
0x1db4   : > { %v3590_v53 = vpop.xlane.xlu0 %3589 }
0x1db5   : > { %v3593_v54 = vsub.f32 %v3583_v42, %v3591_v52  ;;  %v3592_v55 = vmul.f32 0.03125, %v3590_v53 }
0x1db7   : > { %v3594_v56 = vsub.f32 %v3584_v49, %v3592_v55  ;;  %v3595_v57 = vmul.f32 %v3593_v54, %v3593_v54 }
0x1db9   : > { %v3597_v61 = vsel %vm1120_vm2, %v3595_v57, 0.0  ;;  %v3596_v62 = vmul.f32 %v3594_v56, %v3594_v56 }
0x1dba   : > { %3598 = vadd.xlane.f32.xlu1 %v3597_v61 }
0x1dbb   : > { %v3600_v2 = vsel %vm1120_vm2, %v3596_v62, 0.0 }
0x1dbc   : > { %3601 = vadd.xlane.f32.xlu0 %v3600_v2 }
0x1e47   : > { %v3599_v4 = vpop.xlane.xlu1 %3598 }
0x1e48   : > { %v3603_v7 = vmul.f32 0.03125, %v3599_v4 }
0x1e49   : > { %v3602_v8 = vpop.xlane.xlu0 %3601 }
0x1e4a   : > { %v3605_v34 = vadd.f32 1e-05, %v3603_v7  ;;  %v3604_v9 = vmul.f32 0.03125, %v3602_v8 }
0x1e4c   : > { %4671 = vrsqrt.f32 %v3605_v34  ;;  %v3606_v35 = vadd.f32 1e-05, %v3604_v9 }
0x1e4e   : > { %4673 = vrsqrt.f32 %v3606_v35 }
0x1e56   : > { %v4672_v11 = vpop.eup %4671 }
0x1e57   : > { %v3609_v6 = vmul.f32 %v4672_v11, %v3593_v54 }
0x1e58   : > { %v4674_v13 = vpop.eup %4673 }
0x1e59   : > { %v3615_v14 = vmul.f32 %v3614_v5, %v3609_v6  ;;  %v3610_v15 = vmul.f32 %v4674_v13, %v3594_v56 }
0x1e5b   : > { %v3616_v16 = vmul.f32 %v3614_v5, %v3610_v15  ;;  %v3621_v19 = vadd.f32 %v3620_v12, %v3615_v14 }
0x1e5d   : > { %v3622_v20 = vadd.f32 %v3620_v12, %v3616_v16  ;;  %3623 = vst.msk [vmem:[#allocation20] sm:$0xff] %vm1120_vm2, %v3621_v19 }
0x1e5f   : > { %3624 = vst.msk [vmem:[#allocation20 + $0x8] sm:$0xff] %vm1120_vm2, %v3622_v20 }
0x1e60   : > { %5010 = shalt.err (!%p5007_p11)
}
0x1e61   : > { %s6319_s15 = sld [smem:[#allocation52_spill]] }
0x1e67   : > { %s5011_s0 = scalar_lea.hbm %s6319_s15, 256 }
0x1e68   : > { %p5012_p5 = scmp.ne.s32.totalorder %s6319_s15, %s5011_s0  ;;  %p5017_p6 = scmp.lt.u32.totalorder %s5011_s0, %s6319_s15 }
0x1e6a   : > { %p5013_p7 = pnand %p5012_p5, %p4500_p0 }
0x1e6c   : > { %p5014_p9 = pneg %p5013_p7 }
0x1e6e   : > { %p5019_p12 = pnand %p5017_p6, %p5014_p9 }
0x1e70   : > { %5022 = shalt.err (!%p5019_p12)
}
0x1e71   : > { %s5123_s19 = smov 128  }
0x1e72   : > { %4453 = dma.vmem_to_hbm [thread:$0]  (%p4500_p0), %s3635_s17, 256, %s6319_s15, [#allocation7], %s5123_s19, %s5123_s19, %s5119_s11  }
0x1e73   : > { %5064 = dma.done.wait (%p4500_p0), [#allocation7], 256  }
0x1e74   : > { %5066 = vsyncadd (%p4500_p0), [#allocation7], 4294967040 }
0x1e75 PF: > { %s6320_s20 = sld [smem:[#allocation28_spill]]  ;;  %s6321_s28 = sld [smem:[#allocation26_spill]] }
0x1e76   : > { %s6322_s23 = sld [smem:[#allocation31_spill]]  ;;  %s6323_s5 = sld [smem:[#allocation30_spill]] }
0x1e77   : > { %s6324_s1 = smov %s5073_s22  ;;  %s6326_s24 = smov %s5085_s2 }
0x1e7b   : > { %s34_s25 = sadd.s32 1, %s6320_s20   ;;  %s6325_s22 = smov %s6321_s28 }
0x1e7c   : > { %p31_p8 = scmp.ge.s32.totalorder %s34_s25, 4   ;;  %s6327_s2 = smov %s6323_s5 }
0x1e7e   :  { %33 = sbr.rel (!%p31_p8) target bundleno = 28 (0x1c), region = 252 }
0x1e85   :  { %3650 = vsyncpa [#allocation6], 1 }
0x1e86   :  { %3652 = vsyncpa [#allocation6 + $0x1], 1 }
0x1e87   :  { %3653 = vsyncpa [#allocation9], 1 }
0x1e88   :  { %3654 = vsyncpa [#allocation12], 1 }
0x1e89   :  { %3655 = vsyncpa [#allocation7], 1 }
0x1e8a   :  { %3657 = vsyncpa [#allocation7 + $0x1], 1 }

</bundles_post_ra>
